<compile_context>
chip_gen: v6e
topology: v6e:2x2x1
jax: 0.10.0
libtpu: 0.0.40
codegen_flags: <defaults>
</compile_context>

<pallas_src>
import jax
import jax.numpy as jnp
from jax.experimental import pallas as pl
from jax.experimental.pallas import tpu as pltpu


# ---------------------------------------------------------------------------------------------
# Hardware probing (generation-aware tiling)
# ---------------------------------------------------------------------------------------------
_TPU_ENV = None


def _tpu_env():
    """Returns (two_tensorcores, vmem_capacity_bytes) with conservative fallbacks."""
    global _TPU_ENV
    if _TPU_ENV is None:
        kind = ""
        try:
            kind = jax.devices()[0].device_kind.lower()
        except Exception:
            pass
        single_tc = any(m in kind for m in
                        ("v5e", "v5 lite", "v5lite", "v6e", "v6 lite", "v6lite", "v2", "v3"))
        vmem_cap = 64 << 20                      # assume the smallest (v7x) if probing fails
        try:
            info = pltpu.get_tpu_info()
            vmem_cap = int(getattr(info, "vmem_capacity_bytes", vmem_cap))
        except Exception:
            pass
        _TPU_ENV = (not single_tc, vmem_cap)
    return _TPU_ENV


# ---------------------------------------------------------------------------------------------
# Pallas kernel 1: graph message pooling as a dense-adjacency matmul, tiled over the feature axis.
#   pooled = adj_scaled @ feats_flat          (1/max(E_pos,1) already folded into adj)
# ---------------------------------------------------------------------------------------------
def _pool_kernel(adj_ref, feats_ref, o_ref):
    o_ref[...] = jnp.dot(adj_ref[...], feats_ref[...], preferred_element_type=jnp.float32)


def graph_pool(adj_scaled, feats_flat):
    V, F = feats_flat.shape
    _, vmem_cap = _tpu_env()
    budget = max(2 << 20, int(0.3 * vmem_cap))

    def step_bytes(f):                           # dbl-buffered bf16 in + f32 out + adj
        return 2 * (V * f * 2 + V * f * 4) + V * V * 2

    if step_bytes(F) <= budget:
        f_tile = F
    else:
        cands = [d for d in range(128, F, 128) if F % d == 0]
        fits = [d for d in cands if step_bytes(d) <= budget]
        f_tile = max(fits) if fits else (min(cands) if cands else F)

    return pl.pallas_call(
        _pool_kernel,
        out_shape=jax.ShapeDtypeStruct((V, F), jnp.float32),
        grid=(F // f_tile,),
        in_specs=[
            pl.BlockSpec((V, V), lambda j: (0, 0)),           # scaled adjacency (resident)
            pl.BlockSpec((V, f_tile), lambda j: (0, j)),      # feature-axis tile
        ],
        out_specs=pl.BlockSpec((V, f_tile), lambda j: (0, j)),
        compiler_params=pltpu.CompilerParams(dimension_semantics=("parallel",)),
    )(adj_scaled.astype(jnp.bfloat16), feats_flat.astype(jnp.bfloat16))


# ---------------------------------------------------------------------------------------------
# Pallas kernel 2: fused conv3x3(same, bias) + GroupNorm(1) + LeakyReLU(0.1) with in-kernel im2col.
# Activations live in a zero-padded flattened layout (V, C, L), L = (H+2)*(W+2); the 3x3 conv is
# 9 shifted-slice matmuls (w_tap (Cout,Cin) @ x_shift (Cin,span)) accumulated in f32, and the
# output is written back into the same padded layout (border kept zero for the next layer).
# ---------------------------------------------------------------------------------------------
def _make_conv_gn_lrelu_kernel(H, W, spb, eps=1e-5):
    Hp, Wp = H + 2, W + 2
    o_lo = Wp + 1                                # first valid output position in padded-flat index
    span = (H - 1) * Wp + W                      # covers all valid outputs; taps stay in-bounds
    offsets = [(kh - 1) * Wp + (kw - 1) for kh in range(3) for kw in range(3)]
    inv_spatial = 1.0 / float(H * W)

    def kernel(x_ref, w_ref, p_ref, m_ref, o_ref):
        # x_ref: (spb, Cin, L) bf16   | w_ref: (9, Cout, Cin) bf16
        # p_ref: (Cout, 3) f32 [bias | gamma | beta]
        # m_ref: (1, span) f32 valid-interior mask | o_ref: (spb, Cout, L) bf16/f32
        cout = o_ref.shape[1]
        o_ref[...] = jnp.zeros_like(o_ref)                    # padded border must stay zero
        b = p_ref[:, 0:1]
        g = p_ref[:, 1:2]
        bt = p_ref[:, 2:3]
        mask = m_ref[...]                                     # (1, span)
        inv_cnt = inv_spatial / cout                          # GN(1): stats over (C, H, W)

        for v in range(spb):                                  # static unroll; spb is small
            xv = x_ref[v]                                     # (Cin, L) bf16, one load per sample
            y = jnp.zeros((cout, span), jnp.float32)
            for tap in range(9):                              # in-kernel im2col: 9 shifted slices
                d = offsets[tap]
                xs = xv[:, o_lo + d:o_lo + d + span]          # (Cin, span)
                y = y + jnp.dot(w_ref[tap], xs, preferred_element_type=jnp.float32)
            y = y + b                                         # conv bias
            ym = y * mask                                     # zero out non-valid (border) lanes
            mean = jnp.sum(ym, keepdims=True) * inv_cnt       # single-pass GN stats
            ex2 = jnp.sum(ym * ym, keepdims=True) * inv_cnt
            var = jnp.maximum(ex2 - mean * mean, 0.0)
            s = g * jax.lax.rsqrt(var + eps)                  # folded affine scale (EUP)
            t = bt - mean * s                                 # folded affine shift
            yn = ym * s + t
            act = jnp.maximum(yn, 0.1 * yn)                   # LeakyReLU(0.1)
            o_ref[v, :, o_lo:o_lo + span] = (act * mask).astype(o_ref.dtype)
    return kernel


def _choose_grid(V, Cin, Cout, L, out_dtype):
    """Pick grid blocks: >=2 steps/TC on 2-TC chips, 1 big block otherwise; respect VMEM budget."""
    two_tc, vmem_cap = _tpu_env()
    out_bytes = jnp.dtype(out_dtype).itemsize
    Lp = -(-L // 128) * 128
    cin_p = -(-Cin // 8) * 8
    cout_p = -(-Cout // 8) * 8

    def block_bytes(spb):                        # double-buffered input + output blocks
        return 2 * (spb * cin_p * Lp * 2 + spb * cout_p * Lp * out_bytes)

    budget = max(4 << 20, int(0.4 * vmem_cap))
    divs = [d for d in range(1, V + 1) if V % d == 0]
    target = min(V, 4) if two_tc else 1
    nb = next((d for d in divs if d >= target), V)
    while block_bytes(V // nb) > budget and nb < V:
        nb = next(d for d in divs if d > nb)
    spb = V // nb
    vmem_limit = int(min(max(3 * block_bytes(spb) + (8 << 20), 32 << 20),
                         max(32 << 20, int(0.7 * vmem_cap))))
    return nb, spb, vmem_limit


def _valid_mask(H, W):
    Hp, Wp = H + 2, W + 2
    o_lo = Wp + 1
    span = (H - 1) * Wp + W
    m = jnp.zeros((Hp, Wp), jnp.float32).at[1:H + 1, 1:W + 1].set(1.0)
    return m.reshape(1, Hp * Wp)[:, o_lo:o_lo + span]         # (1, span)


def conv3x3_gn_lrelu_padded(x_pad, w_oihw, bias, gamma, beta, H, W, out_dtype):
    """x_pad: (V, Cin, L) bf16 padded-flat; w_oihw: PyTorch (Cout, Cin, 3, 3). -> (V, Cout, L)."""
    V, Cin, L = x_pad.shape
    Cout = w_oihw.shape[0]
    Hp, Wp = H + 2, W + 2
    assert L == Hp * Wp
    span = (H - 1) * Wp + W

    nb, spb, vmem_limit = _choose_grid(V, Cin, Cout, L, out_dtype)

    w_taps = jnp.transpose(w_oihw, (2, 3, 0, 1)).reshape(9, Cout, Cin).astype(jnp.bfloat16)
    p = jnp.stack([bias, gamma, beta], axis=1).astype(jnp.float32)    # (Cout, 3): one tiny DMA
    mask = _valid_mask(H, W)

    return pl.pallas_call(
        _make_conv_gn_lrelu_kernel(H, W, spb),
        out_shape=jax.ShapeDtypeStruct((V, Cout, L), out_dtype),
        grid=(nb,),
        in_specs=[
            pl.BlockSpec((spb, Cin, L), lambda j: (j, 0, 0)),         # padded-flat activations
            pl.BlockSpec((9, Cout, Cin), lambda j: (0, 0, 0)),        # per-tap weights (resident)
            pl.BlockSpec((Cout, 3), lambda j: (0, 0)),                # packed bias/gamma/beta
            pl.BlockSpec((1, span), lambda j: (0, 0)),                # valid-interior mask
        ],
        out_specs=pl.BlockSpec((spb, Cout, L), lambda j: (j, 0, 0)),
        compiler_params=pltpu.CompilerParams(
            dimension_semantics=("parallel",),
            vmem_limit_bytes=vmem_limit,
        ),
    )(x_pad, w_taps, p, mask)


# ---------------------------------------------------------------------------------------------
# CMP forward
# ---------------------------------------------------------------------------------------------
def cmp_forward(params, feats, edges, extra_feats):
    """feats: (V, C, H, W); edges: (E, 3) int rows (src, flag, dst); extra_feats: (V, E_ch, H, W)."""
    V, C, H, W = feats.shape
    edges = edges.reshape(-1, 3)

    # --- glue (XLA): dense bidirectional adjacency from positive edges, pooling scale folded in ---
    pos_w = (edges[:, 1] > 0).astype(jnp.float32)
    n_pos = jnp.sum(pos_w)
    src = edges[:, 0]
    dst = edges[:, 2]
    adj = jnp.zeros((V, V), jnp.float32)
    adj = adj.at[dst, src].add(pos_w)             # pooled[dst] += feats[src]
    adj = adj.at[src, dst].add(pos_w)             # pooled[src] += feats[dst]
    adj = adj * (1.0 / jnp.maximum(n_pos, 1.0))

    # --- Pallas: pooling as a feature-tiled matmul ---
    feats_flat = feats.reshape(V, C * H * W)
    pooled = graph_pool(adj, feats_flat).reshape(V, C, H, W)

    # enc_in = cat([feats, pooled, extra_feats], channel dim); single pad+flatten into the
    # padded-flat layout consumed by every conv layer (done ONCE, not per layer).
    enc_in = jnp.concatenate([feats, pooled, extra_feats], axis=1)    # (V, 2C+E, H, W)
    Hp, Wp = H + 2, W + 2
    x = jnp.pad(enc_in, ((0, 0), (0, 0), (1, 1), (1, 1)))
    x = x.reshape(V, enc_in.shape[1], Hp * Wp).astype(jnp.bfloat16)

    # --- Pallas: encoder (3 fused conv blocks); bf16 between layers, f32 only on the last ---
    n_layers = len(params)
    for i, (w, b, g, bt) in enumerate(params):
        out_dtype = jnp.float32 if i == n_layers - 1 else jnp.bfloat16
        x = conv3x3_gn_lrelu_padded(x, w, b, g, bt, H, W, out_dtype)  # (V, Cout, L)

    # extract valid interior once at exit (honours the NCHW contract of the reference)
    Cout = x.shape[1]
    return x.reshape(V, Cout, Hp, Wp)[:, :, 1:H + 1, 1:W + 1]


def init_params(key, in_channels, out_channels, extra_channels):
    """Deterministic synthetic parameters with the shapes CMP.__init__ implies."""
    dims = [
        (2 * in_channels + extra_channels, 2 * in_channels),
        (2 * in_channels, in_channels),
        (in_channels, out_channels),
    ]
    params = []
    for i, (ci, co) in enumerate(dims):
        kw, kb, kg, kbt = jax.random.split(jax.random.fold_in(key, i), 4)
        w = 0.1 * jax.random.normal(kw, (co, ci, 3, 3), jnp.float32)  # PyTorch OIHW
        b = 0.1 * jax.random.normal(kb, (co,), jnp.float32)
        g = 1.0 + 0.1 * jax.random.normal(kg, (co,), jnp.float32)     # GroupNorm weight
        bt = 0.1 * jax.random.normal(kbt, (co,), jnp.float32)         # GroupNorm bias
        params.append((w, b, g, bt))
    return params


if __name__ == "__main__":
    key = jax.random.PRNGKey(0)
    V, C, E_ch, H = 8, 4, 4, 16                  # nodes, in_channels, extra_channels, spatial
    out_channels = 4

    k_feat, k_extra, k_param = jax.random.split(key, 3)
    feats = jax.random.normal(k_feat, (V, C, H, H), jnp.float32)
    extra_feats = jax.random.normal(k_extra, (V, E_ch, H, H), jnp.float32)

    # edges: (E, 3) rows of (src, flag, dst); all flags positive (reference asserts no negatives)
    src = jnp.array([0, 1, 2, 3, 4, 5, 6, 7, 0, 2, 4, 6], jnp.int32)
    dst = jnp.array([1, 2, 3, 4, 5, 6, 7, 0, 3, 5, 7, 1], jnp.int32)
    flag = jnp.ones_like(src)
    edges = jnp.stack([src, flag, dst], axis=1)

    params = init_params(k_param, C, out_channels, E_ch)

    cmp_jit = jax.jit(cmp_forward)
    out = cmp_jit(params, feats, edges, extra_feats)
    jax.block_until_ready(out)
    assert out.shape == (V, out_channels, H, H)
    assert bool(jnp.all(jnp.isfinite(out)))
    print("KERNEL_OK")
</pallas_src>

<mosaic_0001>
module attributes {stable_mosaic.version = 11 : i64} {
  func.func @_pool_kernel(%arg0: i32, %arg1: memref<8x8xbf16, #tpu.memory_space<vmem>>, %arg2: memref<8x1024xbf16, #tpu.memory_space<vmem>>, %arg3: memref<8x1024xf32, #tpu.memory_space<vmem>>) attributes {dimension_semantics = [#tpu.dimension_semantics<parallel>], iteration_bounds = array<i64: 1>, scalar_prefetch = 0 : i64, scratch_operands = 0 : i64, tpu.core_type = #tpu.core_type<tc>, window_params = [{pipeline_mode = #tpu.pipeline_mode<synchronous>, transform_indices = @transform_0, window_bounds = array<i64: 8, 8>}, {transform_indices = @transform_1, window_bounds = array<i64: 8, 1024>}, {transform_indices = @transform_2, window_bounds = array<i64: 8, 1024>}]} {
    %c0 = arith.constant 0 : index
    %c0_0 = arith.constant 0 : index
    %0 = vector.load %arg1[%c0, %c0_0] : memref<8x8xbf16, #tpu.memory_space<vmem>>, vector<8x8xbf16>
    %c0_1 = arith.constant 0 : index
    %c0_2 = arith.constant 0 : index
    %1 = vector.load %arg2[%c0_1, %c0_2] : memref<8x1024xbf16, #tpu.memory_space<vmem>>, vector<8x1024xbf16>
    %cst = arith.constant dense<0.000000e+00> : vector<8x1024xf32>
    %2 = tpu.matmul %0, %1, %cst {dimension_numbers = #tpu.dot_dimension_numbers<[1], [0], [0], [1], [0, 0, 1, 1], [], []>} : vector<8x8xbf16>, vector<8x1024xbf16>, vector<8x1024xf32> -> vector<8x1024xf32>
    %c0_3 = arith.constant 0 : index
    %c0_4 = arith.constant 0 : index
    %3 = vector.load %arg3[%c0_3, %c0_4] : memref<8x1024xf32, #tpu.memory_space<vmem>>, vector<8x1024xf32>
    tpu.vector_store %arg3[%c0_3, %c0_4], %2 {strides = array<i32>} : memref<8x1024xf32, #tpu.memory_space<vmem>>, vector<8x1024xf32>,
    return
  }
  func.func @transform_0(%arg0: i32) -> (i32, i32) {
    %c0_i32 = arith.constant 0 : i32
    %c0_i32_0 = arith.constant 0 : i32
    %c0_i32_1 = arith.constant 0 : i32
    return %c0_i32, %c0_i32_0 : i32, i32
  }
  func.func @transform_1(%arg0: i32) -> (i32, i32) {
    %c0_i32 = arith.constant 0 : i32
    %c0_i32_0 = arith.constant 0 : i32
    return %c0_i32, %arg0 : i32, i32
  }
  func.func @transform_2(%arg0: i32) -> (i32, i32) {
    %c0_i32 = arith.constant 0 : i32
    %c0_i32_0 = arith.constant 0 : i32
    return %c0_i32, %arg0 : i32, i32
  }
}

module attributes {stable_mosaic.version = 11 : i64} {
  func.func @kernel(%arg0: i32, %arg1: memref<2x12x324xbf16, #tpu.memory_space<vmem>>, %arg2: memref<9x8x12xbf16, #tpu.memory_space<vmem>>, %arg3: memref<8x3xf32, #tpu.memory_space<vmem>>, %arg4: memref<1x286xf32, #tpu.memory_space<vmem>>, %arg5: memref<2x8x324xbf16, #tpu.memory_space<vmem>>) attributes {dimension_semantics = [#tpu.dimension_semantics<parallel>], iteration_bounds = array<i64: 4>, scalar_prefetch = 0 : i64, scratch_operands = 0 : i64, tpu.core_type = #tpu.core_type<tc>, window_params = [{transform_indices = @transform_0, window_bounds = array<i64: 2, 12, 324>}, {pipeline_mode = #tpu.pipeline_mode<synchronous>, transform_indices = @transform_1, window_bounds = array<i64: 9, 8, 12>}, {pipeline_mode = #tpu.pipeline_mode<synchronous>, transform_indices = @transform_2, window_bounds = array<i64: 8, 3>}, {pipeline_mode = #tpu.pipeline_mode<synchronous>, transform_indices = @transform_3, window_bounds = array<i64: 1, 286>}, {transform_indices = @transform_4, window_bounds = array<i64: 2, 8, 324>}]} {
    %cst = arith.constant 0.000000e+00 : bf16
    %0 = vector.broadcast %cst : bf16 to vector<2x8x324xbf16>
    %c0 = arith.constant 0 : index
    %c0_0 = arith.constant 0 : index
    %c0_1 = arith.constant 0 : index
    %1 = vector.load %arg5[%c0, %c0_0, %c0_1] : memref<2x8x324xbf16, #tpu.memory_space<vmem>>, vector<2x8x324xbf16>
    tpu.vector_store %arg5[%c0, %c0_0, %c0_1], %0 {strides = array<i32>} : memref<2x8x324xbf16, #tpu.memory_space<vmem>>, vector<2x8x324xbf16>,
    %c0_2 = arith.constant 0 : index
    %c0_3 = arith.constant 0 : index
    %2 = vector.load %arg3[%c0_2, %c0_3] : memref<8x3xf32, #tpu.memory_space<vmem>>, vector<8x1xf32>
    %c0_4 = arith.constant 0 : index
    %c1 = arith.constant 1 : index
    %3 = vector.load %arg3[%c0_4, %c1] : memref<8x3xf32, #tpu.memory_space<vmem>>, vector<8x1xf32>
    %c0_5 = arith.constant 0 : index
    %c2 = arith.constant 2 : index
    %4 = vector.load %arg3[%c0_5, %c2] : memref<8x3xf32, #tpu.memory_space<vmem>>, vector<8x1xf32>
    %c0_6 = arith.constant 0 : index
    %c0_7 = arith.constant 0 : index
    %5 = vector.load %arg4[%c0_6, %c0_7] : memref<1x286xf32, #tpu.memory_space<vmem>>, vector<1x286xf32>
    %c0_8 = arith.constant 0 : index
    %c0_9 = arith.constant 0 : index
    %c0_10 = arith.constant 0 : index
    %6 = vector.load %arg1[%c0_8, %c0_9, %c0_10] : memref<2x12x324xbf16, #tpu.memory_space<vmem>>, vector<1x12x324xbf16>
    %7 = vector.shape_cast %6 : vector<1x12x324xbf16> to vector<12x324xbf16>
    %cst_11 = arith.constant 0.000000e+00 : f32
    %8 = vector.broadcast %cst_11 : f32 to vector<8x286xf32>
    %9 = vector.extract_strided_slice %7 {offsets = [0, 0], sizes = [12, 286], strides = [1, 1]} : vector<12x324xbf16> to vector<12x286xbf16>
    %c0_12 = arith.constant 0 : index
    %c0_13 = arith.constant 0 : index
    %c0_14 = arith.constant 0 : index
    %10 = vector.load %arg2[%c0_12, %c0_13, %c0_14] : memref<9x8x12xbf16, #tpu.memory_space<vmem>>, vector<1x8x12xbf16>
    %11 = vector.shape_cast %10 : vector<1x8x12xbf16> to vector<8x12xbf16>
    %cst_15 = arith.constant dense<0.000000e+00> : vector<8x286xf32>
    %12 = tpu.matmul %11, %9, %cst_15 {dimension_numbers = #tpu.dot_dimension_numbers<[1], [0], [0], [1], [0, 0, 1, 1], [], []>} : vector<8x12xbf16>, vector<12x286xbf16>, vector<8x286xf32> -> vector<8x286xf32>
    %13 = arith.addf %8, %12 : vector<8x286xf32>
    %14 = vector.extract_strided_slice %7 {offsets = [0, 1], sizes = [12, 286], strides = [1, 1]} : vector<12x324xbf16> to vector<12x286xbf16>
    %c1_16 = arith.constant 1 : index
    %c0_17 = arith.constant 0 : index
    %c0_18 = arith.constant 0 : index
    %15 = vector.load %arg2[%c1_16, %c0_17, %c0_18] : memref<9x8x12xbf16, #tpu.memory_space<vmem>>, vector<1x8x12xbf16>
    %16 = vector.shape_cast %15 : vector<1x8x12xbf16> to vector<8x12xbf16>
    %cst_19 = arith.constant dense<0.000000e+00> : vector<8x286xf32>
    %17 = tpu.matmul %16, %14, %cst_19 {dimension_numbers = #tpu.dot_dimension_numbers<[1], [0], [0], [1], [0, 0, 1, 1], [], []>} : vector<8x12xbf16>, vector<12x286xbf16>, vector<8x286xf32> -> vector<8x286xf32>
    %18 = arith.addf %13, %17 : vector<8x286xf32>
    %19 = vector.extract_strided_slice %7 {offsets = [0, 2], sizes = [12, 286], strides = [1, 1]} : vector<12x324xbf16> to vector<12x286xbf16>
    %c2_20 = arith.constant 2 : index
    %c0_21 = arith.constant 0 : index
    %c0_22 = arith.constant 0 : index
    %20 = vector.load %arg2[%c2_20, %c0_21, %c0_22] : memref<9x8x12xbf16, #tpu.memory_space<vmem>>, vector<1x8x12xbf16>
    %21 = vector.shape_cast %20 : vector<1x8x12xbf16> to vector<8x12xbf16>
    %cst_23 = arith.constant dense<0.000000e+00> : vector<8x286xf32>
    %22 = tpu.matmul %21, %19, %cst_23 {dimension_numbers = #tpu.dot_dimension_numbers<[1], [0], [0], [1], [0, 0, 1, 1], [], []>} : vector<8x12xbf16>, vector<12x286xbf16>, vector<8x286xf32> -> vector<8x286xf32>
    %23 = arith.addf %18, %22 : vector<8x286xf32>
    %24 = vector.extract_strided_slice %7 {offsets = [0, 18], sizes = [12, 286], strides = [1, 1]} : vector<12x324xbf16> to vector<12x286xbf16>
    %c3 = arith.constant 3 : index
    %c0_24 = arith.constant 0 : index
    %c0_25 = arith.constant 0 : index
    %25 = vector.load %arg2[%c3, %c0_24, %c0_25] : memref<9x8x12xbf16, #tpu.memory_space<vmem>>, vector<1x8x12xbf16>
    %26 = vector.shape_cast %25 : vector<1x8x12xbf16> to vector<8x12xbf16>
    %cst_26 = arith.constant dense<0.000000e+00> : vector<8x286xf32>
    %27 = tpu.matmul %26, %24, %cst_26 {dimension_numbers = #tpu.dot_dimension_numbers<[1], [0], [0], [1], [0, 0, 1, 1], [], []>} : vector<8x12xbf16>, vector<12x286xbf16>, vector<8x286xf32> -> vector<8x286xf32>
    %28 = arith.addf %23, %27 : vector<8x286xf32>
    %29 = vector.extract_strided_slice %7 {offsets = [0, 19], sizes = [12, 286], strides = [1, 1]} : vector<12x324xbf16> to vector<12x286xbf16>
    %c4 = arith.constant 4 : index
    %c0_27 = arith.constant 0 : index
    %c0_28 = arith.constant 0 : index
    %30 = vector.load %arg2[%c4, %c0_27, %c0_28] : memref<9x8x12xbf16, #tpu.memory_space<vmem>>, vector<1x8x12xbf16>
    %31 = vector.shape_cast %30 : vector<1x8x12xbf16> to vector<8x12xbf16>
    %cst_29 = arith.constant dense<0.000000e+00> : vector<8x286xf32>
    %32 = tpu.matmul %31, %29, %cst_29 {dimension_numbers = #tpu.dot_dimension_numbers<[1], [0], [0], [1], [0, 0, 1, 1], [], []>} : vector<8x12xbf16>, vector<12x286xbf16>, vector<8x286xf32> -> vector<8x286xf32>
    %33 = arith.addf %28, %32 : vector<8x286xf32>
    %34 = vector.extract_strided_slice %7 {offsets = [0, 20], sizes = [12, 286], strides = [1, 1]} : vector<12x324xbf16> to vector<12x286xbf16>
    %c5 = arith.constant 5 : index
    %c0_30 = arith.constant 0 : index
    %c0_31 = arith.constant 0 : index
    %35 = vector.load %arg2[%c5, %c0_30, %c0_31] : memref<9x8x12xbf16, #tpu.memory_space<vmem>>, vector<1x8x12xbf16>
    %36 = vector.shape_cast %35 : vector<1x8x12xbf16> to vector<8x12xbf16>
    %cst_32 = arith.constant dense<0.000000e+00> : vector<8x286xf32>
    %37 = tpu.matmul %36, %34, %cst_32 {dimension_numbers = #tpu.dot_dimension_numbers<[1], [0], [0], [1], [0, 0, 1, 1], [], []>} : vector<8x12xbf16>, vector<12x286xbf16>, vector<8x286xf32> -> vector<8x286xf32>
    %38 = arith.addf %33, %37 : vector<8x286xf32>
    %39 = vector.extract_strided_slice %7 {offsets = [0, 36], sizes = [12, 286], strides = [1, 1]} : vector<12x324xbf16> to vector<12x286xbf16>
    %c6 = arith.constant 6 : index
    %c0_33 = arith.constant 0 : index
    %c0_34 = arith.constant 0 : index
    %40 = vector.load %arg2[%c6, %c0_33, %c0_34] : memref<9x8x12xbf16, #tpu.memory_space<vmem>>, vector<1x8x12xbf16>
    %41 = vector.shape_cast %40 : vector<1x8x12xbf16> to vector<8x12xbf16>
    %cst_35 = arith.constant dense<0.000000e+00> : vector<8x286xf32>
    %42 = tpu.matmul %41, %39, %cst_35 {dimension_numbers = #tpu.dot_dimension_numbers<[1], [0], [0], [1], [0, 0, 1, 1], [], []>} : vector<8x12xbf16>, vector<12x286xbf16>, vector<8x286xf32> -> vector<8x286xf32>
    %43 = arith.addf %38, %42 : vector<8x286xf32>
    %44 = vector.extract_strided_slice %7 {offsets = [0, 37], sizes = [12, 286], strides = [1, 1]} : vector<12x324xbf16> to vector<12x286xbf16>
    %c7 = arith.constant 7 : index
    %c0_36 = arith.constant 0 : index
    %c0_37 = arith.constant 0 : index
    %45 = vector.load %arg2[%c7, %c0_36, %c0_37] : memref<9x8x12xbf16, #tpu.memory_space<vmem>>, vector<1x8x12xbf16>
    %46 = vector.shape_cast %45 : vector<1x8x12xbf16> to vector<8x12xbf16>
    %cst_38 = arith.constant dense<0.000000e+00> : vector<8x286xf32>
    %47 = tpu.matmul %46, %44, %cst_38 {dimension_numbers = #tpu.dot_dimension_numbers<[1], [0], [0], [1], [0, 0, 1, 1], [], []>} : vector<8x12xbf16>, vector<12x286xbf16>, vector<8x286xf32> -> vector<8x286xf32>
    %48 = arith.addf %43, %47 : vector<8x286xf32>
    %49 = vector.extract_strided_slice %7 {offsets = [0, 38], sizes = [12, 286], strides = [1, 1]} : vector<12x324xbf16> to vector<12x286xbf16>
    %c8 = arith.constant 8 : index
    %c0_39 = arith.constant 0 : index
    %c0_40 = arith.constant 0 : index
    %50 = vector.load %arg2[%c8, %c0_39, %c0_40] : memref<9x8x12xbf16, #tpu.memory_space<vmem>>, vector<1x8x12xbf16>
    %51 = vector.shape_cast %50 : vector<1x8x12xbf16> to vector<8x12xbf16>
    %cst_41 = arith.constant dense<0.000000e+00> : vector<8x286xf32>
    %52 = tpu.matmul %51, %49, %cst_41 {dimension_numbers = #tpu.dot_dimension_numbers<[1], [0], [0], [1], [0, 0, 1, 1], [], []>} : vector<8x12xbf16>, vector<12x286xbf16>, vector<8x286xf32> -> vector<8x286xf32>
    %53 = arith.addf %48, %52 : vector<8x286xf32>
    %54 = vector.broadcast %2 : vector<8x1xf32> to vector<8x286xf32>
    %55 = arith.addf %53, %54 : vector<8x286xf32>
    %56 = vector.broadcast %5 : vector<1x286xf32> to vector<8x286xf32>
    %57 = arith.mulf %55, %56 : vector<8x286xf32>
    %58 = vector.shape_cast %57 : vector<8x286xf32> to vector<1x8x286xf32>
    %cst_42 = arith.constant dense<0.000000e+00> : vector<1xf32>
    %59 = vector.multi_reduction <add>, %58, %cst_42 [1, 2] : vector<1x8x286xf32> to vector<1xf32>
    %60 = vector.shape_cast %59 : vector<1xf32> to vector<1x1x1xf32>
    %61 = vector.extract %60[0, 0, 0] : f32 from vector<1x1x1xf32>
    %62 = vector.broadcast %61 : f32 to vector<1x1xf32>
    %cst_43 = arith.constant 4.8828125E-4 : f32
    %63 = vector.broadcast %cst_43 : f32 to vector<1x1xf32>
    %64 = arith.mulf %62, %63 : vector<1x1xf32>
    %65 = arith.mulf %57, %57 : vector<8x286xf32>
    %66 = vector.shape_cast %65 : vector<8x286xf32> to vector<1x8x286xf32>
    %cst_44 = arith.constant dense<0.000000e+00> : vector<1xf32>
    %67 = vector.multi_reduction <add>, %66, %cst_44 [1, 2] : vector<1x8x286xf32> to vector<1xf32>
    %68 = vector.shape_cast %67 : vector<1xf32> to vector<1x1x1xf32>
    %69 = vector.extract %68[0, 0, 0] : f32 from vector<1x1x1xf32>
    %70 = vector.broadcast %69 : f32 to vector<1x1xf32>
    %cst_45 = arith.constant 4.8828125E-4 : f32
    %71 = vector.broadcast %cst_45 : f32 to vector<1x1xf32>
    %72 = arith.mulf %70, %71 : vector<1x1xf32>
    %73 = arith.mulf %64, %64 : vector<1x1xf32>
    %74 = arith.subf %72, %73 : vector<1x1xf32>
    %cst_46 = arith.constant 0.000000e+00 : f32
    %75 = vector.broadcast %cst_46 : f32 to vector<1x1xf32>
    %76 = arith.maximumf %74, %75 : vector<1x1xf32>
    %cst_47 = arith.constant 9.99999974E-6 : f32
    %77 = vector.broadcast %cst_47 : f32 to vector<1x1xf32>
    %78 = arith.addf %76, %77 : vector<1x1xf32>
    %79 = math.rsqrt %78 : vector<1x1xf32>
    %80 = vector.broadcast %79 : vector<1x1xf32> to vector<8x1xf32>
    %81 = arith.mulf %3, %80 : vector<8x1xf32>
    %82 = vector.broadcast %64 : vector<1x1xf32> to vector<8x1xf32>
    %83 = arith.mulf %82, %81 : vector<8x1xf32>
    %84 = arith.subf %4, %83 : vector<8x1xf32>
    %85 = vector.broadcast %81 : vector<8x1xf32> to vector<8x286xf32>
    %86 = arith.mulf %57, %85 : vector<8x286xf32>
    %87 = vector.broadcast %84 : vector<8x1xf32> to vector<8x286xf32>
    %88 = arith.addf %86, %87 : vector<8x286xf32>
    %cst_48 = arith.constant 1.000000e-01 : f32
    %89 = vector.broadcast %cst_48 : f32 to vector<8x286xf32>
    %90 = arith.mulf %89, %88 : vector<8x286xf32>
    %91 = arith.maximumf %88, %90 : vector<8x286xf32>
    %92 = vector.broadcast %5 : vector<1x286xf32> to vector<8x286xf32>
    %93 = arith.mulf %91, %92 : vector<8x286xf32>
    %94 = arith.truncf %93 : vector<8x286xf32> to vector<8x286xbf16>
    %c0_49 = arith.constant 0 : index
    %c0_50 = arith.constant 0 : index
    %c19 = arith.constant 19 : index
    %95 = vector.load %arg5[%c0_49, %c0_50, %c19] : memref<2x8x324xbf16, #tpu.memory_space<vmem>>, vector<1x8x286xbf16>
    %96 = vector.shape_cast %95 : vector<1x8x286xbf16> to vector<8x286xbf16>
    %97 = vector.shape_cast %94 : vector<8x286xbf16> to vector<1x8x286xbf16>
    tpu.vector_store %arg5[%c0_49, %c0_50, %c19], %97 {strides = array<i32>} : memref<2x8x324xbf16, #tpu.memory_space<vmem>>, vector<1x8x286xbf16>,
    %c1_51 = arith.constant 1 : index
    %c0_52 = arith.constant 0 : index
    %c0_53 = arith.constant 0 : index
    %98 = vector.load %arg1[%c1_51, %c0_52, %c0_53] : memref<2x12x324xbf16, #tpu.memory_space<vmem>>, vector<1x12x324xbf16>
    %99 = vector.shape_cast %98 : vector<1x12x324xbf16> to vector<12x324xbf16>
    %cst_54 = arith.constant 0.000000e+00 : f32
    %100 = vector.broadcast %cst_54 : f32 to vector<8x286xf32>
    %101 = vector.extract_strided_slice %99 {offsets = [0, 0], sizes = [12, 286], strides = [1, 1]} : vector<12x324xbf16> to vector<12x286xbf16>
    %c0_55 = arith.constant 0 : index
    %c0_56 = arith.constant 0 : index
    %c0_57 = arith.constant 0 : index
    %102 = vector.load %arg2[%c0_55, %c0_56, %c0_57] : memref<9x8x12xbf16, #tpu.memory_space<vmem>>, vector<1x8x12xbf16>
    %103 = vector.shape_cast %102 : vector<1x8x12xbf16> to vector<8x12xbf16>
    %cst_58 = arith.constant dense<0.000000e+00> : vector<8x286xf32>
    %104 = tpu.matmul %103, %101, %cst_58 {dimension_numbers = #tpu.dot_dimension_numbers<[1], [0], [0], [1], [0, 0, 1, 1], [], []>} : vector<8x12xbf16>, vector<12x286xbf16>, vector<8x286xf32> -> vector<8x286xf32>
    %105 = arith.addf %100, %104 : vector<8x286xf32>
    %106 = vector.extract_strided_slice %99 {offsets = [0, 1], sizes = [12, 286], strides = [1, 1]} : vector<12x324xbf16> to vector<12x286xbf16>
    %c1_59 = arith.constant 1 : index
    %c0_60 = arith.constant 0 : index
    %c0_61 = arith.constant 0 : index
    %107 = vector.load %arg2[%c1_59, %c0_60, %c0_61] : memref<9x8x12xbf16, #tpu.memory_space<vmem>>, vector<1x8x12xbf16>
    %108 = vector.shape_cast %107 : vector<1x8x12xbf16> to vector<8x12xbf16>
    %cst_62 = arith.constant dense<0.000000e+00> : vector<8x286xf32>
    %109 = tpu.matmul %108, %106, %cst_62 {dimension_numbers = #tpu.dot_dimension_numbers<[1], [0], [0], [1], [0, 0, 1, 1], [], []>} : vector<8x12xbf16>, vector<12x286xbf16>, vector<8x286xf32> -> vector<8x286xf32>
    %110 = arith.addf %105, %109 : vector<8x286xf32>
    %111 = vector.extract_strided_slice %99 {offsets = [0, 2], sizes = [12, 286], strides = [1, 1]} : vector<12x324xbf16> to vector<12x286xbf16>
    %c2_63 = arith.constant 2 : index
    %c0_64 = arith.constant 0 : index
    %c0_65 = arith.constant 0 : index
    %112 = vector.load %arg2[%c2_63, %c0_64, %c0_65] : memref<9x8x12xbf16, #tpu.memory_space<vmem>>, vector<1x8x12xbf16>
    %113 = vector.shape_cast %112 : vector<1x8x12xbf16> to vector<8x12xbf16>
    %cst_66 = arith.constant dense<0.000000e+00> : vector<8x286xf32>
    %114 = tpu.matmul %113, %111, %cst_66 {dimension_numbers = #tpu.dot_dimension_numbers<[1], [0], [0], [1], [0, 0, 1, 1], [], []>} : vector<8x12xbf16>, vector<12x286xbf16>, vector<8x286xf32> -> vector<8x286xf32>
    %115 = arith.addf %110, %114 : vector<8x286xf32>
    %116 = vector.extract_strided_slice %99 {offsets = [0, 18], sizes = [12, 286], strides = [1, 1]} : vector<12x324xbf16> to vector<12x286xbf16>
    %c3_67 = arith.constant 3 : index
    %c0_68 = arith.constant 0 : index
    %c0_69 = arith.constant 0 : index
    %117 = vector.load %arg2[%c3_67, %c0_68, %c0_69] : memref<9x8x12xbf16, #tpu.memory_space<vmem>>, vector<1x8x12xbf16>
    %118 = vector.shape_cast %117 : vector<1x8x12xbf16> to vector<8x12xbf16>
    %cst_70 = arith.constant dense<0.000000e+00> : vector<8x286xf32>
    %119 = tpu.matmul %118, %116, %cst_70 {dimension_numbers = #tpu.dot_dimension_numbers<[1], [0], [0], [1], [0, 0, 1, 1], [], []>} : vector<8x12xbf16>, vector<12x286xbf16>, vector<8x286xf32> -> vector<8x286xf32>
    %120 = arith.addf %115, %119 : vector<8x286xf32>
    %121 = vector.extract_strided_slice %99 {offsets = [0, 19], sizes = [12, 286], strides = [1, 1]} : vector<12x324xbf16> to vector<12x286xbf16>
    %c4_71 = arith.constant 4 : index
    %c0_72 = arith.constant 0 : index
    %c0_73 = arith.constant 0 : index
    %122 = vector.load %arg2[%c4_71, %c0_72, %c0_73] : memref<9x8x12xbf16, #tpu.memory_space<vmem>>, vector<1x8x12xbf16>
    %123 = vector.shape_cast %122 : vector<1x8x12xbf16> to vector<8x12xbf16>
    %cst_74 = arith.constant dense<0.000000e+00> : vector<8x286xf32>
    %124 = tpu.matmul %123, %121, %cst_74 {dimension_numbers = #tpu.dot_dimension_numbers<[1], [0], [0], [1], [0, 0, 1, 1], [], []>} : vector<8x12xbf16>, vector<12x286xbf16>, vector<8x286xf32> -> vector<8x286xf32>
    %125 = arith.addf %120, %124 : vector<8x286xf32>
    %126 = vector.extract_strided_slice %99 {offsets = [0, 20], sizes = [12, 286], strides = [1, 1]} : vector<12x324xbf16> to vector<12x286xbf16>
    %c5_75 = arith.constant 5 : index
    %c0_76 = arith.constant 0 : index
    %c0_77 = arith.constant 0 : index
    %127 = vector.load %arg2[%c5_75, %c0_76, %c0_77] : memref<9x8x12xbf16, #tpu.memory_space<vmem>>, vector<1x8x12xbf16>
    %128 = vector.shape_cast %127 : vector<1x8x12xbf16> to vector<8x12xbf16>
    %cst_78 = arith.constant dense<0.000000e+00> : vector<8x286xf32>
    %129 = tpu.matmul %128, %126, %cst_78 {dimension_numbers = #tpu.dot_dimension_numbers<[1], [0], [0], [1], [0, 0, 1, 1], [], []>} : vector<8x12xbf16>, vector<12x286xbf16>, vector<8x286xf32> -> vector<8x286xf32>
    %130 = arith.addf %125, %129 : vector<8x286xf32>
    %131 = vector.extract_strided_slice %99 {offsets = [0, 36], sizes = [12, 286], strides = [1, 1]} : vector<12x324xbf16> to vector<12x286xbf16>
    %c6_79 = arith.constant 6 : index
    %c0_80 = arith.constant 0 : index
    %c0_81 = arith.constant 0 : index
    %132 = vector.load %arg2[%c6_79, %c0_80, %c0_81] : memref<9x8x12xbf16, #tpu.memory_space<vmem>>, vector<1x8x12xbf16>
    %133 = vector.shape_cast %132 : vector<1x8x12xbf16> to vector<8x12xbf16>
    %cst_82 = arith.constant dense<0.000000e+00> : vector<8x286xf32>
    %134 = tpu.matmul %133, %131, %cst_82 {dimension_numbers = #tpu.dot_dimension_numbers<[1], [0], [0], [1], [0, 0, 1, 1], [], []>} : vector<8x12xbf16>, vector<12x286xbf16>, vector<8x286xf32> -> vector<8x286xf32>
    %135 = arith.addf %130, %134 : vector<8x286xf32>
    %136 = vector.extract_strided_slice %99 {offsets = [0, 37], sizes = [12, 286], strides = [1, 1]} : vector<12x324xbf16> to vector<12x286xbf16>
    %c7_83 = arith.constant 7 : index
    %c0_84 = arith.constant 0 : index
    %c0_85 = arith.constant 0 : index
    %137 = vector.load %arg2[%c7_83, %c0_84, %c0_85] : memref<9x8x12xbf16, #tpu.memory_space<vmem>>, vector<1x8x12xbf16>
    %138 = vector.shape_cast %137 : vector<1x8x12xbf16> to vector<8x12xbf16>
    %cst_86 = arith.constant dense<0.000000e+00> : vector<8x286xf32>
    %139 = tpu.matmul %138, %136, %cst_86 {dimension_numbers = #tpu.dot_dimension_numbers<[1], [0], [0], [1], [0, 0, 1, 1], [], []>} : vector<8x12xbf16>, vector<12x286xbf16>, vector<8x286xf32> -> vector<8x286xf32>
    %140 = arith.addf %135, %139 : vector<8x286xf32>
    %141 = vector.extract_strided_slice %99 {offsets = [0, 38], sizes = [12, 286], strides = [1, 1]} : vector<12x324xbf16> to vector<12x286xbf16>
    %c8_87 = arith.constant 8 : index
    %c0_88 = arith.constant 0 : index
    %c0_89 = arith.constant 0 : index
    %142 = vector.load %arg2[%c8_87, %c0_88, %c0_89] : memref<9x8x12xbf16, #tpu.memory_space<vmem>>, vector<1x8x12xbf16>
    %143 = vector.shape_cast %142 : vector<1x8x12xbf16> to vector<8x12xbf16>
    %cst_90 = arith.constant dense<0.000000e+00> : vector<8x286xf32>
    %144 = tpu.matmul %143, %141, %cst_90 {dimension_numbers = #tpu.dot_dimension_numbers<[1], [0], [0], [1], [0, 0, 1, 1], [], []>} : vector<8x12xbf16>, vector<12x286xbf16>, vector<8x286xf32> -> vector<8x286xf32>
    %145 = arith.addf %140, %144 : vector<8x286xf32>
    %146 = vector.broadcast %2 : vector<8x1xf32> to vector<8x286xf32>
    %147 = arith.addf %145, %146 : vector<8x286xf32>
    %148 = vector.broadcast %5 : vector<1x286xf32> to vector<8x286xf32>
    %149 = arith.mulf %147, %148 : vector<8x286xf32>
    %150 = vector.shape_cast %149 : vector<8x286xf32> to vector<1x8x286xf32>
    %cst_91 = arith.constant dense<0.000000e+00> : vector<1xf32>
    %151 = vector.multi_reduction <add>, %150, %cst_91 [1, 2] : vector<1x8x286xf32> to vector<1xf32>
    %152 = vector.shape_cast %151 : vector<1xf32> to vector<1x1x1xf32>
    %153 = vector.extract %152[0, 0, 0] : f32 from vector<1x1x1xf32>
    %154 = vector.broadcast %153 : f32 to vector<1x1xf32>
    %cst_92 = arith.constant 4.8828125E-4 : f32
    %155 = vector.broadcast %cst_92 : f32 to vector<1x1xf32>
    %156 = arith.mulf %154, %155 : vector<1x1xf32>
    %157 = arith.mulf %149, %149 : vector<8x286xf32>
    %158 = vector.shape_cast %157 : vector<8x286xf32> to vector<1x8x286xf32>
    %cst_93 = arith.constant dense<0.000000e+00> : vector<1xf32>
    %159 = vector.multi_reduction <add>, %158, %cst_93 [1, 2] : vector<1x8x286xf32> to vector<1xf32>
    %160 = vector.shape_cast %159 : vector<1xf32> to vector<1x1x1xf32>
    %161 = vector.extract %160[0, 0, 0] : f32 from vector<1x1x1xf32>
    %162 = vector.broadcast %161 : f32 to vector<1x1xf32>
    %cst_94 = arith.constant 4.8828125E-4 : f32
    %163 = vector.broadcast %cst_94 : f32 to vector<1x1xf32>
    %164 = arith.mulf %162, %163 : vector<1x1xf32>
    %165 = arith.mulf %156, %156 : vector<1x1xf32>
    %166 = arith.subf %164, %165 : vector<1x1xf32>
    %cst_95 = arith.constant 0.000000e+00 : f32
    %167 = vector.broadcast %cst_95 : f32 to vector<1x1xf32>
    %168 = arith.maximumf %166, %167 : vector<1x1xf32>
    %cst_96 = arith.constant 9.99999974E-6 : f32
    %169 = vector.broadcast %cst_96 : f32 to vector<1x1xf32>
    %170 = arith.addf %168, %169 : vector<1x1xf32>
    %171 = math.rsqrt %170 : vector<1x1xf32>
    %172 = vector.broadcast %171 : vector<1x1xf32> to vector<8x1xf32>
    %173 = arith.mulf %3, %172 : vector<8x1xf32>
    %174 = vector.broadcast %156 : vector<1x1xf32> to vector<8x1xf32>
    %175 = arith.mulf %174, %173 : vector<8x1xf32>
    %176 = arith.subf %4, %175 : vector<8x1xf32>
    %177 = vector.broadcast %173 : vector<8x1xf32> to vector<8x286xf32>
    %178 = arith.mulf %149, %177 : vector<8x286xf32>
    %179 = vector.broadcast %176 : vector<8x1xf32> to vector<8x286xf32>
    %180 = arith.addf %178, %179 : vector<8x286xf32>
    %cst_97 = arith.constant 1.000000e-01 : f32
    %181 = vector.broadcast %cst_97 : f32 to vector<8x286xf32>
    %182 = arith.mulf %181, %180 : vector<8x286xf32>
    %183 = arith.maximumf %180, %182 : vector<8x286xf32>
    %184 = vector.broadcast %5 : vector<1x286xf32> to vector<8x286xf32>
    %185 = arith.mulf %183, %184 : vector<8x286xf32>
    %186 = arith.truncf %185 : vector<8x286xf32> to vector<8x286xbf16>
    %c1_98 = arith.constant 1 : index
    %c0_99 = arith.constant 0 : index
    %c19_100 = arith.constant 19 : index
    %187 = vector.load %arg5[%c1_98, %c0_99, %c19_100] : memref<2x8x324xbf16, #tpu.memory_space<vmem>>, vector<1x8x286xbf16>
    %188 = vector.shape_cast %187 : vector<1x8x286xbf16> to vector<8x286xbf16>
    %189 = vector.shape_cast %186 : vector<8x286xbf16> to vector<1x8x286xbf16>
    tpu.vector_store %arg5[%c1_98, %c0_99, %c19_100], %189 {strides = array<i32>} : memref<2x8x324xbf16, #tpu.memory_space<vmem>>, vector<1x8x286xbf16>,
    return
  }
  func.func @transform_0(%arg0: i32) -> (i32, i32, i32) {
    %c0_i32 = arith.constant 0 : i32
    %c0_i32_0 = arith.constant 0 : i32
    %c0_i32_1 = arith.constant 0 : i32
    return %arg0, %c0_i32, %c0_i32_0 : i32, i32, i32
  }
  func.func @transform_1(%arg0: i32) -> (i32, i32, i32) {
    %c0_i32 = arith.constant 0 : i32
    %c0_i32_0 = arith.constant 0 : i32
    %c0_i32_1 = arith.constant 0 : i32
    %c0_i32_2 = arith.constant 0 : i32
    return %c0_i32, %c0_i32_0, %c0_i32_1 : i32, i32, i32
  }
  func.func @transform_2(%arg0: i32) -> (i32, i32) {
    %c0_i32 = arith.constant 0 : i32
    %c0_i32_0 = arith.constant 0 : i32
    %c0_i32_1 = arith.constant 0 : i32
    return %c0_i32, %c0_i32_0 : i32, i32
  }
  func.func @transform_3(%arg0: i32) -> (i32, i32) {
    %c0_i32 = arith.constant 0 : i32
    %c0_i32_0 = arith.constant 0 : i32
    %c0_i32_1 = arith.constant 0 : i32
    return %c0_i32, %c0_i32_0 : i32, i32
  }
  func.func @transform_4(%arg0: i32) -> (i32, i32, i32) {
    %c0_i32 = arith.constant 0 : i32
    %c0_i32_0 = arith.constant 0 : i32
    %c0_i32_1 = arith.constant 0 : i32
    return %arg0, %c0_i32, %c0_i32_0 : i32, i32, i32
  }
}

module attributes {stable_mosaic.version = 11 : i64} {
  func.func @kernel(%arg0: i32, %arg1: memref<2x8x324xbf16, #tpu.memory_space<vmem>>, %arg2: memref<9x4x8xbf16, #tpu.memory_space<vmem>>, %arg3: memref<4x3xf32, #tpu.memory_space<vmem>>, %arg4: memref<1x286xf32, #tpu.memory_space<vmem>>, %arg5: memref<2x4x324xbf16, #tpu.memory_space<vmem>>) attributes {dimension_semantics = [#tpu.dimension_semantics<parallel>], iteration_bounds = array<i64: 4>, scalar_prefetch = 0 : i64, scratch_operands = 0 : i64, tpu.core_type = #tpu.core_type<tc>, window_params = [{transform_indices = @transform_0, window_bounds = array<i64: 2, 8, 324>}, {pipeline_mode = #tpu.pipeline_mode<synchronous>, transform_indices = @transform_1, window_bounds = array<i64: 9, 4, 8>}, {pipeline_mode = #tpu.pipeline_mode<synchronous>, transform_indices = @transform_2, window_bounds = array<i64: 4, 3>}, {pipeline_mode = #tpu.pipeline_mode<synchronous>, transform_indices = @transform_3, window_bounds = array<i64: 1, 286>}, {transform_indices = @transform_4, window_bounds = array<i64: 2, 4, 324>}]} {
    %cst = arith.constant 0.000000e+00 : bf16
    %0 = vector.broadcast %cst : bf16 to vector<2x4x324xbf16>
    %c0 = arith.constant 0 : index
    %c0_0 = arith.constant 0 : index
    %c0_1 = arith.constant 0 : index
    %1 = vector.load %arg5[%c0, %c0_0, %c0_1] : memref<2x4x324xbf16, #tpu.memory_space<vmem>>, vector<2x4x324xbf16>
    tpu.vector_store %arg5[%c0, %c0_0, %c0_1], %0 {strides = array<i32>} : memref<2x4x324xbf16, #tpu.memory_space<vmem>>, vector<2x4x324xbf16>,
    %c0_2 = arith.constant 0 : index
    %c0_3 = arith.constant 0 : index
    %2 = vector.load %arg3[%c0_2, %c0_3] : memref<4x3xf32, #tpu.memory_space<vmem>>, vector<4x1xf32>
    %c0_4 = arith.constant 0 : index
    %c1 = arith.constant 1 : index
    %3 = vector.load %arg3[%c0_4, %c1] : memref<4x3xf32, #tpu.memory_space<vmem>>, vector<4x1xf32>
    %c0_5 = arith.constant 0 : index
    %c2 = arith.constant 2 : index
    %4 = vector.load %arg3[%c0_5, %c2] : memref<4x3xf32, #tpu.memory_space<vmem>>, vector<4x1xf32>
    %c0_6 = arith.constant 0 : index
    %c0_7 = arith.constant 0 : index
    %5 = vector.load %arg4[%c0_6, %c0_7] : memref<1x286xf32, #tpu.memory_space<vmem>>, vector<1x286xf32>
    %c0_8 = arith.constant 0 : index
    %c0_9 = arith.constant 0 : index
    %c0_10 = arith.constant 0 : index
    %6 = vector.load %arg1[%c0_8, %c0_9, %c0_10] : memref<2x8x324xbf16, #tpu.memory_space<vmem>>, vector<1x8x324xbf16>
    %7 = vector.shape_cast %6 : vector<1x8x324xbf16> to vector<8x324xbf16>
    %cst_11 = arith.constant 0.000000e+00 : f32
    %8 = vector.broadcast %cst_11 : f32 to vector<4x286xf32>
    %9 = vector.extract_strided_slice %7 {offsets = [0, 0], sizes = [8, 286], strides = [1, 1]} : vector<8x324xbf16> to vector<8x286xbf16>
    %c0_12 = arith.constant 0 : index
    %c0_13 = arith.constant 0 : index
    %c0_14 = arith.constant 0 : index
    %10 = vector.load %arg2[%c0_12, %c0_13, %c0_14] : memref<9x4x8xbf16, #tpu.memory_space<vmem>>, vector<1x4x8xbf16>
    %11 = vector.shape_cast %10 : vector<1x4x8xbf16> to vector<4x8xbf16>
    %cst_15 = arith.constant dense<0.000000e+00> : vector<4x286xf32>
    %12 = tpu.matmul %11, %9, %cst_15 {dimension_numbers = #tpu.dot_dimension_numbers<[1], [0], [0], [1], [0, 0, 1, 1], [], []>} : vector<4x8xbf16>, vector<8x286xbf16>, vector<4x286xf32> -> vector<4x286xf32>
    %13 = arith.addf %8, %12 : vector<4x286xf32>
    %14 = vector.extract_strided_slice %7 {offsets = [0, 1], sizes = [8, 286], strides = [1, 1]} : vector<8x324xbf16> to vector<8x286xbf16>
    %c1_16 = arith.constant 1 : index
    %c0_17 = arith.constant 0 : index
    %c0_18 = arith.constant 0 : index
    %15 = vector.load %arg2[%c1_16, %c0_17, %c0_18] : memref<9x4x8xbf16, #tpu.memory_space<vmem>>, vector<1x4x8xbf16>
    %16 = vector.shape_cast %15 : vector<1x4x8xbf16> to vector<4x8xbf16>
    %cst_19 = arith.constant dense<0.000000e+00> : vector<4x286xf32>
    %17 = tpu.matmul %16, %14, %cst_19 {dimension_numbers = #tpu.dot_dimension_numbers<[1], [0], [0], [1], [0, 0, 1, 1], [], []>} : vector<4x8xbf16>, vector<8x286xbf16>, vector<4x286xf32> -> vector<4x286xf32>
    %18 = arith.addf %13, %17 : vector<4x286xf32>
    %19 = vector.extract_strided_slice %7 {offsets = [0, 2], sizes = [8, 286], strides = [1, 1]} : vector<8x324xbf16> to vector<8x286xbf16>
    %c2_20 = arith.constant 2 : index
    %c0_21 = arith.constant 0 : index
    %c0_22 = arith.constant 0 : index
    %20 = vector.load %arg2[%c2_20, %c0_21, %c0_22] : memref<9x4x8xbf16, #tpu.memory_space<vmem>>, vector<1x4x8xbf16>
    %21 = vector.shape_cast %20 : vector<1x4x8xbf16> to vector<4x8xbf16>
    %cst_23 = arith.constant dense<0.000000e+00> : vector<4x286xf32>
    %22 = tpu.matmul %21, %19, %cst_23 {dimension_numbers = #tpu.dot_dimension_numbers<[1], [0], [0], [1], [0, 0, 1, 1], [], []>} : vector<4x8xbf16>, vector<8x286xbf16>, vector<4x286xf32> -> vector<4x286xf32>
    %23 = arith.addf %18, %22 : vector<4x286xf32>
    %24 = vector.extract_strided_slice %7 {offsets = [0, 18], sizes = [8, 286], strides = [1, 1]} : vector<8x324xbf16> to vector<8x286xbf16>
    %c3 = arith.constant 3 : index
    %c0_24 = arith.constant 0 : index
    %c0_25 = arith.constant 0 : index
    %25 = vector.load %arg2[%c3, %c0_24, %c0_25] : memref<9x4x8xbf16, #tpu.memory_space<vmem>>, vector<1x4x8xbf16>
    %26 = vector.shape_cast %25 : vector<1x4x8xbf16> to vector<4x8xbf16>
    %cst_26 = arith.constant dense<0.000000e+00> : vector<4x286xf32>
    %27 = tpu.matmul %26, %24, %cst_26 {dimension_numbers = #tpu.dot_dimension_numbers<[1], [0], [0], [1], [0, 0, 1, 1], [], []>} : vector<4x8xbf16>, vector<8x286xbf16>, vector<4x286xf32> -> vector<4x286xf32>
    %28 = arith.addf %23, %27 : vector<4x286xf32>
    %29 = vector.extract_strided_slice %7 {offsets = [0, 19], sizes = [8, 286], strides = [1, 1]} : vector<8x324xbf16> to vector<8x286xbf16>
    %c4 = arith.constant 4 : index
    %c0_27 = arith.constant 0 : index
    %c0_28 = arith.constant 0 : index
    %30 = vector.load %arg2[%c4, %c0_27, %c0_28] : memref<9x4x8xbf16, #tpu.memory_space<vmem>>, vector<1x4x8xbf16>
    %31 = vector.shape_cast %30 : vector<1x4x8xbf16> to vector<4x8xbf16>
    %cst_29 = arith.constant dense<0.000000e+00> : vector<4x286xf32>
    %32 = tpu.matmul %31, %29, %cst_29 {dimension_numbers = #tpu.dot_dimension_numbers<[1], [0], [0], [1], [0, 0, 1, 1], [], []>} : vector<4x8xbf16>, vector<8x286xbf16>, vector<4x286xf32> -> vector<4x286xf32>
    %33 = arith.addf %28, %32 : vector<4x286xf32>
    %34 = vector.extract_strided_slice %7 {offsets = [0, 20], sizes = [8, 286], strides = [1, 1]} : vector<8x324xbf16> to vector<8x286xbf16>
    %c5 = arith.constant 5 : index
    %c0_30 = arith.constant 0 : index
    %c0_31 = arith.constant 0 : index
    %35 = vector.load %arg2[%c5, %c0_30, %c0_31] : memref<9x4x8xbf16, #tpu.memory_space<vmem>>, vector<1x4x8xbf16>
    %36 = vector.shape_cast %35 : vector<1x4x8xbf16> to vector<4x8xbf16>
    %cst_32 = arith.constant dense<0.000000e+00> : vector<4x286xf32>
    %37 = tpu.matmul %36, %34, %cst_32 {dimension_numbers = #tpu.dot_dimension_numbers<[1], [0], [0], [1], [0, 0, 1, 1], [], []>} : vector<4x8xbf16>, vector<8x286xbf16>, vector<4x286xf32> -> vector<4x286xf32>
    %38 = arith.addf %33, %37 : vector<4x286xf32>
    %39 = vector.extract_strided_slice %7 {offsets = [0, 36], sizes = [8, 286], strides = [1, 1]} : vector<8x324xbf16> to vector<8x286xbf16>
    %c6 = arith.constant 6 : index
    %c0_33 = arith.constant 0 : index
    %c0_34 = arith.constant 0 : index
    %40 = vector.load %arg2[%c6, %c0_33, %c0_34] : memref<9x4x8xbf16, #tpu.memory_space<vmem>>, vector<1x4x8xbf16>
    %41 = vector.shape_cast %40 : vector<1x4x8xbf16> to vector<4x8xbf16>
    %cst_35 = arith.constant dense<0.000000e+00> : vector<4x286xf32>
    %42 = tpu.matmul %41, %39, %cst_35 {dimension_numbers = #tpu.dot_dimension_numbers<[1], [0], [0], [1], [0, 0, 1, 1], [], []>} : vector<4x8xbf16>, vector<8x286xbf16>, vector<4x286xf32> -> vector<4x286xf32>
    %43 = arith.addf %38, %42 : vector<4x286xf32>
    %44 = vector.extract_strided_slice %7 {offsets = [0, 37], sizes = [8, 286], strides = [1, 1]} : vector<8x324xbf16> to vector<8x286xbf16>
    %c7 = arith.constant 7 : index
    %c0_36 = arith.constant 0 : index
    %c0_37 = arith.constant 0 : index
    %45 = vector.load %arg2[%c7, %c0_36, %c0_37] : memref<9x4x8xbf16, #tpu.memory_space<vmem>>, vector<1x4x8xbf16>
    %46 = vector.shape_cast %45 : vector<1x4x8xbf16> to vector<4x8xbf16>
    %cst_38 = arith.constant dense<0.000000e+00> : vector<4x286xf32>
    %47 = tpu.matmul %46, %44, %cst_38 {dimension_numbers = #tpu.dot_dimension_numbers<[1], [0], [0], [1], [0, 0, 1, 1], [], []>} : vector<4x8xbf16>, vector<8x286xbf16>, vector<4x286xf32> -> vector<4x286xf32>
    %48 = arith.addf %43, %47 : vector<4x286xf32>
    %49 = vector.extract_strided_slice %7 {offsets = [0, 38], sizes = [8, 286], strides = [1, 1]} : vector<8x324xbf16> to vector<8x286xbf16>
    %c8 = arith.constant 8 : index
    %c0_39 = arith.constant 0 : index
    %c0_40 = arith.constant 0 : index
    %50 = vector.load %arg2[%c8, %c0_39, %c0_40] : memref<9x4x8xbf16, #tpu.memory_space<vmem>>, vector<1x4x8xbf16>
    %51 = vector.shape_cast %50 : vector<1x4x8xbf16> to vector<4x8xbf16>
    %cst_41 = arith.constant dense<0.000000e+00> : vector<4x286xf32>
    %52 = tpu.matmul %51, %49, %cst_41 {dimension_numbers = #tpu.dot_dimension_numbers<[1], [0], [0], [1], [0, 0, 1, 1], [], []>} : vector<4x8xbf16>, vector<8x286xbf16>, vector<4x286xf32> -> vector<4x286xf32>
    %53 = arith.addf %48, %52 : vector<4x286xf32>
    %54 = vector.broadcast %2 : vector<4x1xf32> to vector<4x286xf32>
    %55 = arith.addf %53, %54 : vector<4x286xf32>
    %56 = vector.broadcast %5 : vector<1x286xf32> to vector<4x286xf32>
    %57 = arith.mulf %55, %56 : vector<4x286xf32>
    %58 = vector.shape_cast %57 : vector<4x286xf32> to vector<1x4x286xf32>
    %cst_42 = arith.constant dense<0.000000e+00> : vector<1xf32>
    %59 = vector.multi_reduction <add>, %58, %cst_42 [1, 2] : vector<1x4x286xf32> to vector<1xf32>
    %60 = vector.shape_cast %59 : vector<1xf32> to vector<1x1x1xf32>
    %61 = vector.extract %60[0, 0, 0] : f32 from vector<1x1x1xf32>
    %62 = vector.broadcast %61 : f32 to vector<1x1xf32>
    %cst_43 = arith.constant 9.765625E-4 : f32
    %63 = vector.broadcast %cst_43 : f32 to vector<1x1xf32>
    %64 = arith.mulf %62, %63 : vector<1x1xf32>
    %65 = arith.mulf %57, %57 : vector<4x286xf32>
    %66 = vector.shape_cast %65 : vector<4x286xf32> to vector<1x4x286xf32>
    %cst_44 = arith.constant dense<0.000000e+00> : vector<1xf32>
    %67 = vector.multi_reduction <add>, %66, %cst_44 [1, 2] : vector<1x4x286xf32> to vector<1xf32>
    %68 = vector.shape_cast %67 : vector<1xf32> to vector<1x1x1xf32>
    %69 = vector.extract %68[0, 0, 0] : f32 from vector<1x1x1xf32>
    %70 = vector.broadcast %69 : f32 to vector<1x1xf32>
    %cst_45 = arith.constant 9.765625E-4 : f32
    %71 = vector.broadcast %cst_45 : f32 to vector<1x1xf32>
    %72 = arith.mulf %70, %71 : vector<1x1xf32>
    %73 = arith.mulf %64, %64 : vector<1x1xf32>
    %74 = arith.subf %72, %73 : vector<1x1xf32>
    %cst_46 = arith.constant 0.000000e+00 : f32
    %75 = vector.broadcast %cst_46 : f32 to vector<1x1xf32>
    %76 = arith.maximumf %74, %75 : vector<1x1xf32>
    %cst_47 = arith.constant 9.99999974E-6 : f32
    %77 = vector.broadcast %cst_47 : f32 to vector<1x1xf32>
    %78 = arith.addf %76, %77 : vector<1x1xf32>
    %79 = math.rsqrt %78 : vector<1x1xf32>
    %80 = vector.broadcast %79 : vector<1x1xf32> to vector<4x1xf32>
    %81 = arith.mulf %3, %80 : vector<4x1xf32>
    %82 = vector.broadcast %64 : vector<1x1xf32> to vector<4x1xf32>
    %83 = arith.mulf %82, %81 : vector<4x1xf32>
    %84 = arith.subf %4, %83 : vector<4x1xf32>
    %85 = vector.broadcast %81 : vector<4x1xf32> to vector<4x286xf32>
    %86 = arith.mulf %57, %85 : vector<4x286xf32>
    %87 = vector.broadcast %84 : vector<4x1xf32> to vector<4x286xf32>
    %88 = arith.addf %86, %87 : vector<4x286xf32>
    %cst_48 = arith.constant 1.000000e-01 : f32
    %89 = vector.broadcast %cst_48 : f32 to vector<4x286xf32>
    %90 = arith.mulf %89, %88 : vector<4x286xf32>
    %91 = arith.maximumf %88, %90 : vector<4x286xf32>
    %92 = vector.broadcast %5 : vector<1x286xf32> to vector<4x286xf32>
    %93 = arith.mulf %91, %92 : vector<4x286xf32>
    %94 = arith.truncf %93 : vector<4x286xf32> to vector<4x286xbf16>
    %c0_49 = arith.constant 0 : index
    %c0_50 = arith.constant 0 : index
    %c19 = arith.constant 19 : index
    %95 = vector.load %arg5[%c0_49, %c0_50, %c19] : memref<2x4x324xbf16, #tpu.memory_space<vmem>>, vector<1x4x286xbf16>
    %96 = vector.shape_cast %95 : vector<1x4x286xbf16> to vector<4x286xbf16>
    %97 = vector.shape_cast %94 : vector<4x286xbf16> to vector<1x4x286xbf16>
    tpu.vector_store %arg5[%c0_49, %c0_50, %c19], %97 {strides = array<i32>} : memref<2x4x324xbf16, #tpu.memory_space<vmem>>, vector<1x4x286xbf16>,
    %c1_51 = arith.constant 1 : index
    %c0_52 = arith.constant 0 : index
    %c0_53 = arith.constant 0 : index
    %98 = vector.load %arg1[%c1_51, %c0_52, %c0_53] : memref<2x8x324xbf16, #tpu.memory_space<vmem>>, vector<1x8x324xbf16>
    %99 = vector.shape_cast %98 : vector<1x8x324xbf16> to vector<8x324xbf16>
    %cst_54 = arith.constant 0.000000e+00 : f32
    %100 = vector.broadcast %cst_54 : f32 to vector<4x286xf32>
    %101 = vector.extract_strided_slice %99 {offsets = [0, 0], sizes = [8, 286], strides = [1, 1]} : vector<8x324xbf16> to vector<8x286xbf16>
    %c0_55 = arith.constant 0 : index
    %c0_56 = arith.constant 0 : index
    %c0_57 = arith.constant 0 : index
    %102 = vector.load %arg2[%c0_55, %c0_56, %c0_57] : memref<9x4x8xbf16, #tpu.memory_space<vmem>>, vector<1x4x8xbf16>
    %103 = vector.shape_cast %102 : vector<1x4x8xbf16> to vector<4x8xbf16>
    %cst_58 = arith.constant dense<0.000000e+00> : vector<4x286xf32>
    %104 = tpu.matmul %103, %101, %cst_58 {dimension_numbers = #tpu.dot_dimension_numbers<[1], [0], [0], [1], [0, 0, 1, 1], [], []>} : vector<4x8xbf16>, vector<8x286xbf16>, vector<4x286xf32> -> vector<4x286xf32>
    %105 = arith.addf %100, %104 : vector<4x286xf32>
    %106 = vector.extract_strided_slice %99 {offsets = [0, 1], sizes = [8, 286], strides = [1, 1]} : vector<8x324xbf16> to vector<8x286xbf16>
    %c1_59 = arith.constant 1 : index
    %c0_60 = arith.constant 0 : index
    %c0_61 = arith.constant 0 : index
    %107 = vector.load %arg2[%c1_59, %c0_60, %c0_61] : memref<9x4x8xbf16, #tpu.memory_space<vmem>>, vector<1x4x8xbf16>
    %108 = vector.shape_cast %107 : vector<1x4x8xbf16> to vector<4x8xbf16>
    %cst_62 = arith.constant dense<0.000000e+00> : vector<4x286xf32>
    %109 = tpu.matmul %108, %106, %cst_62 {dimension_numbers = #tpu.dot_dimension_numbers<[1], [0], [0], [1], [0, 0, 1, 1], [], []>} : vector<4x8xbf16>, vector<8x286xbf16>, vector<4x286xf32> -> vector<4x286xf32>
    %110 = arith.addf %105, %109 : vector<4x286xf32>
    %111 = vector.extract_strided_slice %99 {offsets = [0, 2], sizes = [8, 286], strides = [1, 1]} : vector<8x324xbf16> to vector<8x286xbf16>
    %c2_63 = arith.constant 2 : index
    %c0_64 = arith.constant 0 : index
    %c0_65 = arith.constant 0 : index
    %112 = vector.load %arg2[%c2_63, %c0_64, %c0_65] : memref<9x4x8xbf16, #tpu.memory_space<vmem>>, vector<1x4x8xbf16>
    %113 = vector.shape_cast %112 : vector<1x4x8xbf16> to vector<4x8xbf16>
    %cst_66 = arith.constant dense<0.000000e+00> : vector<4x286xf32>
    %114 = tpu.matmul %113, %111, %cst_66 {dimension_numbers = #tpu.dot_dimension_numbers<[1], [0], [0], [1], [0, 0, 1, 1], [], []>} : vector<4x8xbf16>, vector<8x286xbf16>, vector<4x286xf32> -> vector<4x286xf32>
    %115 = arith.addf %110, %114 : vector<4x286xf32>
    %116 = vector.extract_strided_slice %99 {offsets = [0, 18], sizes = [8, 286], strides = [1, 1]} : vector<8x324xbf16> to vector<8x286xbf16>
    %c3_67 = arith.constant 3 : index
    %c0_68 = arith.constant 0 : index
    %c0_69 = arith.constant 0 : index
    %117 = vector.load %arg2[%c3_67, %c0_68, %c0_69] : memref<9x4x8xbf16, #tpu.memory_space<vmem>>, vector<1x4x8xbf16>
    %118 = vector.shape_cast %117 : vector<1x4x8xbf16> to vector<4x8xbf16>
    %cst_70 = arith.constant dense<0.000000e+00> : vector<4x286xf32>
    %119 = tpu.matmul %118, %116, %cst_70 {dimension_numbers = #tpu.dot_dimension_numbers<[1], [0], [0], [1], [0, 0, 1, 1], [], []>} : vector<4x8xbf16>, vector<8x286xbf16>, vector<4x286xf32> -> vector<4x286xf32>
    %120 = arith.addf %115, %119 : vector<4x286xf32>
    %121 = vector.extract_strided_slice %99 {offsets = [0, 19], sizes = [8, 286], strides = [1, 1]} : vector<8x324xbf16> to vector<8x286xbf16>
    %c4_71 = arith.constant 4 : index
    %c0_72 = arith.constant 0 : index
    %c0_73 = arith.constant 0 : index
    %122 = vector.load %arg2[%c4_71, %c0_72, %c0_73] : memref<9x4x8xbf16, #tpu.memory_space<vmem>>, vector<1x4x8xbf16>
    %123 = vector.shape_cast %122 : vector<1x4x8xbf16> to vector<4x8xbf16>
    %cst_74 = arith.constant dense<0.000000e+00> : vector<4x286xf32>
    %124 = tpu.matmul %123, %121, %cst_74 {dimension_numbers = #tpu.dot_dimension_numbers<[1], [0], [0], [1], [0, 0, 1, 1], [], []>} : vector<4x8xbf16>, vector<8x286xbf16>, vector<4x286xf32> -> vector<4x286xf32>
    %125 = arith.addf %120, %124 : vector<4x286xf32>
    %126 = vector.extract_strided_slice %99 {offsets = [0, 20], sizes = [8, 286], strides = [1, 1]} : vector<8x324xbf16> to vector<8x286xbf16>
    %c5_75 = arith.constant 5 : index
    %c0_76 = arith.constant 0 : index
    %c0_77 = arith.constant 0 : index
    %127 = vector.load %arg2[%c5_75, %c0_76, %c0_77] : memref<9x4x8xbf16, #tpu.memory_space<vmem>>, vector<1x4x8xbf16>
    %128 = vector.shape_cast %127 : vector<1x4x8xbf16> to vector<4x8xbf16>
    %cst_78 = arith.constant dense<0.000000e+00> : vector<4x286xf32>
    %129 = tpu.matmul %128, %126, %cst_78 {dimension_numbers = #tpu.dot_dimension_numbers<[1], [0], [0], [1], [0, 0, 1, 1], [], []>} : vector<4x8xbf16>, vector<8x286xbf16>, vector<4x286xf32> -> vector<4x286xf32>
    %130 = arith.addf %125, %129 : vector<4x286xf32>
    %131 = vector.extract_strided_slice %99 {offsets = [0, 36], sizes = [8, 286], strides = [1, 1]} : vector<8x324xbf16> to vector<8x286xbf16>
    %c6_79 = arith.constant 6 : index
    %c0_80 = arith.constant 0 : index
    %c0_81 = arith.constant 0 : index
    %132 = vector.load %arg2[%c6_79, %c0_80, %c0_81] : memref<9x4x8xbf16, #tpu.memory_space<vmem>>, vector<1x4x8xbf16>
    %133 = vector.shape_cast %132 : vector<1x4x8xbf16> to vector<4x8xbf16>
    %cst_82 = arith.constant dense<0.000000e+00> : vector<4x286xf32>
    %134 = tpu.matmul %133, %131, %cst_82 {dimension_numbers = #tpu.dot_dimension_numbers<[1], [0], [0], [1], [0, 0, 1, 1], [], []>} : vector<4x8xbf16>, vector<8x286xbf16>, vector<4x286xf32> -> vector<4x286xf32>
    %135 = arith.addf %130, %134 : vector<4x286xf32>
    %136 = vector.extract_strided_slice %99 {offsets = [0, 37], sizes = [8, 286], strides = [1, 1]} : vector<8x324xbf16> to vector<8x286xbf16>
    %c7_83 = arith.constant 7 : index
    %c0_84 = arith.constant 0 : index
    %c0_85 = arith.constant 0 : index
    %137 = vector.load %arg2[%c7_83, %c0_84, %c0_85] : memref<9x4x8xbf16, #tpu.memory_space<vmem>>, vector<1x4x8xbf16>
    %138 = vector.shape_cast %137 : vector<1x4x8xbf16> to vector<4x8xbf16>
    %cst_86 = arith.constant dense<0.000000e+00> : vector<4x286xf32>
    %139 = tpu.matmul %138, %136, %cst_86 {dimension_numbers = #tpu.dot_dimension_numbers<[1], [0], [0], [1], [0, 0, 1, 1], [], []>} : vector<4x8xbf16>, vector<8x286xbf16>, vector<4x286xf32> -> vector<4x286xf32>
    %140 = arith.addf %135, %139 : vector<4x286xf32>
    %141 = vector.extract_strided_slice %99 {offsets = [0, 38], sizes = [8, 286], strides = [1, 1]} : vector<8x324xbf16> to vector<8x286xbf16>
    %c8_87 = arith.constant 8 : index
    %c0_88 = arith.constant 0 : index
    %c0_89 = arith.constant 0 : index
    %142 = vector.load %arg2[%c8_87, %c0_88, %c0_89] : memref<9x4x8xbf16, #tpu.memory_space<vmem>>, vector<1x4x8xbf16>
    %143 = vector.shape_cast %142 : vector<1x4x8xbf16> to vector<4x8xbf16>
    %cst_90 = arith.constant dense<0.000000e+00> : vector<4x286xf32>
    %144 = tpu.matmul %143, %141, %cst_90 {dimension_numbers = #tpu.dot_dimension_numbers<[1], [0], [0], [1], [0, 0, 1, 1], [], []>} : vector<4x8xbf16>, vector<8x286xbf16>, vector<4x286xf32> -> vector<4x286xf32>
    %145 = arith.addf %140, %144 : vector<4x286xf32>
    %146 = vector.broadcast %2 : vector<4x1xf32> to vector<4x286xf32>
    %147 = arith.addf %145, %146 : vector<4x286xf32>
    %148 = vector.broadcast %5 : vector<1x286xf32> to vector<4x286xf32>
    %149 = arith.mulf %147, %148 : vector<4x286xf32>
    %150 = vector.shape_cast %149 : vector<4x286xf32> to vector<1x4x286xf32>
    %cst_91 = arith.constant dense<0.000000e+00> : vector<1xf32>
    %151 = vector.multi_reduction <add>, %150, %cst_91 [1, 2] : vector<1x4x286xf32> to vector<1xf32>
    %152 = vector.shape_cast %151 : vector<1xf32> to vector<1x1x1xf32>
    %153 = vector.extract %152[0, 0, 0] : f32 from vector<1x1x1xf32>
    %154 = vector.broadcast %153 : f32 to vector<1x1xf32>
    %cst_92 = arith.constant 9.765625E-4 : f32
    %155 = vector.broadcast %cst_92 : f32 to vector<1x1xf32>
    %156 = arith.mulf %154, %155 : vector<1x1xf32>
    %157 = arith.mulf %149, %149 : vector<4x286xf32>
    %158 = vector.shape_cast %157 : vector<4x286xf32> to vector<1x4x286xf32>
    %cst_93 = arith.constant dense<0.000000e+00> : vector<1xf32>
    %159 = vector.multi_reduction <add>, %158, %cst_93 [1, 2] : vector<1x4x286xf32> to vector<1xf32>
    %160 = vector.shape_cast %159 : vector<1xf32> to vector<1x1x1xf32>
    %161 = vector.extract %160[0, 0, 0] : f32 from vector<1x1x1xf32>
    %162 = vector.broadcast %161 : f32 to vector<1x1xf32>
    %cst_94 = arith.constant 9.765625E-4 : f32
    %163 = vector.broadcast %cst_94 : f32 to vector<1x1xf32>
    %164 = arith.mulf %162, %163 : vector<1x1xf32>
    %165 = arith.mulf %156, %156 : vector<1x1xf32>
    %166 = arith.subf %164, %165 : vector<1x1xf32>
    %cst_95 = arith.constant 0.000000e+00 : f32
    %167 = vector.broadcast %cst_95 : f32 to vector<1x1xf32>
    %168 = arith.maximumf %166, %167 : vector<1x1xf32>
    %cst_96 = arith.constant 9.99999974E-6 : f32
    %169 = vector.broadcast %cst_96 : f32 to vector<1x1xf32>
    %170 = arith.addf %168, %169 : vector<1x1xf32>
    %171 = math.rsqrt %170 : vector<1x1xf32>
    %172 = vector.broadcast %171 : vector<1x1xf32> to vector<4x1xf32>
    %173 = arith.mulf %3, %172 : vector<4x1xf32>
    %174 = vector.broadcast %156 : vector<1x1xf32> to vector<4x1xf32>
    %175 = arith.mulf %174, %173 : vector<4x1xf32>
    %176 = arith.subf %4, %175 : vector<4x1xf32>
    %177 = vector.broadcast %173 : vector<4x1xf32> to vector<4x286xf32>
    %178 = arith.mulf %149, %177 : vector<4x286xf32>
    %179 = vector.broadcast %176 : vector<4x1xf32> to vector<4x286xf32>
    %180 = arith.addf %178, %179 : vector<4x286xf32>
    %cst_97 = arith.constant 1.000000e-01 : f32
    %181 = vector.broadcast %cst_97 : f32 to vector<4x286xf32>
    %182 = arith.mulf %181, %180 : vector<4x286xf32>
    %183 = arith.maximumf %180, %182 : vector<4x286xf32>
    %184 = vector.broadcast %5 : vector<1x286xf32> to vector<4x286xf32>
    %185 = arith.mulf %183, %184 : vector<4x286xf32>
    %186 = arith.truncf %185 : vector<4x286xf32> to vector<4x286xbf16>
    %c1_98 = arith.constant 1 : index
    %c0_99 = arith.constant 0 : index
    %c19_100 = arith.constant 19 : index
    %187 = vector.load %arg5[%c1_98, %c0_99, %c19_100] : memref<2x4x324xbf16, #tpu.memory_space<vmem>>, vector<1x4x286xbf16>
    %188 = vector.shape_cast %187 : vector<1x4x286xbf16> to vector<4x286xbf16>
    %189 = vector.shape_cast %186 : vector<4x286xbf16> to vector<1x4x286xbf16>
    tpu.vector_store %arg5[%c1_98, %c0_99, %c19_100], %189 {strides = array<i32>} : memref<2x4x324xbf16, #tpu.memory_space<vmem>>, vector<1x4x286xbf16>,
    return
  }
  func.func @transform_0(%arg0: i32) -> (i32, i32, i32) {
    %c0_i32 = arith.constant 0 : i32
    %c0_i32_0 = arith.constant 0 : i32
    %c0_i32_1 = arith.constant 0 : i32
    return %arg0, %c0_i32, %c0_i32_0 : i32, i32, i32
  }
  func.func @transform_1(%arg0: i32) -> (i32, i32, i32) {
    %c0_i32 = arith.constant 0 : i32
    %c0_i32_0 = arith.constant 0 : i32
    %c0_i32_1 = arith.constant 0 : i32
    %c0_i32_2 = arith.constant 0 : i32
    return %c0_i32, %c0_i32_0, %c0_i32_1 : i32, i32, i32
  }
  func.func @transform_2(%arg0: i32) -> (i32, i32) {
    %c0_i32 = arith.constant 0 : i32
    %c0_i32_0 = arith.constant 0 : i32
    %c0_i32_1 = arith.constant 0 : i32
    return %c0_i32, %c0_i32_0 : i32, i32
  }
  func.func @transform_3(%arg0: i32) -> (i32, i32) {
    %c0_i32 = arith.constant 0 : i32
    %c0_i32_0 = arith.constant 0 : i32
    %c0_i32_1 = arith.constant 0 : i32
    return %c0_i32, %c0_i32_0 : i32, i32
  }
  func.func @transform_4(%arg0: i32) -> (i32, i32, i32) {
    %c0_i32 = arith.constant 0 : i32
    %c0_i32_0 = arith.constant 0 : i32
    %c0_i32_1 = arith.constant 0 : i32
    return %arg0, %c0_i32, %c0_i32_0 : i32, i32, i32
  }
}

module attributes {stable_mosaic.version = 11 : i64} {
  func.func @kernel(%arg0: i32, %arg1: memref<2x4x324xbf16, #tpu.memory_space<vmem>>, %arg2: memref<9x4x4xbf16, #tpu.memory_space<vmem>>, %arg3: memref<4x3xf32, #tpu.memory_space<vmem>>, %arg4: memref<1x286xf32, #tpu.memory_space<vmem>>, %arg5: memref<2x4x324xf32, #tpu.memory_space<vmem>>) attributes {dimension_semantics = [#tpu.dimension_semantics<parallel>], iteration_bounds = array<i64: 4>, scalar_prefetch = 0 : i64, scratch_operands = 0 : i64, tpu.core_type = #tpu.core_type<tc>, window_params = [{transform_indices = @transform_0, window_bounds = array<i64: 2, 4, 324>}, {pipeline_mode = #tpu.pipeline_mode<synchronous>, transform_indices = @transform_1, window_bounds = array<i64: 9, 4, 4>}, {pipeline_mode = #tpu.pipeline_mode<synchronous>, transform_indices = @transform_2, window_bounds = array<i64: 4, 3>}, {pipeline_mode = #tpu.pipeline_mode<synchronous>, transform_indices = @transform_3, window_bounds = array<i64: 1, 286>}, {transform_indices = @transform_4, window_bounds = array<i64: 2, 4, 324>}]} {
    %cst = arith.constant 0.000000e+00 : f32
    %0 = vector.broadcast %cst : f32 to vector<2x4x324xf32>
    %c0 = arith.constant 0 : index
    %c0_0 = arith.constant 0 : index
    %c0_1 = arith.constant 0 : index
    %1 = vector.load %arg5[%c0, %c0_0, %c0_1] : memref<2x4x324xf32, #tpu.memory_space<vmem>>, vector<2x4x324xf32>
    tpu.vector_store %arg5[%c0, %c0_0, %c0_1], %0 {strides = array<i32>} : memref<2x4x324xf32, #tpu.memory_space<vmem>>, vector<2x4x324xf32>,
    %c0_2 = arith.constant 0 : index
    %c0_3 = arith.constant 0 : index
    %2 = vector.load %arg3[%c0_2, %c0_3] : memref<4x3xf32, #tpu.memory_space<vmem>>, vector<4x1xf32>
    %c0_4 = arith.constant 0 : index
    %c1 = arith.constant 1 : index
    %3 = vector.load %arg3[%c0_4, %c1] : memref<4x3xf32, #tpu.memory_space<vmem>>, vector<4x1xf32>
    %c0_5 = arith.constant 0 : index
    %c2 = arith.constant 2 : index
    %4 = vector.load %arg3[%c0_5, %c2] : memref<4x3xf32, #tpu.memory_space<vmem>>, vector<4x1xf32>
    %c0_6 = arith.constant 0 : index
    %c0_7 = arith.constant 0 : index
    %5 = vector.load %arg4[%c0_6, %c0_7] : memref<1x286xf32, #tpu.memory_space<vmem>>, vector<1x286xf32>
    %c0_8 = arith.constant 0 : index
    %c0_9 = arith.constant 0 : index
    %c0_10 = arith.constant 0 : index
    %6 = vector.load %arg1[%c0_8, %c0_9, %c0_10] : memref<2x4x324xbf16, #tpu.memory_space<vmem>>, vector<1x4x324xbf16>
    %7 = vector.shape_cast %6 : vector<1x4x324xbf16> to vector<4x324xbf16>
    %cst_11 = arith.constant 0.000000e+00 : f32
    %8 = vector.broadcast %cst_11 : f32 to vector<4x286xf32>
    %9 = vector.extract_strided_slice %7 {offsets = [0, 0], sizes = [4, 286], strides = [1, 1]} : vector<4x324xbf16> to vector<4x286xbf16>
    %c0_12 = arith.constant 0 : index
    %c0_13 = arith.constant 0 : index
    %c0_14 = arith.constant 0 : index
    %10 = vector.load %arg2[%c0_12, %c0_13, %c0_14] : memref<9x4x4xbf16, #tpu.memory_space<vmem>>, vector<1x4x4xbf16>
    %11 = vector.shape_cast %10 : vector<1x4x4xbf16> to vector<4x4xbf16>
    %cst_15 = arith.constant dense<0.000000e+00> : vector<4x286xf32>
    %12 = tpu.matmul %11, %9, %cst_15 {dimension_numbers = #tpu.dot_dimension_numbers<[1], [0], [0], [1], [0, 0, 1, 1], [], []>} : vector<4x4xbf16>, vector<4x286xbf16>, vector<4x286xf32> -> vector<4x286xf32>
    %13 = arith.addf %8, %12 : vector<4x286xf32>
    %14 = vector.extract_strided_slice %7 {offsets = [0, 1], sizes = [4, 286], strides = [1, 1]} : vector<4x324xbf16> to vector<4x286xbf16>
    %c1_16 = arith.constant 1 : index
    %c0_17 = arith.constant 0 : index
    %c0_18 = arith.constant 0 : index
    %15 = vector.load %arg2[%c1_16, %c0_17, %c0_18] : memref<9x4x4xbf16, #tpu.memory_space<vmem>>, vector<1x4x4xbf16>
    %16 = vector.shape_cast %15 : vector<1x4x4xbf16> to vector<4x4xbf16>
    %cst_19 = arith.constant dense<0.000000e+00> : vector<4x286xf32>
    %17 = tpu.matmul %16, %14, %cst_19 {dimension_numbers = #tpu.dot_dimension_numbers<[1], [0], [0], [1], [0, 0, 1, 1], [], []>} : vector<4x4xbf16>, vector<4x286xbf16>, vector<4x286xf32> -> vector<4x286xf32>
    %18 = arith.addf %13, %17 : vector<4x286xf32>
    %19 = vector.extract_strided_slice %7 {offsets = [0, 2], sizes = [4, 286], strides = [1, 1]} : vector<4x324xbf16> to vector<4x286xbf16>
    %c2_20 = arith.constant 2 : index
    %c0_21 = arith.constant 0 : index
    %c0_22 = arith.constant 0 : index
    %20 = vector.load %arg2[%c2_20, %c0_21, %c0_22] : memref<9x4x4xbf16, #tpu.memory_space<vmem>>, vector<1x4x4xbf16>
    %21 = vector.shape_cast %20 : vector<1x4x4xbf16> to vector<4x4xbf16>
    %cst_23 = arith.constant dense<0.000000e+00> : vector<4x286xf32>
    %22 = tpu.matmul %21, %19, %cst_23 {dimension_numbers = #tpu.dot_dimension_numbers<[1], [0], [0], [1], [0, 0, 1, 1], [], []>} : vector<4x4xbf16>, vector<4x286xbf16>, vector<4x286xf32> -> vector<4x286xf32>
    %23 = arith.addf %18, %22 : vector<4x286xf32>
    %24 = vector.extract_strided_slice %7 {offsets = [0, 18], sizes = [4, 286], strides = [1, 1]} : vector<4x324xbf16> to vector<4x286xbf16>
    %c3 = arith.constant 3 : index
    %c0_24 = arith.constant 0 : index
    %c0_25 = arith.constant 0 : index
    %25 = vector.load %arg2[%c3, %c0_24, %c0_25] : memref<9x4x4xbf16, #tpu.memory_space<vmem>>, vector<1x4x4xbf16>
    %26 = vector.shape_cast %25 : vector<1x4x4xbf16> to vector<4x4xbf16>
    %cst_26 = arith.constant dense<0.000000e+00> : vector<4x286xf32>
    %27 = tpu.matmul %26, %24, %cst_26 {dimension_numbers = #tpu.dot_dimension_numbers<[1], [0], [0], [1], [0, 0, 1, 1], [], []>} : vector<4x4xbf16>, vector<4x286xbf16>, vector<4x286xf32> -> vector<4x286xf32>
    %28 = arith.addf %23, %27 : vector<4x286xf32>
    %29 = vector.extract_strided_slice %7 {offsets = [0, 19], sizes = [4, 286], strides = [1, 1]} : vector<4x324xbf16> to vector<4x286xbf16>
    %c4 = arith.constant 4 : index
    %c0_27 = arith.constant 0 : index
    %c0_28 = arith.constant 0 : index
    %30 = vector.load %arg2[%c4, %c0_27, %c0_28] : memref<9x4x4xbf16, #tpu.memory_space<vmem>>, vector<1x4x4xbf16>
    %31 = vector.shape_cast %30 : vector<1x4x4xbf16> to vector<4x4xbf16>
    %cst_29 = arith.constant dense<0.000000e+00> : vector<4x286xf32>
    %32 = tpu.matmul %31, %29, %cst_29 {dimension_numbers = #tpu.dot_dimension_numbers<[1], [0], [0], [1], [0, 0, 1, 1], [], []>} : vector<4x4xbf16>, vector<4x286xbf16>, vector<4x286xf32> -> vector<4x286xf32>
    %33 = arith.addf %28, %32 : vector<4x286xf32>
    %34 = vector.extract_strided_slice %7 {offsets = [0, 20], sizes = [4, 286], strides = [1, 1]} : vector<4x324xbf16> to vector<4x286xbf16>
    %c5 = arith.constant 5 : index
    %c0_30 = arith.constant 0 : index
    %c0_31 = arith.constant 0 : index
    %35 = vector.load %arg2[%c5, %c0_30, %c0_31] : memref<9x4x4xbf16, #tpu.memory_space<vmem>>, vector<1x4x4xbf16>
    %36 = vector.shape_cast %35 : vector<1x4x4xbf16> to vector<4x4xbf16>
    %cst_32 = arith.constant dense<0.000000e+00> : vector<4x286xf32>
    %37 = tpu.matmul %36, %34, %cst_32 {dimension_numbers = #tpu.dot_dimension_numbers<[1], [0], [0], [1], [0, 0, 1, 1], [], []>} : vector<4x4xbf16>, vector<4x286xbf16>, vector<4x286xf32> -> vector<4x286xf32>
    %38 = arith.addf %33, %37 : vector<4x286xf32>
    %39 = vector.extract_strided_slice %7 {offsets = [0, 36], sizes = [4, 286], strides = [1, 1]} : vector<4x324xbf16> to vector<4x286xbf16>
    %c6 = arith.constant 6 : index
    %c0_33 = arith.constant 0 : index
    %c0_34 = arith.constant 0 : index
    %40 = vector.load %arg2[%c6, %c0_33, %c0_34] : memref<9x4x4xbf16, #tpu.memory_space<vmem>>, vector<1x4x4xbf16>
    %41 = vector.shape_cast %40 : vector<1x4x4xbf16> to vector<4x4xbf16>
    %cst_35 = arith.constant dense<0.000000e+00> : vector<4x286xf32>
    %42 = tpu.matmul %41, %39, %cst_35 {dimension_numbers = #tpu.dot_dimension_numbers<[1], [0], [0], [1], [0, 0, 1, 1], [], []>} : vector<4x4xbf16>, vector<4x286xbf16>, vector<4x286xf32> -> vector<4x286xf32>
    %43 = arith.addf %38, %42 : vector<4x286xf32>
    %44 = vector.extract_strided_slice %7 {offsets = [0, 37], sizes = [4, 286], strides = [1, 1]} : vector<4x324xbf16> to vector<4x286xbf16>
    %c7 = arith.constant 7 : index
    %c0_36 = arith.constant 0 : index
    %c0_37 = arith.constant 0 : index
    %45 = vector.load %arg2[%c7, %c0_36, %c0_37] : memref<9x4x4xbf16, #tpu.memory_space<vmem>>, vector<1x4x4xbf16>
    %46 = vector.shape_cast %45 : vector<1x4x4xbf16> to vector<4x4xbf16>
    %cst_38 = arith.constant dense<0.000000e+00> : vector<4x286xf32>
    %47 = tpu.matmul %46, %44, %cst_38 {dimension_numbers = #tpu.dot_dimension_numbers<[1], [0], [0], [1], [0, 0, 1, 1], [], []>} : vector<4x4xbf16>, vector<4x286xbf16>, vector<4x286xf32> -> vector<4x286xf32>
    %48 = arith.addf %43, %47 : vector<4x286xf32>
    %49 = vector.extract_strided_slice %7 {offsets = [0, 38], sizes = [4, 286], strides = [1, 1]} : vector<4x324xbf16> to vector<4x286xbf16>
    %c8 = arith.constant 8 : index
    %c0_39 = arith.constant 0 : index
    %c0_40 = arith.constant 0 : index
    %50 = vector.load %arg2[%c8, %c0_39, %c0_40] : memref<9x4x4xbf16, #tpu.memory_space<vmem>>, vector<1x4x4xbf16>
    %51 = vector.shape_cast %50 : vector<1x4x4xbf16> to vector<4x4xbf16>
    %cst_41 = arith.constant dense<0.000000e+00> : vector<4x286xf32>
    %52 = tpu.matmul %51, %49, %cst_41 {dimension_numbers = #tpu.dot_dimension_numbers<[1], [0], [0], [1], [0, 0, 1, 1], [], []>} : vector<4x4xbf16>, vector<4x286xbf16>, vector<4x286xf32> -> vector<4x286xf32>
    %53 = arith.addf %48, %52 : vector<4x286xf32>
    %54 = vector.broadcast %2 : vector<4x1xf32> to vector<4x286xf32>
    %55 = arith.addf %53, %54 : vector<4x286xf32>
    %56 = vector.broadcast %5 : vector<1x286xf32> to vector<4x286xf32>
    %57 = arith.mulf %55, %56 : vector<4x286xf32>
    %58 = vector.shape_cast %57 : vector<4x286xf32> to vector<1x4x286xf32>
    %cst_42 = arith.constant dense<0.000000e+00> : vector<1xf32>
    %59 = vector.multi_reduction <add>, %58, %cst_42 [1, 2] : vector<1x4x286xf32> to vector<1xf32>
    %60 = vector.shape_cast %59 : vector<1xf32> to vector<1x1x1xf32>
    %61 = vector.extract %60[0, 0, 0] : f32 from vector<1x1x1xf32>
    %62 = vector.broadcast %61 : f32 to vector<1x1xf32>
    %cst_43 = arith.constant 9.765625E-4 : f32
    %63 = vector.broadcast %cst_43 : f32 to vector<1x1xf32>
    %64 = arith.mulf %62, %63 : vector<1x1xf32>
    %65 = arith.mulf %57, %57 : vector<4x286xf32>
    %66 = vector.shape_cast %65 : vector<4x286xf32> to vector<1x4x286xf32>
    %cst_44 = arith.constant dense<0.000000e+00> : vector<1xf32>
    %67 = vector.multi_reduction <add>, %66, %cst_44 [1, 2] : vector<1x4x286xf32> to vector<1xf32>
    %68 = vector.shape_cast %67 : vector<1xf32> to vector<1x1x1xf32>
    %69 = vector.extract %68[0, 0, 0] : f32 from vector<1x1x1xf32>
    %70 = vector.broadcast %69 : f32 to vector<1x1xf32>
    %cst_45 = arith.constant 9.765625E-4 : f32
    %71 = vector.broadcast %cst_45 : f32 to vector<1x1xf32>
    %72 = arith.mulf %70, %71 : vector<1x1xf32>
    %73 = arith.mulf %64, %64 : vector<1x1xf32>
    %74 = arith.subf %72, %73 : vector<1x1xf32>
    %cst_46 = arith.constant 0.000000e+00 : f32
    %75 = vector.broadcast %cst_46 : f32 to vector<1x1xf32>
    %76 = arith.maximumf %74, %75 : vector<1x1xf32>
    %cst_47 = arith.constant 9.99999974E-6 : f32
    %77 = vector.broadcast %cst_47 : f32 to vector<1x1xf32>
    %78 = arith.addf %76, %77 : vector<1x1xf32>
    %79 = math.rsqrt %78 : vector<1x1xf32>
    %80 = vector.broadcast %79 : vector<1x1xf32> to vector<4x1xf32>
    %81 = arith.mulf %3, %80 : vector<4x1xf32>
    %82 = vector.broadcast %64 : vector<1x1xf32> to vector<4x1xf32>
    %83 = arith.mulf %82, %81 : vector<4x1xf32>
    %84 = arith.subf %4, %83 : vector<4x1xf32>
    %85 = vector.broadcast %81 : vector<4x1xf32> to vector<4x286xf32>
    %86 = arith.mulf %57, %85 : vector<4x286xf32>
    %87 = vector.broadcast %84 : vector<4x1xf32> to vector<4x286xf32>
    %88 = arith.addf %86, %87 : vector<4x286xf32>
    %cst_48 = arith.constant 1.000000e-01 : f32
    %89 = vector.broadcast %cst_48 : f32 to vector<4x286xf32>
    %90 = arith.mulf %89, %88 : vector<4x286xf32>
    %91 = arith.maximumf %88, %90 : vector<4x286xf32>
    %92 = vector.broadcast %5 : vector<1x286xf32> to vector<4x286xf32>
    %93 = arith.mulf %91, %92 : vector<4x286xf32>
    %c0_49 = arith.constant 0 : index
    %c0_50 = arith.constant 0 : index
    %c19 = arith.constant 19 : index
    %94 = vector.load %arg5[%c0_49, %c0_50, %c19] : memref<2x4x324xf32, #tpu.memory_space<vmem>>, vector<1x4x286xf32>
    %95 = vector.shape_cast %94 : vector<1x4x286xf32> to vector<4x286xf32>
    %96 = vector.shape_cast %93 : vector<4x286xf32> to vector<1x4x286xf32>
    tpu.vector_store %arg5[%c0_49, %c0_50, %c19], %96 {strides = array<i32>} : memref<2x4x324xf32, #tpu.memory_space<vmem>>, vector<1x4x286xf32>,
    %c1_51 = arith.constant 1 : index
    %c0_52 = arith.constant 0 : index
    %c0_53 = arith.constant 0 : index
    %97 = vector.load %arg1[%c1_51, %c0_52, %c0_53] : memref<2x4x324xbf16, #tpu.memory_space<vmem>>, vector<1x4x324xbf16>
    %98 = vector.shape_cast %97 : vector<1x4x324xbf16> to vector<4x324xbf16>
    %cst_54 = arith.constant 0.000000e+00 : f32
    %99 = vector.broadcast %cst_54 : f32 to vector<4x286xf32>
    %100 = vector.extract_strided_slice %98 {offsets = [0, 0], sizes = [4, 286], strides = [1, 1]} : vector<4x324xbf16> to vector<4x286xbf16>
    %c0_55 = arith.constant 0 : index
    %c0_56 = arith.constant 0 : index
    %c0_57 = arith.constant 0 : index
    %101 = vector.load %arg2[%c0_55, %c0_56, %c0_57] : memref<9x4x4xbf16, #tpu.memory_space<vmem>>, vector<1x4x4xbf16>
    %102 = vector.shape_cast %101 : vector<1x4x4xbf16> to vector<4x4xbf16>
    %cst_58 = arith.constant dense<0.000000e+00> : vector<4x286xf32>
    %103 = tpu.matmul %102, %100, %cst_58 {dimension_numbers = #tpu.dot_dimension_numbers<[1], [0], [0], [1], [0, 0, 1, 1], [], []>} : vector<4x4xbf16>, vector<4x286xbf16>, vector<4x286xf32> -> vector<4x286xf32>
    %104 = arith.addf %99, %103 : vector<4x286xf32>
    %105 = vector.extract_strided_slice %98 {offsets = [0, 1], sizes = [4, 286], strides = [1, 1]} : vector<4x324xbf16> to vector<4x286xbf16>
    %c1_59 = arith.constant 1 : index
    %c0_60 = arith.constant 0 : index
    %c0_61 = arith.constant 0 : index
    %106 = vector.load %arg2[%c1_59, %c0_60, %c0_61] : memref<9x4x4xbf16, #tpu.memory_space<vmem>>, vector<1x4x4xbf16>
    %107 = vector.shape_cast %106 : vector<1x4x4xbf16> to vector<4x4xbf16>
    %cst_62 = arith.constant dense<0.000000e+00> : vector<4x286xf32>
    %108 = tpu.matmul %107, %105, %cst_62 {dimension_numbers = #tpu.dot_dimension_numbers<[1], [0], [0], [1], [0, 0, 1, 1], [], []>} : vector<4x4xbf16>, vector<4x286xbf16>, vector<4x286xf32> -> vector<4x286xf32>
    %109 = arith.addf %104, %108 : vector<4x286xf32>
    %110 = vector.extract_strided_slice %98 {offsets = [0, 2], sizes = [4, 286], strides = [1, 1]} : vector<4x324xbf16> to vector<4x286xbf16>
    %c2_63 = arith.constant 2 : index
    %c0_64 = arith.constant 0 : index
    %c0_65 = arith.constant 0 : index
    %111 = vector.load %arg2[%c2_63, %c0_64, %c0_65] : memref<9x4x4xbf16, #tpu.memory_space<vmem>>, vector<1x4x4xbf16>
    %112 = vector.shape_cast %111 : vector<1x4x4xbf16> to vector<4x4xbf16>
    %cst_66 = arith.constant dense<0.000000e+00> : vector<4x286xf32>
    %113 = tpu.matmul %112, %110, %cst_66 {dimension_numbers = #tpu.dot_dimension_numbers<[1], [0], [0], [1], [0, 0, 1, 1], [], []>} : vector<4x4xbf16>, vector<4x286xbf16>, vector<4x286xf32> -> vector<4x286xf32>
    %114 = arith.addf %109, %113 : vector<4x286xf32>
    %115 = vector.extract_strided_slice %98 {offsets = [0, 18], sizes = [4, 286], strides = [1, 1]} : vector<4x324xbf16> to vector<4x286xbf16>
    %c3_67 = arith.constant 3 : index
    %c0_68 = arith.constant 0 : index
    %c0_69 = arith.constant 0 : index
    %116 = vector.load %arg2[%c3_67, %c0_68, %c0_69] : memref<9x4x4xbf16, #tpu.memory_space<vmem>>, vector<1x4x4xbf16>
    %117 = vector.shape_cast %116 : vector<1x4x4xbf16> to vector<4x4xbf16>
    %cst_70 = arith.constant dense<0.000000e+00> : vector<4x286xf32>
    %118 = tpu.matmul %117, %115, %cst_70 {dimension_numbers = #tpu.dot_dimension_numbers<[1], [0], [0], [1], [0, 0, 1, 1], [], []>} : vector<4x4xbf16>, vector<4x286xbf16>, vector<4x286xf32> -> vector<4x286xf32>
    %119 = arith.addf %114, %118 : vector<4x286xf32>
    %120 = vector.extract_strided_slice %98 {offsets = [0, 19], sizes = [4, 286], strides = [1, 1]} : vector<4x324xbf16> to vector<4x286xbf16>
    %c4_71 = arith.constant 4 : index
    %c0_72 = arith.constant 0 : index
    %c0_73 = arith.constant 0 : index
    %121 = vector.load %arg2[%c4_71, %c0_72, %c0_73] : memref<9x4x4xbf16, #tpu.memory_space<vmem>>, vector<1x4x4xbf16>
    %122 = vector.shape_cast %121 : vector<1x4x4xbf16> to vector<4x4xbf16>
    %cst_74 = arith.constant dense<0.000000e+00> : vector<4x286xf32>
    %123 = tpu.matmul %122, %120, %cst_74 {dimension_numbers = #tpu.dot_dimension_numbers<[1], [0], [0], [1], [0, 0, 1, 1], [], []>} : vector<4x4xbf16>, vector<4x286xbf16>, vector<4x286xf32> -> vector<4x286xf32>
    %124 = arith.addf %119, %123 : vector<4x286xf32>
    %125 = vector.extract_strided_slice %98 {offsets = [0, 20], sizes = [4, 286], strides = [1, 1]} : vector<4x324xbf16> to vector<4x286xbf16>
    %c5_75 = arith.constant 5 : index
    %c0_76 = arith.constant 0 : index
    %c0_77 = arith.constant 0 : index
    %126 = vector.load %arg2[%c5_75, %c0_76, %c0_77] : memref<9x4x4xbf16, #tpu.memory_space<vmem>>, vector<1x4x4xbf16>
    %127 = vector.shape_cast %126 : vector<1x4x4xbf16> to vector<4x4xbf16>
    %cst_78 = arith.constant dense<0.000000e+00> : vector<4x286xf32>
    %128 = tpu.matmul %127, %125, %cst_78 {dimension_numbers = #tpu.dot_dimension_numbers<[1], [0], [0], [1], [0, 0, 1, 1], [], []>} : vector<4x4xbf16>, vector<4x286xbf16>, vector<4x286xf32> -> vector<4x286xf32>
    %129 = arith.addf %124, %128 : vector<4x286xf32>
    %130 = vector.extract_strided_slice %98 {offsets = [0, 36], sizes = [4, 286], strides = [1, 1]} : vector<4x324xbf16> to vector<4x286xbf16>
    %c6_79 = arith.constant 6 : index
    %c0_80 = arith.constant 0 : index
    %c0_81 = arith.constant 0 : index
    %131 = vector.load %arg2[%c6_79, %c0_80, %c0_81] : memref<9x4x4xbf16, #tpu.memory_space<vmem>>, vector<1x4x4xbf16>
    %132 = vector.shape_cast %131 : vector<1x4x4xbf16> to vector<4x4xbf16>
    %cst_82 = arith.constant dense<0.000000e+00> : vector<4x286xf32>
    %133 = tpu.matmul %132, %130, %cst_82 {dimension_numbers = #tpu.dot_dimension_numbers<[1], [0], [0], [1], [0, 0, 1, 1], [], []>} : vector<4x4xbf16>, vector<4x286xbf16>, vector<4x286xf32> -> vector<4x286xf32>
    %134 = arith.addf %129, %133 : vector<4x286xf32>
    %135 = vector.extract_strided_slice %98 {offsets = [0, 37], sizes = [4, 286], strides = [1, 1]} : vector<4x324xbf16> to vector<4x286xbf16>
    %c7_83 = arith.constant 7 : index
    %c0_84 = arith.constant 0 : index
    %c0_85 = arith.constant 0 : index
    %136 = vector.load %arg2[%c7_83, %c0_84, %c0_85] : memref<9x4x4xbf16, #tpu.memory_space<vmem>>, vector<1x4x4xbf16>
    %137 = vector.shape_cast %136 : vector<1x4x4xbf16> to vector<4x4xbf16>
    %cst_86 = arith.constant dense<0.000000e+00> : vector<4x286xf32>
    %138 = tpu.matmul %137, %135, %cst_86 {dimension_numbers = #tpu.dot_dimension_numbers<[1], [0], [0], [1], [0, 0, 1, 1], [], []>} : vector<4x4xbf16>, vector<4x286xbf16>, vector<4x286xf32> -> vector<4x286xf32>
    %139 = arith.addf %134, %138 : vector<4x286xf32>
    %140 = vector.extract_strided_slice %98 {offsets = [0, 38], sizes = [4, 286], strides = [1, 1]} : vector<4x324xbf16> to vector<4x286xbf16>
    %c8_87 = arith.constant 8 : index
    %c0_88 = arith.constant 0 : index
    %c0_89 = arith.constant 0 : index
    %141 = vector.load %arg2[%c8_87, %c0_88, %c0_89] : memref<9x4x4xbf16, #tpu.memory_space<vmem>>, vector<1x4x4xbf16>
    %142 = vector.shape_cast %141 : vector<1x4x4xbf16> to vector<4x4xbf16>
    %cst_90 = arith.constant dense<0.000000e+00> : vector<4x286xf32>
    %143 = tpu.matmul %142, %140, %cst_90 {dimension_numbers = #tpu.dot_dimension_numbers<[1], [0], [0], [1], [0, 0, 1, 1], [], []>} : vector<4x4xbf16>, vector<4x286xbf16>, vector<4x286xf32> -> vector<4x286xf32>
    %144 = arith.addf %139, %143 : vector<4x286xf32>
    %145 = vector.broadcast %2 : vector<4x1xf32> to vector<4x286xf32>
    %146 = arith.addf %144, %145 : vector<4x286xf32>
    %147 = vector.broadcast %5 : vector<1x286xf32> to vector<4x286xf32>
    %148 = arith.mulf %146, %147 : vector<4x286xf32>
    %149 = vector.shape_cast %148 : vector<4x286xf32> to vector<1x4x286xf32>
    %cst_91 = arith.constant dense<0.000000e+00> : vector<1xf32>
    %150 = vector.multi_reduction <add>, %149, %cst_91 [1, 2] : vector<1x4x286xf32> to vector<1xf32>
    %151 = vector.shape_cast %150 : vector<1xf32> to vector<1x1x1xf32>
    %152 = vector.extract %151[0, 0, 0] : f32 from vector<1x1x1xf32>
    %153 = vector.broadcast %152 : f32 to vector<1x1xf32>
    %cst_92 = arith.constant 9.765625E-4 : f32
    %154 = vector.broadcast %cst_92 : f32 to vector<1x1xf32>
    %155 = arith.mulf %153, %154 : vector<1x1xf32>
    %156 = arith.mulf %148, %148 : vector<4x286xf32>
    %157 = vector.shape_cast %156 : vector<4x286xf32> to vector<1x4x286xf32>
    %cst_93 = arith.constant dense<0.000000e+00> : vector<1xf32>
    %158 = vector.multi_reduction <add>, %157, %cst_93 [1, 2] : vector<1x4x286xf32> to vector<1xf32>
    %159 = vector.shape_cast %158 : vector<1xf32> to vector<1x1x1xf32>
    %160 = vector.extract %159[0, 0, 0] : f32 from vector<1x1x1xf32>
    %161 = vector.broadcast %160 : f32 to vector<1x1xf32>
    %cst_94 = arith.constant 9.765625E-4 : f32
    %162 = vector.broadcast %cst_94 : f32 to vector<1x1xf32>
    %163 = arith.mulf %161, %162 : vector<1x1xf32>
    %164 = arith.mulf %155, %155 : vector<1x1xf32>
    %165 = arith.subf %163, %164 : vector<1x1xf32>
    %cst_95 = arith.constant 0.000000e+00 : f32
    %166 = vector.broadcast %cst_95 : f32 to vector<1x1xf32>
    %167 = arith.maximumf %165, %166 : vector<1x1xf32>
    %cst_96 = arith.constant 9.99999974E-6 : f32
    %168 = vector.broadcast %cst_96 : f32 to vector<1x1xf32>
    %169 = arith.addf %167, %168 : vector<1x1xf32>
    %170 = math.rsqrt %169 : vector<1x1xf32>
    %171 = vector.broadcast %170 : vector<1x1xf32> to vector<4x1xf32>
    %172 = arith.mulf %3, %171 : vector<4x1xf32>
    %173 = vector.broadcast %155 : vector<1x1xf32> to vector<4x1xf32>
    %174 = arith.mulf %173, %172 : vector<4x1xf32>
    %175 = arith.subf %4, %174 : vector<4x1xf32>
    %176 = vector.broadcast %172 : vector<4x1xf32> to vector<4x286xf32>
    %177 = arith.mulf %148, %176 : vector<4x286xf32>
    %178 = vector.broadcast %175 : vector<4x1xf32> to vector<4x286xf32>
    %179 = arith.addf %177, %178 : vector<4x286xf32>
    %cst_97 = arith.constant 1.000000e-01 : f32
    %180 = vector.broadcast %cst_97 : f32 to vector<4x286xf32>
    %181 = arith.mulf %180, %179 : vector<4x286xf32>
    %182 = arith.maximumf %179, %181 : vector<4x286xf32>
    %183 = vector.broadcast %5 : vector<1x286xf32> to vector<4x286xf32>
    %184 = arith.mulf %182, %183 : vector<4x286xf32>
    %c1_98 = arith.constant 1 : index
    %c0_99 = arith.constant 0 : index
    %c19_100 = arith.constant 19 : index
    %185 = vector.load %arg5[%c1_98, %c0_99, %c19_100] : memref<2x4x324xf32, #tpu.memory_space<vmem>>, vector<1x4x286xf32>
    %186 = vector.shape_cast %185 : vector<1x4x286xf32> to vector<4x286xf32>
    %187 = vector.shape_cast %184 : vector<4x286xf32> to vector<1x4x286xf32>
    tpu.vector_store %arg5[%c1_98, %c0_99, %c19_100], %187 {strides = array<i32>} : memref<2x4x324xf32, #tpu.memory_space<vmem>>, vector<1x4x286xf32>,
    return
  }
  func.func @transform_0(%arg0: i32) -> (i32, i32, i32) {
    %c0_i32 = arith.constant 0 : i32
    %c0_i32_0 = arith.constant 0 : i32
    %c0_i32_1 = arith.constant 0 : i32
    return %arg0, %c0_i32, %c0_i32_0 : i32, i32, i32
  }
  func.func @transform_1(%arg0: i32) -> (i32, i32, i32) {
    %c0_i32 = arith.constant 0 : i32
    %c0_i32_0 = arith.constant 0 : i32
    %c0_i32_1 = arith.constant 0 : i32
    %c0_i32_2 = arith.constant 0 : i32
    return %c0_i32, %c0_i32_0, %c0_i32_1 : i32, i32, i32
  }
  func.func @transform_2(%arg0: i32) -> (i32, i32) {
    %c0_i32 = arith.constant 0 : i32
    %c0_i32_0 = arith.constant 0 : i32
    %c0_i32_1 = arith.constant 0 : i32
    return %c0_i32, %c0_i32_0 : i32, i32
  }
  func.func @transform_3(%arg0: i32) -> (i32, i32) {
    %c0_i32 = arith.constant 0 : i32
    %c0_i32_0 = arith.constant 0 : i32
    %c0_i32_1 = arith.constant 0 : i32
    return %c0_i32, %c0_i32_0 : i32, i32
  }
  func.func @transform_4(%arg0: i32) -> (i32, i32, i32) {
    %c0_i32 = arith.constant 0 : i32
    %c0_i32_0 = arith.constant 0 : i32
    %c0_i32_1 = arith.constant 0 : i32
    return %arg0, %c0_i32, %c0_i32_0 : i32, i32, i32
  }
}

</mosaic_0001>

<bundles_post_ra>
// kernel: cmp_forward.4
= control target key start
LH: loop header
LB: loop body
LE: loop exit
PB: predicated region body
PF: predicated region fallthrough
CT: control target
= control target key end

     0   :  { %vm41_vm0 = vcmask 1043456   ;;  %v267_v2 = vmov 0   ;;  %vm37_vm1 = vcmask 64512   ;;  %s330_s1 = inlined_call_operand.vmem [shape: bf16[8,1024], index: 1, kind: input, shape index: {}]   ;;  %s331_s0 = inlined_call_operand.vmem [shape: bf16[8,8], index: 0, kind: input, shape index: {}]   ;;  %s332_s2 = inlined_call_operand.vmem [shape: f32[8,1024], index: 2, kind: output, shape index: {}]  }
   0x1   :  { %v13_v0 = vld [vmem:[%s330_s1] sm:$0xff]  ;;  %v14_v1 = vld [vmem:[%s330_s1 + $0x8] sm:$0xff]  ;;  %98 = vmatprep.mubr.bf16.mxu0 %v267_v2  ;;  %139 = vmatprep.mubr.bf16.mxu1 %v267_v2  ;;  %v15_v7 = vld [vmem:[%s330_s1 + $0x10] sm:$0xff] }
   0x2   :  { %v243_v3 = vcombine.high %v13_v0, %v13_v0  ;;  %v245_v4 = vcombine.high %v14_v1, %v14_v1  ;;  %v242_v5 = vcombine.low %v13_v0, %v13_v0  ;;  %v244_v6 = vcombine.low %v14_v1, %v14_v1  ;;  %v16_v8 = vld [vmem:[%s330_s1 + $0x18] sm:$0xff]  ;;  %v12_v15 = vld [vmem:[%s331_s0] sm:$0xf] }
   0x3   :  { %v247_v9 = vcombine.high %v15_v7, %v15_v7  ;;  %v249_v10 = vcombine.high %v16_v8, %v16_v8  ;;  %v246_v11 = vcombine.low %v15_v7, %v15_v7  ;;  %v248_v12 = vcombine.low %v16_v8, %v16_v8 }
   0x4   :  { %250 = vmatprep.subr.msk.bf16.mxu0 %vm41_vm0, %v243_v3  ;;  %252 = vmatprep.subr.msk.bf16.mxu1 %vm41_vm0, %v245_v4  ;;  %v43_v13 = vsel %vm41_vm0, %v242_v5, 0  ;;  %v49_v14 = vsel %vm41_vm0, %v244_v6, 0 }
   0x5   :  { %81 = vmatpush1.bf16.msra.mxu0 %v43_v13  ;;  %122 = vmatpush1.bf16.msra.mxu1 %v49_v14  ;;  %v55_v16 = vsel %vm41_vm0, %v246_v11, 0  ;;  %v61_v17 = vsel %vm41_vm0, %v248_v12, 0 }
   0x6   :  { %254 = vmatprep.subr.msk.bf16.mxu0 %vm41_vm0, %v247_v9  ;;  %256 = vmatprep.subr.msk.bf16.mxu1 %vm41_vm0, %v249_v10 }
   0x8   :  { %251 = vmatmul.mubr.msk.bf16.vlgmr.msra.gmra.mxu0 %vm37_vm1, %v12_v15  ;;  %253 = vmatmul.mubr.msk.bf16.vlgmr.msra.gmra.mxu1 %vm37_vm1, %v12_v15 }
   0x9   :  { %163 = vmatpush1.bf16.msra.mxu0 %v55_v16  ;;  %204 = vmatpush1.bf16.msra.mxu1 %v61_v17 }
   0xa   :  { %180 = vmatprep.mubr.bf16.mxu0 %v267_v2  ;;  %221 = vmatprep.mubr.bf16.mxu1 %v267_v2 }
  0x10   :  { %255 = vmatmul.mubr.msk.bf16.vlgmr.msra.gmra.mxu0 %vm37_vm1, %v12_v15  ;;  %257 = vmatmul.mubr.msk.bf16.vlgmr.msra.gmra.mxu1 %vm37_vm1, %v12_v15 }
  0xc8   :  { %v100_v18 = vpop.f32.mrf.mxu0  ;;  %v141_v19 = vpop.f32.mrf.mxu1 }
  0xc9   :  { %230 = vst [vmem:[%s332_s2] sm:$0xff] %v100_v18  ;;  %232 = vst [vmem:[%s332_s2 + $0x10] sm:$0xff] %v141_v19 }
  0xca   :  { %v102_v20 = vpop.f32.mrf.mxu0  ;;  %v143_v21 = vpop.f32.mrf.mxu1 }
  0xcb   :  { %231 = vst [vmem:[%s332_s2 + $0x8] sm:$0xff] %v102_v20  ;;  %233 = vst [vmem:[%s332_s2 + $0x18] sm:$0xff] %v143_v21 }
  0xcc   :  { %v104_v22 = vpop.f32.mrf.mxu0  ;;  %v145_v23 = vpop.f32.mrf.mxu1 }
  0xce   :  { %v105_v24 = vpop.f32.mrf.mxu0  ;;  %v146_v25 = vpop.f32.mrf.mxu1 }
  0xd0   :  { %v182_v26 = vpop.f32.mrf.mxu0  ;;  %v223_v27 = vpop.f32.mrf.mxu1 }
  0xd1   :  { %234 = vst [vmem:[%s332_s2 + $0x20] sm:$0xff] %v182_v26  ;;  %236 = vst [vmem:[%s332_s2 + $0x30] sm:$0xff] %v223_v27 }
  0xd2   :  { %v184_v28 = vpop.f32.mrf.mxu0  ;;  %v225_v29 = vpop.f32.mrf.mxu1 }
  0xd3   :  { %235 = vst [vmem:[%s332_s2 + $0x28] sm:$0xff] %v184_v28  ;;  %237 = vst [vmem:[%s332_s2 + $0x38] sm:$0xff] %v225_v29 }
  0xd4   :  { %v186_v30 = vpop.f32.mrf.mxu0  ;;  %v227_v31 = vpop.f32.mrf.mxu1 }
  0xd6   :  { %v187_v32 = vpop.f32.mrf.mxu0  ;;  %v228_v33 = vpop.f32.mrf.mxu1 }

// kernel: cmp_forward.5
= control target key start
LH: loop header
LB: loop body
LE: loop exit
PB: predicated region body
PF: predicated region fallthrough
CT: control target
= control target key end

     0   :  { %s2750_s15 = smov 0   ;;  %s3240_s0 = inlined_call_operand.vmem [shape: bf16[8,12,324], index: 0, kind: input, shape index: {}]   ;;  %s3241_s1 = inlined_call_operand.vmem [shape: bf16[9,8,12], index: 1, kind: input, shape index: {}]   ;;  %s3242_s2 = inlined_call_operand.vmem [shape: f32[8,3], index: 2, kind: input, shape index: {}]   ;;  %s3243_s3 = inlined_call_operand.vmem [shape: f32[1,286], index: 3, kind: input, shape index: {}]   ;;  %s3244_s4 = inlined_call_operand.vmem [shape: bf16[8,8,324], index: 4, kind: output, shape index: {}]  }
   0x1 LB: > { %s2407_s16 = sadd.s32 4294967295, %s2708_s15   ;;  %p2411_p0 = scmp.ge.s32.totalorder %s2708_s15, 1  ;;  %s2708_s15 = sphi %s2750_s15, %s14_s15  }
   0x2   : > { %p164_p1 = scmp.lt.s32.totalorder %s2708_s15, 5 }
   0x4   : > { %p165_p2 = pnand %p2411_p0, %p164_p1 }
   0x5   : > { %s2412_s17 = sshll.u32 (!%p165_p2), %s2407_s16, 1  ;;  %s2713_s22 = smov (!%p165_p2), 127  }
   0x6   : > { %168 = sbr.rel (%p165_p2) target bundleno = 1083 (0x43b), region = 36  ;;  %p193_p3 = scmp.lt.s32.totalorder (!%p165_p2), %s2412_s17, 7 }
   0x7   : > { %s2714_s23 = smov (!%p165_p2), 126   ;;  %s2715_s24 = smov (!%p165_p2), 110  }
   0x8   : > { %s2716_s25 = smov (!%p165_p2), 109   ;;  %s2717_s26 = smov (!%p165_p2), 108  }
   0x9   : > { %s2718_s27 = smov (!%p165_p2), 92   ;;  %s2719_s28 = smov (!%p165_p2), 91  }
   0xa   : > { %s2720_s29 = smov (!%p165_p2), 90  }
   0xb   : > { %v2710_v0 = vmov 0.0   ;;  %vm2711_vm0 = vmmov 0   ;;  %s3246_s17 = smov (!%p193_p3, %s2412_s17), 7  ;;  %v2712_v1 = vmov 0   ;;  %vm247_vm1 = vcmask 1045504   ;;  %v212_v25 = vld [vmem:[%s3242_s2] sm:$0xff] }
   0xc   : > { %2544 = vmatprep.subr.bf16.mxu1 %v2710_v0  ;;  %2546 = vmatprep.mubr.msk.bf16.mxu1 %vm2711_vm0, %v2710_v0  ;;  %s2652_s18 = smul.u32 24, %s3246_s17  ;;  %v2416_v11 = vld [vmem:[%s3241_s1 + $0x4] sm:$0xf]  ;;  %vm243_vm2 = vcmask 97280   ;;  %vm240_vm3 = vcmask 1039360   ;;  %vm439_vm4 = vcmask 1031168  }
   0xd   : > { %289 = vmatprep.mubr.bf16.mxu0 %v2712_v1  ;;  %2685 = vset.pattern.permute.xlu0 %v2712_v1  ;;  %v218_v21 = vld [vmem:[%s3241_s1] sm:$0xf]  ;;  %vm546_vm5 = vcmask 900096   ;;  %v2426_v31 = vld [vmem:[%s3241_s1 + $0x8] sm:$0xf]  ;;  %vm653_vm6 = vcmask 891904  }
   0xe   : > { %s2769_s21 = scalar_lea.vmem %s3240_s0, %s2652_s18  ;;  %v2430_v39 = vld [vmem:[%s3241_s1 + $0xc] sm:$0xf]  ;;  %vm760_vm7 = vcmask 883712   ;;  %v2434_v47 = vld [vmem:[%s3241_s1 + $0x10] sm:$0xf]  ;;  %vm867_vm8 = vcmask 752640  }
   0xf   : > { %v2772_v2 = vld [vmem:[%s2769_s21 + $0x8] ss:$12 sps:$4 sm:$0x3f]   ;;  %v2775_v3 = vld [vmem:[%s2769_s21] ss:$12 sps:$4 sm:$0x3f]  }
  0x10   : > { %238 = vrot.lane.b32.xlu1 %v2772_v2, %s2713_s22  ;;  %234 = vrot.lane.b32.xlu0 %v2775_v3, %s2713_s22  ;;  %v2782_v4 = vld [vmem:[%s2769_s21 + $0x4] ss:$12 sps:$4 sm:$0x3f]   ;;  %v2827_v5 = vld [vmem:[%s2769_s21 + $0x1c] ss:$12 sps:$4 sm:$0x3f]  }
  0x11   : > { %v2832_v6 = vld [vmem:[%s2769_s21 + $0x18] ss:$12 sps:$4 sm:$0x3f]   ;;  %v2839_v7 = vld [vmem:[%s2769_s21 + $0x20] ss:$12 sps:$4 sm:$0x3f]  }
  0x12   : > { %v348_v12 = vsel %vm247_vm1, %v2772_v2, 0  ;;  %v342_v19 = vsel %vm247_vm1, %v2775_v3, 0  ;;  %v2438_v55 = vld [vmem:[%s3241_s1 + $0x14] sm:$0xf]  ;;  %vm974_vm9 = vcmask 744448   ;;  %vm1081_vm10 = vcmask 736256  }
  0x13   : > { %v2442_v63 = vld [vmem:[%s3241_s1 + $0x18] sm:$0xf]  ;;  %vm1208_vm11 = vcmask 244736   ;;  %vm208_vm12 = vcmask 551936   ;;  %vm1297_vm13 = vcmask 1043608   ;;  %vm1298_vm14 = vcmask 1047556  }
  0x14   : > { %433 = vrot.lane.b32.xlu1 %v2775_v3, %s2714_s23  ;;  %236 = vrot.lane.b32.xlu0 %v2782_v4, %s2713_s22  ;;  %vm1292_vm15 = vcmask 154624  }
  0x18   : > { %437 = vrot.lane.b32.xlu1 %v2772_v2, %s2714_s23  ;;  %435 = vrot.lane.b32.xlu0 %v2782_v4, %s2714_s23 }
  0x1c   : > { %542 = vrot.lane.b32.xlu1 %v2782_v4, %s2715_s24  ;;  %540 = vrot.lane.b32.xlu0 %v2775_v3, %s2715_s24 }
  0x20   : > { %647 = vrot.lane.b32.xlu1 %v2775_v3, %s2716_s25  ;;  %544 = vrot.lane.b32.xlu0 %v2772_v2, %s2715_s24 }
  0x24   : > { %651 = vrot.lane.b32.xlu1 %v2772_v2, %s2716_s25  ;;  %649 = vrot.lane.b32.xlu0 %v2782_v4, %s2716_s25 }
  0x28   : > { %756 = vrot.lane.b32.xlu1 %v2782_v4, %s2717_s26  ;;  %754 = vrot.lane.b32.xlu0 %v2775_v3, %s2717_s26 }
  0x2c   : > { %861 = vrot.lane.b32.xlu1 %v2775_v3, %s2718_s27  ;;  %758 = vrot.lane.b32.xlu0 %v2772_v2, %s2717_s26 }
  0x30   : > { %865 = vrot.lane.b32.xlu1 %v2772_v2, %s2718_s27  ;;  %863 = vrot.lane.b32.xlu0 %v2782_v4, %s2718_s27 }
  0x34   : > { %970 = vrot.lane.b32.xlu1 %v2782_v4, %s2719_s28  ;;  %968 = vrot.lane.b32.xlu0 %v2775_v3, %s2719_s28 }
  0x38   : > { %1075 = vrot.lane.b32.xlu1 %v2775_v3, %s2720_s29  ;;  %972 = vrot.lane.b32.xlu0 %v2772_v2, %s2719_s28 }
  0x3c   : > { %1079 = vrot.lane.b32.xlu1 %v2772_v2, %s2720_s29  ;;  %1077 = vrot.lane.b32.xlu0 %v2782_v4, %s2720_s29 }
  0x40   : > { %1325 = vrot.lane.b32.xlu1 %v2827_v5, %s2713_s22  ;;  %1323 = vrot.lane.b32.xlu0 %v2832_v6, %s2713_s22 }
  0x44   : > { %1518 = vrot.lane.b32.xlu1 %v2832_v6, %s2714_s23  ;;  %1327 = vrot.lane.b32.xlu0 %v2839_v7, %s2713_s22 }
  0x48   : > { %1522 = vrot.lane.b32.xlu1 %v2839_v7, %s2714_s23  ;;  %1520 = vrot.lane.b32.xlu0 %v2827_v5, %s2714_s23 }
  0x4c   : > { %1625 = vrot.lane.b32.xlu1 %v2827_v5, %s2715_s24  ;;  %1623 = vrot.lane.b32.xlu0 %v2832_v6, %s2715_s24 }
  0x50   : > { %1728 = vrot.lane.b32.xlu1 %v2832_v6, %s2716_s25  ;;  %1627 = vrot.lane.b32.xlu0 %v2839_v7, %s2715_s24 }
  0x54   : > { %1732 = vrot.lane.b32.xlu1 %v2839_v7, %s2716_s25  ;;  %1730 = vrot.lane.b32.xlu0 %v2827_v5, %s2716_s25 }
  0x58   : > { %1835 = vrot.lane.b32.xlu1 %v2827_v5, %s2717_s26  ;;  %1833 = vrot.lane.b32.xlu0 %v2832_v6, %s2717_s26 }
  0x5c   : > { %1938 = vrot.lane.b32.xlu1 %v2832_v6, %s2718_s27  ;;  %1837 = vrot.lane.b32.xlu0 %v2839_v7, %s2717_s26  ;;  %s2723_s26 = smov 1  }
  0x60   : > { %1942 = vrot.lane.b32.xlu1 %v2839_v7, %s2718_s27  ;;  %1940 = vrot.lane.b32.xlu0 %v2827_v5, %s2718_s27 }
  0x64   : > { %2045 = vrot.lane.b32.xlu1 %v2827_v5, %s2719_s28  ;;  %2043 = vrot.lane.b32.xlu0 %v2832_v6, %s2719_s28 }
  0x68   : > { %2148 = vrot.lane.b32.xlu1 %v2832_v6, %s2720_s29  ;;  %2047 = vrot.lane.b32.xlu0 %v2839_v7, %s2719_s28 }
  0x6c   : > { %2152 = vrot.lane.b32.xlu1 %v2839_v7, %s2720_s29  ;;  %2150 = vrot.lane.b32.xlu0 %v2827_v5, %s2720_s29  ;;  %s2653_s29 = smul.u32 12, %s3246_s17  ;;  %s2724_s17 = smov 19  }
  0x6e   : > { %s3211_s6 = scalar_lea.vmem %s3244_s4, %s2653_s29 }
  0x6f   : > { %207 = vst [vmem:[%s3211_s6] sm:$0xff] %v2712_v1  ;;  %210 = vst [vmem:[%s3211_s6 + $0xc] sm:$0xff] %v2712_v1 }
  0x70   : > { %1182 = vperm.xlu0 %2685, %v212_v25   ;;  %v2460_v25 = vld [vmem:[%s3241_s1 + $0x4] sm:$0xf]  ;;  %209 = vst.msk [vmem:[%s3211_s6 + $0x8] sm:$0xf] %vm208_vm12, %v2712_v1  ;;  %211 = vst.msk [vmem:[%s3211_s6 + $0x14] sm:$0xf] %vm208_vm12, %v2712_v1 }
  0x82   : > { %v239_v8 = vpop.permute.xlu1 %238  ;;  %v235_v9 = vpop.permute.xlu0 %234 }
  0x83   : > { %v255_v10 = vsel %vm247_vm1, %v239_v8, 0 }
  0x84   : > { %2545 = vmatpush3.bf16.msra.mxu1 %v255_v10 }
  0x85   : > { %2550 = vmatprep.subr.bf16.mxu1 %v2710_v0 }
  0x86   : > { %v434_v13 = vpop.permute.xlu1 %433  ;;  %v237_v14 = vpop.permute.xlu0 %236 }
  0x87   : > { %2547 = vmatmul.mubr.msk.bf16.vlgmr.msra.gmra.mxu1 %vm243_vm2, %v2416_v11  ;;  %v242_v15 = vsel %vm240_vm3, %v237_v14, %v239_v8  ;;  %v241_v16 = vsel %vm240_vm3, %v235_v9, %v237_v14 }
  0x88   : > { %2551 = vmatpush3.bf16.msra.mxu1 %v348_v12  ;;  %2552 = vmatprep.mubr.msk.bf16.mxu1 %vm2711_vm0, %v2710_v0  ;;  %v249_v17 = vsel %vm247_vm1, %v241_v16, 0  ;;  %v2446_v12 = vld [vmem:[%s3241_s1 + $0x1c] sm:$0xf] }
  0x89   : > { %2420 = vmatprep.subr.msk.bf16.mxu0 %vm247_vm1, %v242_v15  ;;  %2556 = vmatprep.subr.bf16.mxu1 %v2710_v0 }
  0x8a   : > { %272 = vmatpush1.bf16.msra.mxu0 %v249_v17  ;;  %v438_v18 = vpop.permute.xlu1 %437  ;;  %v436_v20 = vpop.permute.xlu0 %435 }
  0x8b   : > { %2423 = vmatprep.subr.msk.bf16.mxu0 %vm247_vm1, %v2782_v4  ;;  %v441_v22 = vsel %vm439_vm4, %v436_v20, %v438_v18  ;;  %v452_v23 = vsel %vm247_vm1, %v438_v18, 0  ;;  %v440_v27 = vsel %vm439_vm4, %v434_v13, %v436_v20 }
  0x8c   : > { %v446_v28 = vsel %vm247_vm1, %v440_v27, 0 }
  0x8d   : > { %2421 = vmatmul.mubr.msk.bf16.vlgmr.msra.gmra.mxu0 %vm243_vm2, %v2416_v11 }
  0x8e   : > { %365 = vmatpush1.bf16.msra.mxu0 %v342_v19  ;;  %382 = vmatprep.mubr.bf16.mxu0 %v2712_v1  ;;  %v543_v24 = vpop.permute.xlu1 %542  ;;  %v541_v26 = vpop.permute.xlu0 %540  ;;  %v2450_v19 = vld [vmem:[%s3241_s1 + $0x20] sm:$0xf] }
  0x8f   : > { %2553 = vmatmul.mubr.msk.bf16.vlgmr.msra.gmra.mxu1 %vm243_vm2, %v218_v21  ;;  %2427 = vmatprep.subr.msk.bf16.mxu0 %vm247_vm1, %v441_v22  ;;  %v547_v35 = vsel %vm546_vm5, %v541_v26, %v543_v24  ;;  %v1434_v26 = vsel %vm247_vm1, %v2839_v7, 0 }
  0x90   : > { %2557 = vmatpush3.bf16.msra.mxu1 %v452_v23  ;;  %2558 = vmatprep.mubr.msk.bf16.mxu1 %vm2711_vm0, %v2710_v0  ;;  %v553_v37 = vsel %vm247_vm1, %v547_v35, 0 }
  0x91   : > { %2562 = vmatprep.subr.bf16.mxu1 %v2710_v0 }
  0x92   : > { %v545_v29 = vpop.permute.xlu0 %544  ;;  %v648_v30 = vpop.permute.xlu1 %647 }
  0x93   : > { %v548_v32 = vsel %vm546_vm5, %v543_v24, %v545_v29  ;;  %v559_v33 = vsel %vm247_vm1, %v545_v29, 0  ;;  %v1428_v29 = vsel %vm247_vm1, %v2832_v6, 0 }
  0x95   : > { %2424 = vmatmul.mubr.msk.bf16.vlgmr.msra.gmra.mxu0 %vm243_vm2, %v218_v21 }
  0x96   : > { %469 = vmatpush1.bf16.msra.mxu0 %v446_v28  ;;  %486 = vmatprep.mubr.bf16.mxu0 %v2712_v1  ;;  %v650_v34 = vpop.permute.xlu0 %649  ;;  %v652_v36 = vpop.permute.xlu1 %651 }
  0x97   : > { %2559 = vmatmul.mubr.msk.bf16.vlgmr.msra.gmra.mxu1 %vm243_vm2, %v2426_v31  ;;  %2431 = vmatprep.subr.msk.bf16.mxu0 %vm247_vm1, %v548_v32  ;;  %v655_v40 = vsel %vm653_vm6, %v650_v34, %v652_v36  ;;  %v666_v41 = vsel %vm247_vm1, %v652_v36, 0  ;;  %v654_v43 = vsel %vm653_vm6, %v648_v30, %v650_v34  ;;  %v1308_v30 = vld [vmem:[%s3241_s1] sm:$0xf]  ;;  %v2470_v36 = vld [vmem:[%s3241_s1 + $0x8] sm:$0xf] }
  0x98   : > { %2563 = vmatpush3.bf16.msra.mxu1 %v559_v33  ;;  %2564 = vmatprep.mubr.msk.bf16.mxu1 %vm2711_vm0, %v2710_v0  ;;  %v660_v45 = vsel %vm247_vm1, %v654_v43, 0 }
  0x99   : > { %2568 = vmatprep.subr.bf16.mxu1 %v2710_v0 }
  0x9a   : > { %v755_v38 = vpop.permute.xlu0 %754  ;;  %v757_v42 = vpop.permute.xlu1 %756 }
  0x9b   : > { %v761_v51 = vsel %vm760_vm7, %v755_v38, %v757_v42 }
  0x9c   : > { %v767_v53 = vsel %vm247_vm1, %v761_v51, 0 }
  0x9d   : > { %2428 = vmatmul.mubr.msk.bf16.vlgmr.msra.gmra.mxu0 %vm243_vm2, %v2426_v31 }
  0x9e   : > { %576 = vmatpush1.bf16.msra.mxu0 %v553_v37  ;;  %593 = vmatprep.mubr.bf16.mxu0 %v2712_v1  ;;  %v759_v44 = vpop.permute.xlu0 %758  ;;  %v862_v46 = vpop.permute.xlu1 %861 }
  0x9f   : > { %2565 = vmatmul.mubr.msk.bf16.vlgmr.msra.gmra.mxu1 %vm243_vm2, %v2430_v39  ;;  %2435 = vmatprep.subr.msk.bf16.mxu0 %vm247_vm1, %v655_v40  ;;  %v762_v48 = vsel %vm760_vm7, %v757_v42, %v759_v44  ;;  %v773_v49 = vsel %vm247_vm1, %v759_v44, 0  ;;  %v2474_v44 = vld [vmem:[%s3241_s1 + $0xc] sm:$0xf] }
  0xa0   : > { %2569 = vmatpush3.bf16.msra.mxu1 %v666_v41  ;;  %2570 = vmatprep.mubr.msk.bf16.mxu1 %vm2711_vm0, %v2710_v0 }
  0xa1   : > { %2574 = vmatprep.subr.bf16.mxu1 %v2710_v0 }
  0xa2   : > { %v864_v50 = vpop.permute.xlu0 %863  ;;  %v866_v52 = vpop.permute.xlu1 %865 }
  0xa3   : > { %v869_v56 = vsel %vm867_vm8, %v864_v50, %v866_v52  ;;  %v880_v57 = vsel %vm247_vm1, %v866_v52, 0  ;;  %v868_v59 = vsel %vm867_vm8, %v862_v46, %v864_v50  ;;  %v2478_v52 = vld [vmem:[%s3241_s1 + $0x10] sm:$0xf] }
  0xa4   : > { %v874_v61 = vsel %vm247_vm1, %v868_v59, 0 }
  0xa5   : > { %2432 = vmatmul.mubr.msk.bf16.vlgmr.msra.gmra.mxu0 %vm243_vm2, %v2430_v39 }
  0xa6   : > { %683 = vmatpush1.bf16.msra.mxu0 %v660_v45  ;;  %700 = vmatprep.mubr.bf16.mxu0 %v2712_v1  ;;  %v969_v54 = vpop.permute.xlu0 %968  ;;  %v971_v58 = vpop.permute.xlu1 %970 }
  0xa7   : > { %2571 = vmatmul.mubr.msk.bf16.vlgmr.msra.gmra.mxu1 %vm243_vm2, %v2434_v47  ;;  %2439 = vmatprep.subr.msk.bf16.mxu0 %vm247_vm1, %v762_v48  ;;  %v975_v8 = vsel %vm974_vm9, %v969_v54, %v971_v58 }
  0xa8   : > { %2575 = vmatpush3.bf16.msra.mxu1 %v773_v49  ;;  %2576 = vmatprep.mubr.msk.bf16.mxu1 %vm2711_vm0, %v2710_v0  ;;  %v981_v10 = vsel %vm247_vm1, %v975_v8, 0 }
  0xa9   : > { %2580 = vmatprep.subr.bf16.mxu1 %v2710_v0 }
  0xaa   : > { %v973_v60 = vpop.permute.xlu0 %972  ;;  %v1076_v62 = vpop.permute.xlu1 %1075 }
  0xab   : > { %v976_v2 = vsel %vm974_vm9, %v971_v58, %v973_v60  ;;  %v987_v3 = vsel %vm247_vm1, %v973_v60, 0  ;;  %v2482_v60 = vld [vmem:[%s3241_s1 + $0x14] sm:$0xf] }
  0xad   : > { %2436 = vmatmul.mubr.msk.bf16.vlgmr.msra.gmra.mxu0 %vm243_vm2, %v2434_v47 }
  0xae   : > { %790 = vmatpush1.bf16.msra.mxu0 %v767_v53  ;;  %807 = vmatprep.mubr.bf16.mxu0 %v2712_v1  ;;  %v1078_v4 = vpop.permute.xlu0 %1077  ;;  %v1080_v9 = vpop.permute.xlu1 %1079 }
  0xaf   : > { %2577 = vmatmul.mubr.msk.bf16.vlgmr.msra.gmra.mxu1 %vm243_vm2, %v2438_v55  ;;  %2443 = vmatprep.subr.msk.bf16.mxu0 %vm247_vm1, %v869_v56  ;;  %v1083_v13 = vsel %vm1081_vm10, %v1078_v4, %v1080_v9  ;;  %v1094_v14 = vsel %vm247_vm1, %v1080_v9, 0  ;;  %v1082_v15 = vsel %vm1081_vm10, %v1076_v62, %v1078_v4  ;;  %v2486_v9 = vld [vmem:[%s3241_s1 + $0x18] sm:$0xf] }
  0xb0   : > { %2581 = vmatpush3.bf16.msra.mxu1 %v880_v57  ;;  %2582 = vmatprep.mubr.msk.bf16.mxu1 %vm2711_vm0, %v2710_v0  ;;  %v1088_v18 = vsel %vm247_vm1, %v1082_v15, 0 }
  0xb1   : > { %2586 = vmatprep.subr.bf16.mxu1 %v2710_v0 }
  0xb2   : > { %v1324_v11 = vpop.permute.xlu0 %1323  ;;  %v1326_v16 = vpop.permute.xlu1 %1325 }
  0xb3   : > { %v1329_v22 = vsel %vm240_vm3, %v1324_v11, %v1326_v16 }
  0xb4   : > { %v1335_v23 = vsel %vm247_vm1, %v1329_v22, 0 }
  0xb5   : > { %2440 = vmatmul.mubr.msk.bf16.vlgmr.msra.gmra.mxu0 %vm243_vm2, %v2438_v55 }
  0xb6   : > { %897 = vmatpush1.bf16.msra.mxu0 %v874_v61  ;;  %914 = vmatprep.mubr.bf16.mxu0 %v2712_v1  ;;  %v1328_v17 = vpop.permute.xlu0 %1327  ;;  %v1519_v24 = vpop.permute.xlu1 %1518 }
  0xb7   : > { %2583 = vmatmul.mubr.msk.bf16.vlgmr.msra.gmra.mxu1 %vm243_vm2, %v2442_v63  ;;  %2447 = vmatprep.subr.msk.bf16.mxu0 %vm247_vm1, %v976_v2  ;;  %v1330_v20 = vsel %vm240_vm3, %v1326_v16, %v1328_v17  ;;  %v1341_v21 = vsel %vm247_vm1, %v1328_v17, 0  ;;  %v2490_v16 = vld [vmem:[%s3241_s1 + $0x1c] sm:$0xf] }
  0xb8   : > { %2587 = vmatpush3.bf16.msra.mxu1 %v987_v3  ;;  %2588 = vmatprep.mubr.msk.bf16.mxu1 %vm2711_vm0, %v2710_v0 }
  0xb9   : > { %2592 = vmatprep.subr.bf16.mxu1 %v2710_v0 }
  0xba   : > { %v1521_v27 = vpop.permute.xlu0 %1520  ;;  %v1523_v28 = vpop.permute.xlu1 %1522 }
  0xbb   : > { %v1525_v31 = vsel %vm439_vm4, %v1521_v27, %v1523_v28  ;;  %v1524_v6 = vsel %vm439_vm4, %v1519_v24, %v1521_v27 }
  0xbc   : > { %v1530_v34 = vsel %vm247_vm1, %v1524_v6, 0 }
  0xbd   : > { %2444 = vmatmul.mubr.msk.bf16.vlgmr.msra.gmra.mxu0 %vm243_vm2, %v2442_v63 }
  0xbe   : > { %1004 = vmatpush1.bf16.msra.mxu0 %v981_v10  ;;  %1021 = vmatprep.mubr.bf16.mxu0 %v2712_v1  ;;  %v1624_v7 = vpop.permute.xlu0 %1623  ;;  %v1626_v32 = vpop.permute.xlu1 %1625 }
  0xbf   : > { %2589 = vmatmul.mubr.msk.bf16.vlgmr.msra.gmra.mxu1 %vm243_vm2, %v2446_v12  ;;  %2451 = vmatprep.subr.msk.bf16.mxu0 %vm247_vm1, %v1083_v13  ;;  %v1629_v40 = vsel %vm546_vm5, %v1624_v7, %v1626_v32 }
  0xc0   : > { %2593 = vmatpush3.bf16.msra.mxu1 %v1094_v14  ;;  %2594 = vmatprep.mubr.msk.bf16.mxu1 %vm2711_vm0, %v2710_v0  ;;  %v1635_v42 = vsel %vm247_vm1, %v1629_v40, 0 }
  0xc1   : > { %2598 = vmatprep.subr.bf16.mxu1 %v2710_v0 }
  0xc2   : > { %v1628_v33 = vpop.permute.xlu0 %1627  ;;  %v1729_v35 = vpop.permute.xlu1 %1728 }
  0xc3   : > { %v1630_v37 = vsel %vm546_vm5, %v1626_v32, %v1628_v33  ;;  %v1641_v38 = vsel %vm247_vm1, %v1628_v33, 0 }
  0xc5   : > { %2448 = vmatmul.mubr.msk.bf16.vlgmr.msra.gmra.mxu0 %vm243_vm2, %v2446_v12 }
  0xc6   : > { %1111 = vmatpush1.bf16.msra.mxu0 %v1088_v18  ;;  %1128 = vmatprep.mubr.bf16.mxu0 %v2712_v1  ;;  %v1731_v39 = vpop.permute.xlu0 %1730  ;;  %v1733_v41 = vpop.permute.xlu1 %1732 }
  0xc7   : > { %2595 = vmatmul.mubr.msk.bf16.vlgmr.msra.gmra.mxu1 %vm243_vm2, %v2450_v19  ;;  %2464 = vmatprep.subr.msk.bf16.mxu0 %vm247_vm1, %v1330_v20  ;;  %v1735_v45 = vsel %vm653_vm6, %v1731_v39, %v1733_v41  ;;  %v1746_v46 = vsel %vm247_vm1, %v1733_v41, 0  ;;  %v1734_v48 = vsel %vm653_vm6, %v1729_v35, %v1731_v39 }
  0xc8   : > { %2599 = vmatpush3.bf16.msra.mxu1 %v1341_v21  ;;  %2600 = vmatprep.mubr.msk.bf16.mxu1 %vm2711_vm0, %v2710_v0  ;;  %v1740_v50 = vsel %vm247_vm1, %v1734_v48, 0  ;;  %v2494_v21 = vld [vmem:[%s3241_s1 + $0x20] sm:$0xf] }
  0xc9   : > { %2604 = vmatprep.subr.bf16.mxu1 %v2710_v0 }
  0xca   : > { %v1834_v43 = vpop.permute.xlu0 %1833  ;;  %v1836_v47 = vpop.permute.xlu1 %1835 }
  0xcb   : > { %v1839_v56 = vsel %vm760_vm7, %v1834_v43, %v1836_v47 }
  0xcc   : > { %v1845_v58 = vsel %vm247_vm1, %v1839_v56, 0 }
  0xcd   : > { %2452 = vmatmul.mubr.msk.bf16.vlgmr.msra.gmra.mxu0 %vm243_vm2, %v2450_v19 }
  0xce   : > { %1358 = vmatpush1.bf16.msra.mxu0 %v1335_v23  ;;  %1375 = vmatprep.mubr.bf16.mxu0 %v2712_v1  ;;  %v1838_v49 = vpop.permute.xlu0 %1837  ;;  %v1939_v51 = vpop.permute.xlu1 %1938 }
  0xcf   : > { %2601 = vmatmul.mubr.msk.bf16.vlgmr.msra.gmra.mxu1 %vm243_vm2, %v2460_v25  ;;  %2467 = vmatprep.subr.msk.bf16.mxu0 %vm247_vm1, %v2827_v5  ;;  %v1536_v5 = vsel %vm247_vm1, %v1523_v28, 0  ;;  %v1840_v53 = vsel %vm760_vm7, %v1836_v47, %v1838_v49  ;;  %v1851_v54 = vsel %vm247_vm1, %v1838_v49, 0 }
  0xd0   : > { %2605 = vmatpush3.bf16.msra.mxu1 %v1434_v26  ;;  %2606 = vmatprep.mubr.msk.bf16.mxu1 %vm2711_vm0, %v2710_v0 }
  0xd1   : > { %2610 = vmatprep.subr.bf16.mxu1 %v2710_v0 }
  0xd2   : > { %v1941_v55 = vpop.permute.xlu0 %1940  ;;  %v1943_v57 = vpop.permute.xlu1 %1942 }
  0xd3   : > { %v1945_v61 = vsel %vm867_vm8, %v1941_v55, %v1943_v57  ;;  %v1956_v62 = vsel %vm247_vm1, %v1943_v57, 0  ;;  %v1944_v2 = vsel %vm867_vm8, %v1939_v51, %v1941_v55 }
  0xd4   : > { %v1950_v4 = vsel %vm247_vm1, %v1944_v2, 0 }
  0xd5   : > { %2465 = vmatmul.mubr.msk.bf16.vlgmr.msra.gmra.mxu0 %vm243_vm2, %v2460_v25 }
  0xd6   : > { %1451 = vmatpush1.bf16.msra.mxu0 %v1428_v29  ;;  %1468 = vmatprep.mubr.bf16.mxu0 %v2712_v1  ;;  %v2044_v59 = vpop.permute.xlu0 %2043  ;;  %v2046_v63 = vpop.permute.xlu1 %2045 }
  0xd7   : > { %2607 = vmatmul.mubr.msk.bf16.vlgmr.msra.gmra.mxu1 %vm243_vm2, %v1308_v30  ;;  %2471 = vmatprep.subr.msk.bf16.mxu0 %vm247_vm1, %v1525_v31  ;;  %v2049_v12 = vsel %vm974_vm9, %v2044_v59, %v2046_v63 }
  0xd8   : > { %2611 = vmatpush3.bf16.msra.mxu1 %v1536_v5  ;;  %2612 = vmatprep.mubr.msk.bf16.mxu1 %vm2711_vm0, %v2710_v0  ;;  %v2055_v15 = vsel %vm247_vm1, %v2049_v12, 0 }
  0xd9   : > { %2616 = vmatprep.subr.bf16.mxu1 %v2710_v0 }
  0xda   : > { %v2048_v3 = vpop.permute.xlu0 %2047  ;;  %v2149_v8 = vpop.permute.xlu1 %2148 }
  0xdb   : > { %v2050_v10 = vsel %vm974_vm9, %v2046_v63, %v2048_v3  ;;  %v2061_v11 = vsel %vm247_vm1, %v2048_v3, 0 }
  0xdd   : > { %2468 = vmatmul.mubr.msk.bf16.vlgmr.msra.gmra.mxu0 %vm243_vm2, %v1308_v30 }
  0xde   : > { %1553 = vmatpush1.bf16.msra.mxu0 %v1530_v34  ;;  %1570 = vmatprep.mubr.bf16.mxu0 %v2712_v1  ;;  %v2151_v13 = vpop.permute.xlu0 %2150  ;;  %v2153_v14 = vpop.permute.xlu1 %2152 }
  0xdf   : > { %2613 = vmatmul.mubr.msk.bf16.vlgmr.msra.gmra.mxu1 %vm243_vm2, %v2470_v36  ;;  %2475 = vmatprep.subr.msk.bf16.mxu0 %vm247_vm1, %v1630_v37  ;;  %v2155_v17 = vsel %vm1081_vm10, %v2151_v13, %v2153_v14  ;;  %v2166_v18 = vsel %vm247_vm1, %v2153_v14, 0  ;;  %v2154_v19 = vsel %vm1081_vm10, %v2149_v8, %v2151_v13 }
  0xe0   : > { %2617 = vmatpush3.bf16.msra.mxu1 %v1641_v38  ;;  %2618 = vmatprep.mubr.msk.bf16.mxu1 %vm2711_vm0, %v2710_v0  ;;  %v2160_v20 = vsel %vm247_vm1, %v2154_v19, 0 }
  0xe1   : > { %2622 = vmatprep.subr.bf16.mxu1 %v2710_v0 }
  0xe5   : > { %2472 = vmatmul.mubr.msk.bf16.vlgmr.msra.gmra.mxu0 %vm243_vm2, %v2470_v36 }
  0xe6   : > { %1658 = vmatpush1.bf16.msra.mxu0 %v1635_v42  ;;  %1675 = vmatprep.mubr.bf16.mxu0 %v2712_v1 }
  0xe7   : > { %2619 = vmatmul.mubr.msk.bf16.vlgmr.msra.gmra.mxu1 %vm243_vm2, %v2474_v44  ;;  %2479 = vmatprep.subr.msk.bf16.mxu0 %vm247_vm1, %v1735_v45 }
  0xe8   : > { %2623 = vmatpush3.bf16.msra.mxu1 %v1746_v46  ;;  %2624 = vmatprep.mubr.msk.bf16.mxu1 %vm2711_vm0, %v2710_v0 }
  0xe9   : > { %2628 = vmatprep.subr.bf16.mxu1 %v2710_v0 }
  0xed   : > { %2476 = vmatmul.mubr.msk.bf16.vlgmr.msra.gmra.mxu0 %vm243_vm2, %v2474_v44 }
  0xee   : > { %1763 = vmatpush1.bf16.msra.mxu0 %v1740_v50  ;;  %1780 = vmatprep.mubr.bf16.mxu0 %v2712_v1 }
  0xef   : > { %2625 = vmatmul.mubr.msk.bf16.vlgmr.msra.gmra.mxu1 %vm243_vm2, %v2478_v52  ;;  %2483 = vmatprep.subr.msk.bf16.mxu0 %vm247_vm1, %v1840_v53 }
  0xf0   : > { %2629 = vmatpush3.bf16.msra.mxu1 %v1851_v54  ;;  %2630 = vmatprep.mubr.msk.bf16.mxu1 %vm2711_vm0, %v2710_v0 }
  0xf1   : > { %2634 = vmatprep.subr.bf16.mxu1 %v2710_v0 }
  0xf5   : > { %2480 = vmatmul.mubr.msk.bf16.vlgmr.msra.gmra.mxu0 %vm243_vm2, %v2478_v52 }
  0xf6   : > { %1868 = vmatpush1.bf16.msra.mxu0 %v1845_v58  ;;  %1885 = vmatprep.mubr.bf16.mxu0 %v2712_v1 }
  0xf7   : > { %2631 = vmatmul.mubr.msk.bf16.vlgmr.msra.gmra.mxu1 %vm243_vm2, %v2482_v60  ;;  %2487 = vmatprep.subr.msk.bf16.mxu0 %vm247_vm1, %v1945_v61 }
  0xf8   : > { %2635 = vmatpush3.bf16.msra.mxu1 %v1956_v62  ;;  %2636 = vmatprep.mubr.msk.bf16.mxu1 %vm2711_vm0, %v2710_v0 }
  0xf9   : > { %2640 = vmatprep.subr.bf16.mxu1 %v2710_v0 }
  0xfd   : > { %2484 = vmatmul.mubr.msk.bf16.vlgmr.msra.gmra.mxu0 %vm243_vm2, %v2482_v60 }
  0xfe   : > { %1973 = vmatpush1.bf16.msra.mxu0 %v1950_v4  ;;  %1990 = vmatprep.mubr.bf16.mxu0 %v2712_v1 }
  0xff   : > { %2637 = vmatmul.mubr.msk.bf16.vlgmr.msra.gmra.mxu1 %vm243_vm2, %v2486_v9  ;;  %2491 = vmatprep.subr.msk.bf16.mxu0 %vm247_vm1, %v2050_v10 }
 0x100   : > { %2641 = vmatpush3.bf16.msra.mxu1 %v2061_v11  ;;  %2642 = vmatprep.mubr.msk.bf16.mxu1 %vm2711_vm0, %v2710_v0 }
 0x101   : > { %2646 = vmatprep.subr.bf16.mxu1 %v2710_v0 }
 0x105   : > { %2488 = vmatmul.mubr.msk.bf16.vlgmr.msra.gmra.mxu0 %vm243_vm2, %v2486_v9 }
 0x106   : > { %2078 = vmatpush1.bf16.msra.mxu0 %v2055_v15  ;;  %2095 = vmatprep.mubr.bf16.mxu0 %v2712_v1 }
 0x107   : > { %2643 = vmatmul.mubr.msk.bf16.vlgmr.msra.gmra.mxu1 %vm243_vm2, %v2490_v16  ;;  %2495 = vmatprep.subr.msk.bf16.mxu0 %vm247_vm1, %v2155_v17  ;;  %vm1301_vm1 = vcmask 396288  }
 0x108   : > { %2647 = vmatpush3.bf16.msra.mxu1 %v2166_v18  ;;  %2648 = vmatprep.mubr.msk.bf16.mxu1 %vm2711_vm0, %v2710_v0  ;;  %vm1299_vm0 = vmor %vm1298_vm14, %vm1297_vm13 }
 0x10d   : > { %2492 = vmatmul.mubr.msk.bf16.vlgmr.msra.gmra.mxu0 %vm243_vm2, %v2490_v16 }
 0x10e   : > { %2183 = vmatpush1.bf16.msra.mxu0 %v2160_v20  ;;  %2200 = vmatprep.mubr.bf16.mxu0 %v2712_v1 }
 0x10f   : > { %2649 = vmatmul.mubr.msk.bf16.vlgmr.msra.gmra.mxu1 %vm243_vm2, %v2494_v21 }
 0x115   : > { %2496 = vmatmul.mubr.msk.bf16.vlgmr.msra.gmra.mxu0 %vm243_vm2, %v2494_v21  ;;  %v1189_v21 = vlaneseq }
 0x147   : > { %v332_v22 = vpop.f32.mrf.mxu1 }
 0x149   : > { %v2548_v23 = vpop.f32.mrf.mxu1 }
 0x14b   : > { %v335_v24 = vpop.f32.mrf.mxu1 }
 0x14d   : > { %v291_v25 = vpop.f32.mrf.mxu0  ;;  %v2549_v0 = vpop.f32.mrf.mxu1 }
 0x14f   : > { %v293_v26 = vpop.f32.mrf.mxu0  ;;  %v425_v27 = vpop.f32.mrf.mxu1 }
 0x150   : > { %v426_v8 = vadd.f32 %v425_v27, %v332_v22 }
 0x151   : > { %v295_v28 = vpop.f32.mrf.mxu0  ;;  %v2554_v29 = vpop.f32.mrf.mxu1 }
 0x153   : > { %v296_v7 = vpop.f32.mrf.mxu0  ;;  %v428_v30 = vpop.f32.mrf.mxu1 }
 0x155   : > { %v384_v31 = vpop.f32.mrf.mxu0  ;;  %v2555_v5 = vpop.f32.mrf.mxu1 }
 0x156   : > { %v385_v17 = vadd.f32 %v384_v31, %v291_v25 }
 0x157   : > { %v386_v32 = vpop.f32.mrf.mxu0  ;;  %v529_v6 = vpop.f32.mrf.mxu1 }
 0x158   : > { %v537_v11 = vadd.f32 %v529_v6, %v426_v8  ;;  %v387_v23 = vadd.f32 %v386_v32, %v293_v26  ;;  %v1190_v6 = vshrl.u32 %v1189_v21, 7 }
 0x159   : > { %v388_v33 = vpop.f32.mrf.mxu0  ;;  %v2560_v34 = vpop.f32.mrf.mxu1 }
 0x15a   : > { %v1199_v32 = vsub.s32 2, %v1190_v6 }
 0x15b   : > { %v389_v35 = vpop.f32.mrf.mxu0  ;;  %v532_v36 = vpop.f32.mrf.mxu1 }
 0x15d   : > { %v488_v37 = vpop.f32.mrf.mxu0  ;;  %v2561_v38 = vpop.f32.mrf.mxu1 }
 0x15e   : > { %v535_v24 = vadd.f32 %v488_v37, %v385_v17 }
 0x15f   : > { %v490_v39 = vpop.f32.mrf.mxu0  ;;  %v636_v40 = vpop.f32.mrf.mxu1 }
 0x160   : > { %v644_v14 = vadd.f32 %v636_v40, %v537_v11  ;;  %v536_v7 = vadd.f32 %v490_v39, %v387_v23  ;;  %v213_v39 = vld [vmem:[%s3243_s3] sm:$0x7] }
 0x161   : > { %v492_v41 = vpop.f32.mrf.mxu0  ;;  %v2566_v42 = vpop.f32.mrf.mxu1 }
 0x163   : > { %v493_v43 = vpop.f32.mrf.mxu0  ;;  %v639_v44 = vpop.f32.mrf.mxu1 }
 0x164   : > { %v3138_v43 = vpop.permute.xlu0 %1182  ;;  %v1191_v44 = vsub.s32 0, %v1190_v6 }
 0x165   : > { %v595_v45 = vpop.f32.mrf.mxu0  ;;  %v2567_v46 = vpop.f32.mrf.mxu1 }
 0x166   : > { %v642_v22 = vadd.f32 %v595_v45, %v535_v24 }
 0x167   : > { %v597_v47 = vpop.f32.mrf.mxu0  ;;  %v743_v48 = vpop.f32.mrf.mxu1 }
 0x168   : > { %v751_v18 = vadd.f32 %v743_v48, %v644_v14  ;;  %v643_v33 = vadd.f32 %v597_v47, %v536_v7 }
 0x169   : > { %v599_v49 = vpop.f32.mrf.mxu0  ;;  %v2572_v50 = vpop.f32.mrf.mxu1 }
 0x16a   : > { %v1195_v49 = vsub.s32 1, %v1190_v6 }
 0x16b   : > { %v600_v51 = vpop.f32.mrf.mxu0  ;;  %v746_v52 = vpop.f32.mrf.mxu1 }
 0x16d   : > { %v702_v53 = vpop.f32.mrf.mxu0  ;;  %v2573_v54 = vpop.f32.mrf.mxu1 }
 0x16e   : > { %v749_v34 = vadd.f32 %v702_v53, %v642_v22  ;;  %v3144_v53 = vrot.slane %v213_v39, %v1199_v32 }
 0x16f   : > { %v704_v55 = vpop.f32.mrf.mxu0  ;;  %v850_v56 = vpop.f32.mrf.mxu1 }
 0x170   : > { %v858_v0 = vadd.f32 %v850_v56, %v751_v18  ;;  %v750_v31 = vadd.f32 %v704_v55, %v643_v33  ;;  %v3146_v56 = vrot.slane %v213_v39, %v1191_v44 }
 0x171   : > { %v706_v57 = vpop.f32.mrf.mxu0  ;;  %v2578_v58 = vpop.f32.mrf.mxu1 }
 0x173   : > { %v707_v59 = vpop.f32.mrf.mxu0  ;;  %v853_v60 = vpop.f32.mrf.mxu1 }
 0x175   : > { %v809_v61 = vpop.f32.mrf.mxu0  ;;  %v2579_v62 = vpop.f32.mrf.mxu1 }
 0x176   : > { %v856_v38 = vadd.f32 %v809_v61, %v749_v34  ;;  %v3151_v61 = vrot.slane %v213_v39, %v1195_v49 }
 0x177   : > { %v811_v63 = vpop.f32.mrf.mxu0  ;;  %v957_v2 = vpop.f32.mrf.mxu1 }
 0x178   : > { %v965_v27 = vadd.f32 %v957_v2, %v858_v0  ;;  %v857_v37 = vadd.f32 %v811_v63, %v750_v31 }
 0x179   : > { %v813_v3 = vpop.f32.mrf.mxu0  ;;  %v2584_v4 = vpop.f32.mrf.mxu1 }
 0x17b   : > { %v814_v9 = vpop.f32.mrf.mxu0  ;;  %v960_v10 = vpop.f32.mrf.mxu1 }
 0x17d   : > { %v916_v12 = vpop.f32.mrf.mxu0  ;;  %v2585_v13 = vpop.f32.mrf.mxu1 }
 0x17e   : > { %v963_v42 = vadd.f32 %v916_v12, %v856_v38 }
 0x17f   : > { %v918_v15 = vpop.f32.mrf.mxu0  ;;  %v1064_v16 = vpop.f32.mrf.mxu1 }
 0x180   : > { %v1072_v35 = vadd.f32 %v1064_v16, %v965_v27  ;;  %v964_v47 = vadd.f32 %v918_v15, %v857_v37 }
 0x181   : > { %v920_v19 = vpop.f32.mrf.mxu0  ;;  %v2590_v20 = vpop.f32.mrf.mxu1 }
 0x183   : > { %v921_v28 = vpop.f32.mrf.mxu0  ;;  %v1067_v29 = vpop.f32.mrf.mxu1 }
 0x185   : > { %v1023_v30 = vpop.f32.mrf.mxu0  ;;  %v2591_v5 = vpop.f32.mrf.mxu1 }
 0x186   : > { %v1070_v48 = vadd.f32 %v1023_v30, %v963_v42 }
 0x187   : > { %v1025_v36 = vpop.f32.mrf.mxu0  ;;  %v1171_v25 = vpop.f32.mrf.mxu1 }
 0x188   : > { %v1179_v40 = vadd.f32 %v1171_v25, %v1072_v35  ;;  %v1071_v54 = vadd.f32 %v1025_v36, %v964_v47 }
 0x189   : > { %v1027_v41 = vpop.f32.mrf.mxu0  ;;  %v2596_v26 = vpop.f32.mrf.mxu1 }
 0x18a   : > { %v1187_v52 = vadd.f32 %v3138_v43, %v1179_v40 }
 0x18b   : > { %v1028_v45 = vpop.f32.mrf.mxu0  ;;  %v1174_v46 = vpop.f32.mrf.mxu1 }
 0x18c   : > { %v3154_v2 = vmul.f32 %v3144_v53, %v1187_v52 }
 0x18d   : > { %v1130_v50 = vpop.f32.mrf.mxu0  ;;  %v2597_v51 = vpop.f32.mrf.mxu1 }
 0x18e   : > { %v1177_v55 = vadd.f32 %v1130_v50, %v1070_v48  ;;  %v1224_v13 = vmul.f32 %v3154_v2, %v3154_v2  ;;  %v1209_v19 = vsel %vm1208_vm11, %v3154_v2, 0.0 }
 0x18f   : > { %v1132_v57 = vpop.f32.mrf.mxu0  ;;  %v3148_v58 = vpop.f32.mrf.mxu1 }
 0x190   : > { %v1185_v59 = vadd.f32 %v3138_v43, %v1177_v55  ;;  %v1178_v60 = vadd.f32 %v1132_v57, %v1071_v54  ;;  %v1226_v0 = vsel %vm1208_vm11, %v1224_v13, 0.0 }
 0x191   : > { %v1134_v62 = vpop.f32.mrf.mxu0  ;;  %v2602_v63 = vpop.f32.mrf.mxu1 }
 0x192   : > { %v3157_v3 = vmul.f32 %v3146_v56, %v1185_v59  ;;  %v1186_v4 = vadd.f32 %v3138_v43, %v1178_v60 }
 0x193   : > { %v1135_v8 = vpop.f32.mrf.mxu0  ;;  %v1421_v9 = vpop.f32.mrf.mxu1 }
 0x194   : > { %v3161_v10 = vmul.f32 %v3151_v61, %v1186_v4  ;;  %v1222_v15 = vmul.f32 %v3157_v3, %v3157_v3 }
 0x195   : > { %v3163_v11 = vpop.f32.mrf.mxu0  ;;  %v2603_v12 = vpop.f32.mrf.mxu1 }
 0x196   : > { %v1207_v14 = vadd.f32 %v3161_v10, %v3157_v3  ;;  %v1223_v16 = vmul.f32 %v3161_v10, %v3161_v10 }
 0x197   : > { %v3173_v17 = vpop.f32.mrf.mxu0  ;;  %v1511_v18 = vpop.f32.mrf.mxu1 }
 0x198   : > { %v1210_v20 = vadd.f32 %v1209_v19, %v1207_v14  ;;  %v1225_v21 = vadd.f32 %v1223_v16, %v1222_v15  ;;  %v1512_v12 = vadd.f32 %v1511_v18, %v3148_v58 }
 0x199   : > { %v1381_v23 = vpop.f32.mrf.mxu0  ;;  %v2608_v24 = vpop.f32.mrf.mxu1 }
 0x19a   : > { %1211 = vadd.xlane.f32.xlu1 %v1210_v20  ;;  %v1227_v28 = vadd.f32 %v1226_v0, %v1225_v21 }
 0x19b   : > { %v1382_v29 = vpop.f32.mrf.mxu0  ;;  %v1514_v7 = vpop.f32.mrf.mxu1 }
 0x19c   : > { %1228 = vadd.xlane.f32.xlu0 %v1227_v28 }
 0x19d   : > { %v1470_v22 = vpop.f32.mrf.mxu0  ;;  %v2609_v27 = vpop.f32.mrf.mxu1 }
 0x19e   : > { %v1471_v24 = vadd.f32 %v1470_v22, %v3163_v11 }
 0x19f   : > { %v1472_v30 = vpop.f32.mrf.mxu0  ;;  %v1613_v5 = vpop.f32.mrf.mxu1 }
 0x1a0   : > { %v1621_v15 = vadd.f32 %v1613_v5, %v1512_v12  ;;  %v1473_v7 = vadd.f32 %v1472_v30, %v3173_v17 }
 0x1a1   : > { %v1474_v6 = vpop.f32.mrf.mxu0  ;;  %v2614_v33 = vpop.f32.mrf.mxu1 }
 0x1a3   : > { %v1475_v34 = vpop.f32.mrf.mxu0  ;;  %v1616_v35 = vpop.f32.mrf.mxu1 }
 0x1a5   : > { %v1572_v36 = vpop.f32.mrf.mxu0  ;;  %v2615_v25 = vpop.f32.mrf.mxu1 }
 0x1a6   : > { %v1619_v27 = vadd.f32 %v1572_v36, %v1471_v24 }
 0x1a7   : > { %v1574_v31 = vpop.f32.mrf.mxu0  ;;  %v1718_v38 = vpop.f32.mrf.mxu1 }
 0x1a8   : > { %v1726_v20 = vadd.f32 %v1718_v38, %v1621_v15  ;;  %v1620_v58 = vadd.f32 %v1574_v31, %v1473_v7 }
 0x1a9   : > { %v1576_v40 = vpop.f32.mrf.mxu0  ;;  %v2620_v41 = vpop.f32.mrf.mxu1 }
 0x1ab   : > { %v1577_v26 = vpop.f32.mrf.mxu0  ;;  %v1721_v32 = vpop.f32.mrf.mxu1 }
 0x1ad   : > { %v1677_v37 = vpop.f32.mrf.mxu0  ;;  %v2621_v42 = vpop.f32.mrf.mxu1 }
 0x1ae   : > { %v1724_v18 = vadd.f32 %v1677_v37, %v1619_v27 }
 0x1af   : > { %v1679_v39 = vpop.f32.mrf.mxu0  ;;  %v1823_v44 = vpop.f32.mrf.mxu1 }
 0x1b0   : > { %v1831_v0 = vadd.f32 %v1823_v44, %v1726_v20  ;;  %v1725_v40 = vadd.f32 %v1679_v39, %v1620_v58 }
 0x1b1   : > { %v1681_v45 = vpop.f32.mrf.mxu0  ;;  %v2626_v46 = vpop.f32.mrf.mxu1 }
 0x1b3   : > { %v1682_v47 = vpop.f32.mrf.mxu0  ;;  %v1826_v48 = vpop.f32.mrf.mxu1 }
 0x1b5   : > { %v1782_v49 = vpop.f32.mrf.mxu0  ;;  %v2627_v50 = vpop.f32.mrf.mxu1 }
 0x1b6   : > { %v1829_v38 = vadd.f32 %v1782_v49, %v1724_v18 }
 0x1b7   : > { %v1784_v51 = vpop.f32.mrf.mxu0  ;;  %v1928_v52 = vpop.f32.mrf.mxu1 }
 0x1b8   : > { %v1936_v6 = vadd.f32 %v1928_v52, %v1831_v0  ;;  %v1830_v11 = vadd.f32 %v1784_v51, %v1725_v40 }
 0x1b9   : > { %v1786_v54 = vpop.f32.mrf.mxu0  ;;  %v2632_v55 = vpop.f32.mrf.mxu1 }
 0x1bb   : > { %v1787_v57 = vpop.f32.mrf.mxu0  ;;  %v1931_v59 = vpop.f32.mrf.mxu1 }
 0x1bd   : > { %v1887_v60 = vpop.f32.mrf.mxu0  ;;  %v2633_v62 = vpop.f32.mrf.mxu1 }
 0x1be   : > { %v1934_v22 = vadd.f32 %v1887_v60, %v1829_v38 }
 0x1bf   : > { %v1889_v63 = vpop.f32.mrf.mxu0  ;;  %v2033_v4 = vpop.f32.mrf.mxu1 }
 0x1c0   : > { %v2041_v35 = vadd.f32 %v2033_v4, %v1936_v6  ;;  %v1935_v17 = vadd.f32 %v1889_v63, %v1830_v11 }
 0x1c1   : > { %v1891_v8 = vpop.f32.mrf.mxu0  ;;  %v2638_v9 = vpop.f32.mrf.mxu1 }
 0x1c3   : > { %v1892_v13 = vpop.f32.mrf.mxu0  ;;  %v2036_v14 = vpop.f32.mrf.mxu1 }
 0x1c5   : > { %v1992_v16 = vpop.f32.mrf.mxu0  ;;  %v2639_v19 = vpop.f32.mrf.mxu1 }
 0x1c6   : > { %v2039_v30 = vadd.f32 %v1992_v16, %v1934_v22  ;;  %v2721_v19 = vmov 1  }
 0x1c7   : > { %v1994_v21 = vpop.f32.mrf.mxu0  ;;  %v2138_v23 = vpop.f32.mrf.mxu1  ;;  %2686 = vset.pattern.permute.xlu1 %v2721_v19 }
 0x1c8   : > { %v2146_v41 = vadd.f32 %v2138_v23, %v2041_v35  ;;  %v2040_v47 = vadd.f32 %v1994_v21, %v1935_v17 }
 0x1c9   : > { %v1996_v28 = vpop.f32.mrf.mxu0  ;;  %v2644_v29 = vpop.f32.mrf.mxu1 }
 0x1cb   : > { %v1997_v33 = vpop.f32.mrf.mxu0  ;;  %v2141_v34 = vpop.f32.mrf.mxu1 }
 0x1cd   : > { %v2097_v5 = vpop.f32.mrf.mxu0  ;;  %v2645_v25 = vpop.f32.mrf.mxu1 }
 0x1ce   : > { %v2144_v31 = vadd.f32 %v2097_v5, %v2039_v30 }
 0x1cf   : > { %v2099_v26 = vpop.f32.mrf.mxu0  ;;  %v2243_v32 = vpop.f32.mrf.mxu1 }
 0x1d0   : > { %v2251_v42 = vadd.f32 %v2243_v32, %v2146_v41  ;;  %v2145_v39 = vadd.f32 %v2099_v26, %v2040_v47  ;;  %v2722_v47 = vmov 2  }
 0x1d1   : > { %v2101_v44 = vpop.f32.mrf.mxu0  ;;  %v2650_v45 = vpop.f32.mrf.mxu1  ;;  %2687 = vset.pattern.permute.xlu0 %v2722_v47 }
 0x1d2   : > { %v2254_v37 = vadd.f32 %v2251_v42, %v3138_v43 }
 0x1d3   : > { %v2102_v36 = vpop.f32.mrf.mxu0  ;;  %v2246_v46 = vpop.f32.mrf.mxu1 }
 0x1d4   : > { %v3184_v55 = vmul.f32 %v2254_v37, %v3144_v53 }
 0x1d5   : > { %v2202_v48 = vpop.f32.mrf.mxu0  ;;  %v2651_v50 = vpop.f32.mrf.mxu1 }
 0x1d6   : > { %v2249_v49 = vadd.f32 %v2202_v48, %v2144_v31  ;;  %v2274_v4 = vmul.f32 %v3184_v55, %v3184_v55  ;;  %v2259_v13 = vsel %vm1208_vm11, %v3184_v55, 0.0 }
 0x1d7   : > { %v2204_v52 = vpop.f32.mrf.mxu0 }
 0x1d8   : > { %v2252_v54 = vadd.f32 %v2249_v49, %v3138_v43  ;;  %v2250_v51 = vadd.f32 %v2204_v52, %v2145_v39  ;;  %v2276_v15 = vsel %vm1208_vm11, %v2274_v4, 0.0  ;;  %v2701_v52 = vld [vmem:[%s3242_s2] sm:$0xff] }
 0x1d9   : > { %v2206_v57 = vpop.f32.mrf.mxu0 }
 0x1da   : > { %v3187_v59 = vmul.f32 %v2252_v54, %v3146_v56  ;;  %v2253_v60 = vadd.f32 %v2250_v51, %v3138_v43 }
 0x1db   : > { %v2207_v62 = vpop.f32.mrf.mxu0 }
 0x1dc   : > { %v3191_v63 = vmul.f32 %v2253_v60, %v3151_v61  ;;  %v2272_v9 = vmul.f32 %v3187_v59, %v3187_v59 }
 0x1de   : > { %v2258_v8 = vadd.f32 %v3191_v63, %v3187_v59  ;;  %v2273_v12 = vmul.f32 %v3191_v63, %v3191_v63 }
 0x1e0   : > { %v2260_v43 = vadd.f32 %v2259_v13, %v2258_v8  ;;  %v2275_v14 = vadd.f32 %v2273_v12, %v2272_v9 }
 0x1e2   : > { %2261 = vadd.xlane.f32.xlu1 %v2260_v43  ;;  %v2277_v16 = vadd.f32 %v2276_v15, %v2275_v14 }
 0x1e4   : > { %2278 = vadd.xlane.f32.xlu0 %v2277_v16 }
 0x223   : > { %v1212_v20 = vpop.xlane.xlu1 %1211 }
 0x224   : > { %v1213_v21 = vrot.slane %v1212_v20, 4 }
 0x225   : > { %v1229_v23 = vpop.xlane.xlu0 %1228 }
 0x226   : > { %v1214_v24 = vadd.f32 %v1213_v21, %v1212_v20  ;;  %v1230_v0 = vrot.slane %v1229_v23, 4 }
 0x228   : > { %v1215_v28 = vrot.slane %v1214_v24, 2  ;;  %v1231_v29 = vadd.f32 %v1230_v0, %v1229_v23 }
 0x22a   : > { %v1232_v7 = vrot.slane %v1231_v29, 2  ;;  %v1216_v27 = vadd.f32 %v1215_v28, %v1214_v24 }
 0x22c   : > { %v1217_v6 = vrot.slane %v1216_v27, 1  ;;  %v1233_v33 = vadd.f32 %v1232_v7, %v1231_v29 }
 0x22e   : > { %v1218_v34 = vadd.f32 %v1217_v6, %v1216_v27  ;;  %v1234_v58 = vrot.slane %v1233_v33, 1 }
 0x230   : > { %2654 = vpush %v1218_v34  ;;  %v1235_v18 = vadd.f32 %v1234_v58, %v1233_v33 }
 0x232   : > { %2656 = vpush %v1235_v18 }
 0x261   : > { %s2655_s22 = spop %2654 }
 0x262   : > { %v1220_v35 = vstv %s2655_s22 }
 0x263   : > { %v1221_v5 = vmul.f32 0.00048828125, %v1220_v35  ;;  %s2657_s23 = spop %2656 }
 0x264   : > { %v1237_v25 = vstv %s2657_s23 }
 0x265   : > { %v1239_v40 = vmul.f32 %v1221_v5, %v1221_v5  ;;  %v1238_v38 = vmul.f32 0.00048828125, %v1237_v25 }
 0x267   : > { %v1240_v41 = vsub.f32 %v1238_v38, %v1239_v40 }
 0x269   : > { %v1241_v26 = vmax.f32 %v1240_v41, 0.0 }
 0x26b   : > { %v1242_v32 = vadd.f32 1e-05, %v1241_v26  ;;  %v2262_v11 = vpop.xlane.xlu1 %2261 }
 0x26c   : > { %v2263_v22 = vrot.slane %v2262_v11, 4 }
 0x26d   : > { %2697 = vrsqrt.f32 %v1242_v32  ;;  %v2279_v42 = vpop.xlane.xlu0 %2278 }
 0x26e   : > { %v2264_v44 = vadd.f32 %v2263_v22, %v2262_v11  ;;  %v2280_v45 = vrot.slane %v2279_v42, 4 }
 0x270   : > { %v2265_v17 = vrot.slane %v2264_v44, 2  ;;  %v2281_v30 = vadd.f32 %v2280_v45, %v2279_v42 }
 0x272   : > { %v2282_v36 = vrot.slane %v2281_v30, 2  ;;  %v2266_v46 = vadd.f32 %v2265_v17, %v2264_v44 }
 0x274   : > { %v2267_v31 = vrot.slane %v2266_v46, 1  ;;  %v2283_v37 = vadd.f32 %v2282_v36, %v2281_v30 }
 0x276   : > { %v2268_v48 = vadd.f32 %v2267_v31, %v2266_v46  ;;  %v2284_v50 = vrot.slane %v2283_v37, 1 }
 0x278   : > { %2658 = vpush %v2268_v48  ;;  %v2285_v39 = vadd.f32 %v2284_v50, %v2283_v37 }
 0x27a   : > { %v2698_v49 = vpop.eup %2697  ;;  %2660 = vpush %v2285_v39 }
 0x27b   : > { %v1244_v54 = vmul.f32 %v2701_v52, %v2698_v49 }
 0x27d   : > { %v1245_v51 = vmul.f32 %v1244_v54, %v1221_v5 }
 0x27f   : > { %1247 = vrot.lane.b32.xlu1 %v1245_v51, %s2723_s26 }
 0x283   : > { %1253 = vperm.xlu1 %2686, %v1244_v54  }
 0x2a9   : > { %s2659_s27 = spop %2658 }
 0x2aa   : > { %v2270_v57 = vstv %s2659_s27 }
 0x2ab   : > { %v2271_v60 = vmul.f32 0.00048828125, %v2270_v57  ;;  %s2661_s28 = spop %2660 }
 0x2ac   : > { %v2287_v62 = vstv %s2661_s28 }
 0x2ad   : > { %v2289_v4 = vmul.f32 %v2271_v60, %v2271_v60  ;;  %v2288_v8 = vmul.f32 0.00048828125, %v2287_v62 }
 0x2af   : > { %v2290_v9 = vsub.f32 %v2288_v8, %v2289_v4 }
 0x2b1   : > { %v2291_v12 = vmax.f32 %v2290_v9, 0.0 }
 0x2b3   : > { %v2292_v13 = vadd.f32 1e-05, %v2291_v12 }
 0x2b5   : > { %2699 = vrsqrt.f32 %v2292_v13 }
 0x2c2   : > { %v2700_v43 = vpop.eup %2699 }
 0x2c3   : > { %v2294_v14 = vmul.f32 %v2701_v52, %v2700_v43 }
 0x2c5   : > { %2303 = vperm.xlu1 %2686, %v2294_v14   ;;  %v2295_v15 = vmul.f32 %v2294_v14, %v2271_v60 }
 0x2c7   : > { %2297 = vrot.lane.b32.xlu0 %v2295_v15, %s2723_s26 }
 0x2c9   : > { %2688 = vset.pattern.permute.xlu1 %v2722_v47 }
 0x2f1   : > { %v1248_v16 = vpop.permute.xlu1 %1247 }
 0x2f2   : > { %v1250_v19 = vsub.f32 %v2701_v52, %v1248_v16 }
 0x2f4   : > { %1261 = vperm.xlu0 %2687, %v1250_v19  }
 0x2fe   : > { %v1254_v23 = vpop.permute.xlu1 %1253 }
 0x2ff   : > { %v1256_v24 = vmul.f32 %v1254_v23, %v3157_v3  ;;  %v1257_v0 = vmul.f32 %v1254_v23, %v3161_v10  ;;  %v1258_v28 = vmul.f32 %v1254_v23, %v3154_v2 }
 0x339   : > { %v2298_v20 = vpop.permute.xlu0 %2297 }
 0x33a   : > { %v2300_v21 = vsub.f32 %v2701_v52, %v2298_v20 }
 0x33c   : > { %2311 = vperm.xlu1 %2688, %v2300_v21  }
 0x340   : > { %v2304_v38 = vpop.permute.xlu1 %2303 }
 0x341   : > { %v2306_v1 = vmul.f32 %v2304_v38, %v3187_v59  ;;  %v2307_v41 = vmul.f32 %v2304_v38, %v3191_v63  ;;  %v2308_v26 = vmul.f32 %v2304_v38, %v3184_v55 }
 0x36f   : > { %v1262_v29 = vpop.permute.xlu0 %1261 }
 0x370   : > { %v1264_v7 = vadd.f32 %v1262_v29, %v1256_v24  ;;  %v1265_v27 = vadd.f32 %v1262_v29, %v1257_v0  ;;  %v1266_v6 = vadd.f32 %v1262_v29, %v1258_v28 }
 0x372   : > { %v1267_v33 = vmul.f32 0.1, %v1264_v7  ;;  %v1268_v34 = vmul.f32 0.1, %v1265_v27  ;;  %v1269_v58 = vmul.f32 0.1, %v1266_v6 }
 0x374   : > { %v1270_v18 = vmax.f32 %v1264_v7, %v1267_v33  ;;  %v1271_v35 = vmax.f32 %v1265_v27, %v1268_v34  ;;  %v1272_v5 = vmax.f32 %v1266_v6, %v1269_v58 }
 0x376   : > { %v1273_v3 = vmul.f32 %v1270_v18, %v3146_v56  ;;  %v1274_v10 = vmul.f32 %v1271_v35, %v3151_v61  ;;  %v1275_v25 = vmul.f32 %v1272_v5, %v3144_v53 }
 0x378   : > { %v2504_v2 = vpack.c.bf16 %v1274_v10, %v1273_v3  ;;  %v2505_v40 = vpack.c.bf16 %v1275_v25, %v1275_v25 }
 0x37a   : > { %1287 = vrot.lane.b32.xlu1 %v2504_v2, %s2724_s17 }
 0x37e   : > { %1289 = vrot.lane.b32.xlu1 %v2505_v40, %s2724_s17 }
 0x3b7   : > { %v2312_v32 = vpop.permute.xlu1 %2311 }
 0x3b8   : > { %v2314_v11 = vadd.f32 %v2312_v32, %v2306_v1  ;;  %v2315_v22 = vadd.f32 %v2312_v32, %v2307_v41  ;;  %v2316_v42 = vadd.f32 %v2312_v32, %v2308_v26 }
 0x3ba   : > { %v2317_v44 = vmul.f32 0.1, %v2314_v11  ;;  %v2318_v45 = vmul.f32 0.1, %v2315_v22  ;;  %v2319_v17 = vmul.f32 0.1, %v2316_v42 }
 0x3bc   : > { %v2320_v30 = vmax.f32 %v2314_v11, %v2317_v44  ;;  %v2321_v36 = vmax.f32 %v2315_v22, %v2318_v45  ;;  %v2322_v46 = vmax.f32 %v2316_v42, %v2319_v17 }
 0x3be   : > { %v2323_v47 = vmul.f32 %v2320_v30, %v3146_v56  ;;  %v2324_v31 = vmul.f32 %v2321_v36, %v3151_v61  ;;  %v2325_v63 = vmul.f32 %v2322_v46, %v3144_v53 }
 0x3c0   : > { %v2506_v59 = vpack.c.bf16 %v2324_v31, %v2323_v47  ;;  %v2507_v55 = vpack.c.bf16 %v2325_v63, %v2325_v63 }
 0x3c2   : > { %2337 = vrot.lane.b32.xlu0 %v2506_v59, %s2724_s17 }
 0x3c6   : > { %2339 = vrot.lane.b32.xlu0 %v2507_v55, %s2724_s17 }
 0x3ec   : > { %v1288_v37 = vpop.permute.xlu1 %1287 }
 0x3ed   : > { %v1291_v48 = vrot.slane %v1288_v37, 4 }
 0x3ef   : > { %v1293_v50 = vsel %vm1292_vm15, %v1291_v48, %v1288_v37 }
 0x3f0   : > { %1300 = vst.msk [vmem:[%s3211_s6] sm:$0xff] %vm1299_vm0, %v1293_v50  ;;  %v1290_v56 = vpop.permute.xlu1 %1289 }
 0x3f1   : > { %v1294_v61 = vsel %vm1292_vm15, %v1291_v48, %v1290_v56 }
 0x3f2   : > { %1302 = vst.msk [vmem:[%s3211_s6 + $0x8] sm:$0xf] %vm1301_vm1, %v1294_v61 }
 0x434   : > { %v2338_v39 = vpop.permute.xlu0 %2337 }
 0x435   : > { %v2341_v49 = vrot.slane %v2338_v39, 4 }
 0x437   : > { %v2342_v53 = vsel %vm1292_vm15, %v2341_v49, %v2338_v39 }
 0x438   : > { %2500 = vst.msk [vmem:[%s3211_s6 + $0xc] sm:$0xff] %vm1299_vm0, %v2342_v53  ;;  %v2340_v52 = vpop.permute.xlu0 %2339 }
 0x439   : > { %v2343_v54 = vsel %vm1292_vm15, %v2341_v49, %v2340_v52 }
 0x43a   : > { %2501 = vst.msk [vmem:[%s3211_s6 + $0x14] sm:$0xf] %vm1301_vm1, %v2343_v54 }
 0x43b PF: > { %s14_s15 = sadd.s32 1, %s2708_s15  }
 0x43c   : > { %p11_p4 = scmp.ge.s32.totalorder %s14_s15, 6  }
 0x43e   :  { %13 = sbr.rel (!%p11_p4) target bundleno = 1 (0x1), region = 76 }

// kernel: cmp_forward.6
= control target key start
LH: loop header
LB: loop body
LE: loop exit
PB: predicated region body
PF: predicated region fallthrough
CT: control target
= control target key end

     0   :  { %s2749_s15 = smov 0   ;;  %s3247_s0 = inlined_call_operand.vmem [shape: bf16[8,8,324], index: 0, kind: input, shape index: {}]   ;;  %s3248_s1 = inlined_call_operand.vmem [shape: bf16[9,4,8], index: 1, kind: input, shape index: {}]   ;;  %s3249_s2 = inlined_call_operand.vmem [shape: f32[4,3], index: 2, kind: input, shape index: {}]   ;;  %s3250_s3 = inlined_call_operand.vmem [shape: f32[1,286], index: 3, kind: input, shape index: {}]   ;;  %s3251_s4 = inlined_call_operand.vmem [shape: bf16[8,4,324], index: 4, kind: output, shape index: {}]  }
   0x1 LB: > { %s2415_s16 = sadd.s32 4294967295, %s2706_s15   ;;  %p2419_p0 = scmp.ge.s32.totalorder %s2706_s15, 1  ;;  %s2706_s15 = sphi %s2749_s15, %s14_s15  }
   0x2   : > { %p164_p1 = scmp.lt.s32.totalorder %s2706_s15, 5 }
   0x4   : > { %p165_p2 = pnand %p2419_p0, %p164_p1 }
   0x5   : > { %s2420_s17 = sshll.u32 (!%p165_p2), %s2415_s16, 1  ;;  %s2711_s22 = smov (!%p165_p2), 127  }
   0x6   : > { %168 = sbr.rel (%p165_p2) target bundleno = 1087 (0x43f), region = 36  ;;  %p193_p3 = scmp.lt.s32.totalorder (!%p165_p2), %s2420_s17, 7 }
   0x7   : > { %s2712_s23 = smov (!%p165_p2), 126   ;;  %s2713_s24 = smov (!%p165_p2), 110  }
   0x8   : > { %s2714_s25 = smov (!%p165_p2), 109   ;;  %s2715_s26 = smov (!%p165_p2), 108  }
   0x9   : > { %s2716_s27 = smov (!%p165_p2), 92   ;;  %s2717_s28 = smov (!%p165_p2), 91  }
   0xa   : > { %s2718_s29 = smov (!%p165_p2), 90  }
   0xb   : > { %v2708_v0 = vmov 0.0   ;;  %vm2709_vm0 = vmmov 0   ;;  %s3253_s17 = smov (!%p193_p3, %s2420_s17), 7  ;;  %v2710_v1 = vmov 0   ;;  %vm242_vm1 = vcmask 1043456  }
   0xc   : > { %2543 = vmatprep.subr.bf16.mxu1 %v2708_v0  ;;  %2545 = vmatprep.mubr.msk.bf16.mxu1 %vm2709_vm0, %v2708_v0  ;;  %s2651_s18 = smul.u32 12, %s3253_s17  ;;  %v2424_v13 = vld [vmem:[%s3248_s1 + $0x2] sm:$0x3]  ;;  %vm238_vm2 = vcmask 64512   ;;  %vm235_vm3 = vcmask 1039360   ;;  %vm434_vm4 = vcmask 1031168  }
   0xd   : > { %284 = vmatprep.mubr.bf16.mxu0 %v2710_v1  ;;  %2685 = vset.pattern.permute.xlu0 %v2710_v1  ;;  %v218_v23 = vld [vmem:[%s3248_s1] sm:$0x3]  ;;  %vm541_vm5 = vcmask 900096   ;;  %v2434_v33 = vld [vmem:[%s3248_s1 + $0x4] sm:$0x3]  ;;  %vm648_vm6 = vcmask 891904  }
   0xe   : > { %s2768_s21 = scalar_lea.vmem %s3247_s0, %s2651_s18  ;;  %v214_v27 = vld [vmem:[%s3249_s2] sm:$0xf]  ;;  %v2438_v41 = vld [vmem:[%s3248_s1 + $0x6] sm:$0x3]  ;;  %vm755_vm7 = vcmask 883712   ;;  %vm862_vm8 = vcmask 752640  }
   0xf   : > { %v2771_v2 = vld [vmem:[%s2768_s21 + $0x8] ss:$0 sps:$4 sm:$0xff]   ;;  %v216_v3 = vld [vmem:[%s2768_s21] sm:$0xff]  ;;  %v2463_v6 = vld [vmem:[%s2768_s21 + $0xc] sm:$0xff]  ;;  %vm969_vm9 = vcmask 744448   ;;  %vm1076_vm10 = vcmask 736256  }
  0x10   : > { %v2774_v4 = vcombine.low %v216_v3, %v216_v3  ;;  %233 = vrot.lane.b32.xlu1 %v2771_v2, %s2711_s22  ;;  %v2780_v5 = vcombine.high %v216_v3, %v216_v3  ;;  %v2825_v7 = vcombine.high %v2463_v6, %v2463_v6  ;;  %v2829_v8 = vcombine.low %v2463_v6, %v2463_v6  ;;  %v2836_v9 = vld [vmem:[%s2768_s21 + $0x14] ss:$0 sps:$4 sm:$0xff]   ;;  %v2442_v49 = vld [vmem:[%s3248_s1 + $0x8] sm:$0x3]  ;;  %v2446_v57 = vld [vmem:[%s3248_s1 + $0xa] sm:$0x3] }
  0x11   : > { %v343_v14 = vsel %vm242_vm1, %v2771_v2, 0  ;;  %v2450_v3 = vld [vmem:[%s3248_s1 + $0xc] sm:$0x3]  ;;  %vm1205_vm11 = vcmask 240640   ;;  %vm207_vm12 = vcmask 1041408   ;;  %vm208_vm13 = vcmask 1043458  }
  0x12   : > { %229 = vrot.lane.b32.xlu0 %v2774_v4, %s2711_s22  ;;  %v337_v21 = vsel %vm242_vm1, %v2774_v4, 0  ;;  %vm210_vm14 = vcmask 553988   ;;  %vm209_vm15 = vmor %vm208_vm13, %vm207_vm12 }
  0x14   : > { %428 = vrot.lane.b32.xlu1 %v2774_v4, %s2712_s23 }
  0x16   : > { %231 = vrot.lane.b32.xlu0 %v2780_v5, %s2711_s22 }
  0x18   : > { %432 = vrot.lane.b32.xlu1 %v2771_v2, %s2712_s23 }
  0x1a   : > { %430 = vrot.lane.b32.xlu0 %v2780_v5, %s2712_s23 }
  0x1c   : > { %537 = vrot.lane.b32.xlu1 %v2780_v5, %s2713_s24 }
  0x1e   : > { %535 = vrot.lane.b32.xlu0 %v2774_v4, %s2713_s24 }
  0x20   : > { %642 = vrot.lane.b32.xlu1 %v2774_v4, %s2714_s25 }
  0x22   : > { %539 = vrot.lane.b32.xlu0 %v2771_v2, %s2713_s24 }
  0x24   : > { %646 = vrot.lane.b32.xlu1 %v2771_v2, %s2714_s25 }
  0x26   : > { %644 = vrot.lane.b32.xlu0 %v2780_v5, %s2714_s25 }
  0x28   : > { %751 = vrot.lane.b32.xlu1 %v2780_v5, %s2715_s26 }
  0x2a   : > { %749 = vrot.lane.b32.xlu0 %v2774_v4, %s2715_s26 }
  0x2c   : > { %856 = vrot.lane.b32.xlu1 %v2774_v4, %s2716_s27 }
  0x2e   : > { %753 = vrot.lane.b32.xlu0 %v2771_v2, %s2715_s26 }
  0x30   : > { %860 = vrot.lane.b32.xlu1 %v2771_v2, %s2716_s27 }
  0x32   : > { %858 = vrot.lane.b32.xlu0 %v2780_v5, %s2716_s27 }
  0x34   : > { %965 = vrot.lane.b32.xlu1 %v2780_v5, %s2717_s28 }
  0x36   : > { %963 = vrot.lane.b32.xlu0 %v2774_v4, %s2717_s28 }
  0x38   : > { %1070 = vrot.lane.b32.xlu1 %v2774_v4, %s2718_s29 }
  0x3a   : > { %967 = vrot.lane.b32.xlu0 %v2771_v2, %s2717_s28 }
  0x3c   : > { %1074 = vrot.lane.b32.xlu1 %v2771_v2, %s2718_s29 }
  0x3e   : > { %1072 = vrot.lane.b32.xlu0 %v2780_v5, %s2718_s29 }
  0x40   : > { %1323 = vrot.lane.b32.xlu1 %v2825_v7, %s2711_s22 }
  0x42   : > { %1321 = vrot.lane.b32.xlu0 %v2829_v8, %s2711_s22 }
  0x44   : > { %1516 = vrot.lane.b32.xlu1 %v2829_v8, %s2712_s23 }
  0x46   : > { %1325 = vrot.lane.b32.xlu0 %v2836_v9, %s2711_s22 }
  0x48   : > { %1520 = vrot.lane.b32.xlu1 %v2836_v9, %s2712_s23 }
  0x4a   : > { %1518 = vrot.lane.b32.xlu0 %v2825_v7, %s2712_s23 }
  0x4c   : > { %1623 = vrot.lane.b32.xlu1 %v2825_v7, %s2713_s24 }
  0x4e   : > { %1621 = vrot.lane.b32.xlu0 %v2829_v8, %s2713_s24 }
  0x50   : > { %1726 = vrot.lane.b32.xlu1 %v2829_v8, %s2714_s25 }
  0x52   : > { %1625 = vrot.lane.b32.xlu0 %v2836_v9, %s2713_s24 }
  0x54   : > { %1730 = vrot.lane.b32.xlu1 %v2836_v9, %s2714_s25 }
  0x56   : > { %1728 = vrot.lane.b32.xlu0 %v2825_v7, %s2714_s25 }
  0x58   : > { %1833 = vrot.lane.b32.xlu1 %v2825_v7, %s2715_s26 }
  0x5a   : > { %1831 = vrot.lane.b32.xlu0 %v2829_v8, %s2715_s26 }
  0x5c   : > { %1936 = vrot.lane.b32.xlu1 %v2829_v8, %s2716_s27 }
  0x5e   : > { %1835 = vrot.lane.b32.xlu0 %v2836_v9, %s2715_s26  ;;  %s2721_s26 = smov 1  }
  0x60   : > { %1940 = vrot.lane.b32.xlu1 %v2836_v9, %s2716_s27 }
  0x62   : > { %1938 = vrot.lane.b32.xlu0 %v2825_v7, %s2716_s27 }
  0x64   : > { %2043 = vrot.lane.b32.xlu1 %v2825_v7, %s2717_s28 }
  0x66   : > { %2041 = vrot.lane.b32.xlu0 %v2829_v8, %s2717_s28 }
  0x68   : > { %2146 = vrot.lane.b32.xlu1 %v2829_v8, %s2718_s29 }
  0x6a   : > { %2045 = vrot.lane.b32.xlu0 %v2836_v9, %s2717_s28 }
  0x6c   : > { %2150 = vrot.lane.b32.xlu1 %v2836_v9, %s2718_s29 }
  0x6e   : > { %2148 = vrot.lane.b32.xlu0 %v2825_v7, %s2718_s29  ;;  %s2652_s29 = smul.u32 6, %s3253_s17  ;;  %s2723_s17 = smov 19  }
  0x70   : > { %s3222_s6 = scalar_lea.vmem %s3251_s4, %s2652_s29 }
  0x72   : > { %1177 = vperm.xlu0 %2685, %v214_v27   ;;  %v2465_v27 = vld [vmem:[%s3248_s1 + $0x2] sm:$0x3] }
  0x82   : > { %v234_v10 = vpop.permute.xlu1 %233 }
  0x83   : > { %v250_v12 = vsel %vm242_vm1, %v234_v10, 0 }
  0x84   : > { %v230_v11 = vpop.permute.xlu0 %229  ;;  %2544 = vmatpush3.bf16.msra.mxu1 %v250_v12 }
  0x85   : > { %2549 = vmatprep.subr.bf16.mxu1 %v2708_v0 }
  0x86   : > { %v429_v15 = vpop.permute.xlu1 %428 }
  0x87   : > { %2546 = vmatmul.mubr.msk.bf16.vlgmr.msra.gmra.mxu1 %vm238_vm2, %v2424_v13 }
  0x88   : > { %v232_v16 = vpop.permute.xlu0 %231  ;;  %2550 = vmatpush3.bf16.msra.mxu1 %v343_v14  ;;  %2551 = vmatprep.mubr.msk.bf16.mxu1 %vm2709_vm0, %v2708_v0  ;;  %v2454_v14 = vld [vmem:[%s3248_s1 + $0xe] sm:$0x3] }
  0x89   : > { %v237_v17 = vsel %vm235_vm3, %v232_v16, %v234_v10  ;;  %v236_v18 = vsel %vm235_vm3, %v230_v11, %v232_v16  ;;  %2555 = vmatprep.subr.bf16.mxu1 %v2708_v0 }
  0x8a   : > { %2428 = vmatprep.subr.msk.bf16.mxu0 %vm242_vm1, %v237_v17  ;;  %v244_v19 = vsel %vm242_vm1, %v236_v18, 0  ;;  %v433_v20 = vpop.permute.xlu1 %432 }
  0x8b   : > { %267 = vmatpush1.bf16.msra.mxu0 %v244_v19  ;;  %v447_v25 = vsel %vm242_vm1, %v433_v20, 0 }
  0x8c   : > { %2431 = vmatprep.subr.msk.bf16.mxu0 %vm242_vm1, %v2780_v5  ;;  %v431_v22 = vpop.permute.xlu0 %430 }
  0x8d   : > { %v436_v24 = vsel %vm434_vm4, %v431_v22, %v433_v20  ;;  %v435_v29 = vsel %vm434_vm4, %v429_v15, %v431_v22 }
  0x8e   : > { %2429 = vmatmul.mubr.msk.bf16.vlgmr.msra.gmra.mxu0 %vm238_vm2, %v2424_v13  ;;  %v538_v26 = vpop.permute.xlu1 %537  ;;  %v441_v30 = vsel %vm242_vm1, %v435_v29, 0 }
  0x8f   : > { %360 = vmatpush1.bf16.msra.mxu0 %v337_v21  ;;  %377 = vmatprep.mubr.bf16.mxu0 %v2710_v1  ;;  %v2458_v21 = vld [vmem:[%s3248_s1 + $0x10] sm:$0x3] }
  0x90   : > { %2552 = vmatmul.mubr.msk.bf16.vlgmr.msra.gmra.mxu1 %vm238_vm2, %v218_v23  ;;  %2435 = vmatprep.subr.msk.bf16.mxu0 %vm242_vm1, %v436_v24  ;;  %v536_v28 = vpop.permute.xlu0 %535 }
  0x91   : > { %2556 = vmatpush3.bf16.msra.mxu1 %v447_v25  ;;  %2557 = vmatprep.mubr.msk.bf16.mxu1 %vm2709_vm0, %v2708_v0  ;;  %v542_v37 = vsel %vm541_vm5, %v536_v28, %v538_v26  ;;  %v1432_v28 = vsel %vm242_vm1, %v2836_v9, 0 }
  0x92   : > { %2561 = vmatprep.subr.bf16.mxu1 %v2708_v0  ;;  %v643_v32 = vpop.permute.xlu1 %642  ;;  %v548_v39 = vsel %vm242_vm1, %v542_v37, 0 }
  0x94   : > { %v540_v31 = vpop.permute.xlu0 %539 }
  0x95   : > { %v543_v34 = vsel %vm541_vm5, %v538_v26, %v540_v31  ;;  %v554_v35 = vsel %vm242_vm1, %v540_v31, 0  ;;  %v1426_v31 = vsel %vm242_vm1, %v2829_v8, 0 }
  0x96   : > { %2432 = vmatmul.mubr.msk.bf16.vlgmr.msra.gmra.mxu0 %vm238_vm2, %v218_v23  ;;  %v647_v38 = vpop.permute.xlu1 %646 }
  0x97   : > { %464 = vmatpush1.bf16.msra.mxu0 %v441_v30  ;;  %481 = vmatprep.mubr.bf16.mxu0 %v2710_v1  ;;  %v661_v43 = vsel %vm242_vm1, %v647_v38, 0 }
  0x98   : > { %2558 = vmatmul.mubr.msk.bf16.vlgmr.msra.gmra.mxu1 %vm238_vm2, %v2434_v33  ;;  %2439 = vmatprep.subr.msk.bf16.mxu0 %vm242_vm1, %v543_v34  ;;  %v645_v36 = vpop.permute.xlu0 %644 }
  0x99   : > { %2562 = vmatpush3.bf16.msra.mxu1 %v554_v35  ;;  %2563 = vmatprep.mubr.msk.bf16.mxu1 %vm2709_vm0, %v2708_v0  ;;  %v650_v42 = vsel %vm648_vm6, %v645_v36, %v647_v38  ;;  %v649_v45 = vsel %vm648_vm6, %v643_v32, %v645_v36  ;;  %v1311_v32 = vld [vmem:[%s3248_s1] sm:$0x3]  ;;  %v2475_v38 = vld [vmem:[%s3248_s1 + $0x4] sm:$0x3] }
  0x9a   : > { %2567 = vmatprep.subr.bf16.mxu1 %v2708_v0  ;;  %v752_v44 = vpop.permute.xlu1 %751  ;;  %v655_v47 = vsel %vm242_vm1, %v649_v45, 0 }
  0x9c   : > { %v750_v40 = vpop.permute.xlu0 %749 }
  0x9d   : > { %v756_v53 = vsel %vm755_vm7, %v750_v40, %v752_v44 }
  0x9e   : > { %2436 = vmatmul.mubr.msk.bf16.vlgmr.msra.gmra.mxu0 %vm238_vm2, %v2434_v33  ;;  %v857_v48 = vpop.permute.xlu1 %856  ;;  %v762_v55 = vsel %vm242_vm1, %v756_v53, 0 }
  0x9f   : > { %571 = vmatpush1.bf16.msra.mxu0 %v548_v39  ;;  %588 = vmatprep.mubr.bf16.mxu0 %v2710_v1 }
  0xa0   : > { %2564 = vmatmul.mubr.msk.bf16.vlgmr.msra.gmra.mxu1 %vm238_vm2, %v2438_v41  ;;  %2443 = vmatprep.subr.msk.bf16.mxu0 %vm242_vm1, %v650_v42  ;;  %v754_v46 = vpop.permute.xlu0 %753 }
  0xa1   : > { %2568 = vmatpush3.bf16.msra.mxu1 %v661_v43  ;;  %2569 = vmatprep.mubr.msk.bf16.mxu1 %vm2709_vm0, %v2708_v0  ;;  %v757_v50 = vsel %vm755_vm7, %v752_v44, %v754_v46  ;;  %v768_v51 = vsel %vm242_vm1, %v754_v46, 0  ;;  %v2479_v46 = vld [vmem:[%s3248_s1 + $0x6] sm:$0x3] }
  0xa2   : > { %2573 = vmatprep.subr.bf16.mxu1 %v2708_v0  ;;  %v861_v54 = vpop.permute.xlu1 %860 }
  0xa3   : > { %v875_v59 = vsel %vm242_vm1, %v861_v54, 0 }
  0xa4   : > { %v859_v52 = vpop.permute.xlu0 %858 }
  0xa5   : > { %v864_v58 = vsel %vm862_vm8, %v859_v52, %v861_v54  ;;  %v863_v61 = vsel %vm862_vm8, %v857_v48, %v859_v52  ;;  %v2483_v54 = vld [vmem:[%s3248_s1 + $0x8] sm:$0x3] }
  0xa6   : > { %2440 = vmatmul.mubr.msk.bf16.vlgmr.msra.gmra.mxu0 %vm238_vm2, %v2438_v41  ;;  %v966_v60 = vpop.permute.xlu1 %965  ;;  %v869_v63 = vsel %vm242_vm1, %v863_v61, 0 }
  0xa7   : > { %678 = vmatpush1.bf16.msra.mxu0 %v655_v47  ;;  %695 = vmatprep.mubr.bf16.mxu0 %v2710_v1 }
  0xa8   : > { %2570 = vmatmul.mubr.msk.bf16.vlgmr.msra.gmra.mxu1 %vm238_vm2, %v2442_v49  ;;  %2447 = vmatprep.subr.msk.bf16.mxu0 %vm242_vm1, %v757_v50  ;;  %v964_v56 = vpop.permute.xlu0 %963 }
  0xa9   : > { %2574 = vmatpush3.bf16.msra.mxu1 %v768_v51  ;;  %2575 = vmatprep.mubr.msk.bf16.mxu1 %vm2709_vm0, %v2708_v0  ;;  %v970_v10 = vsel %vm969_vm9, %v964_v56, %v966_v60 }
  0xaa   : > { %2579 = vmatprep.subr.bf16.mxu1 %v2708_v0  ;;  %v1071_v2 = vpop.permute.xlu1 %1070  ;;  %v976_v12 = vsel %vm242_vm1, %v970_v10, 0 }
  0xac   : > { %v968_v62 = vpop.permute.xlu0 %967 }
  0xad   : > { %v971_v4 = vsel %vm969_vm9, %v966_v60, %v968_v62  ;;  %v982_v5 = vsel %vm242_vm1, %v968_v62, 0  ;;  %v2487_v62 = vld [vmem:[%s3248_s1 + $0xa] sm:$0x3] }
  0xae   : > { %2444 = vmatmul.mubr.msk.bf16.vlgmr.msra.gmra.mxu0 %vm238_vm2, %v2442_v49  ;;  %v1075_v11 = vpop.permute.xlu1 %1074 }
  0xaf   : > { %785 = vmatpush1.bf16.msra.mxu0 %v762_v55  ;;  %802 = vmatprep.mubr.bf16.mxu0 %v2710_v1  ;;  %v1089_v16 = vsel %vm242_vm1, %v1075_v11, 0 }
  0xb0   : > { %2576 = vmatmul.mubr.msk.bf16.vlgmr.msra.gmra.mxu1 %vm238_vm2, %v2446_v57  ;;  %2451 = vmatprep.subr.msk.bf16.mxu0 %vm242_vm1, %v864_v58  ;;  %v1073_v6 = vpop.permute.xlu0 %1072 }
  0xb1   : > { %2580 = vmatpush3.bf16.msra.mxu1 %v875_v59  ;;  %2581 = vmatprep.mubr.msk.bf16.mxu1 %vm2709_vm0, %v2708_v0  ;;  %v1078_v15 = vsel %vm1076_vm10, %v1073_v6, %v1075_v11  ;;  %v1077_v17 = vsel %vm1076_vm10, %v1071_v2, %v1073_v6  ;;  %v2491_v11 = vld [vmem:[%s3248_s1 + $0xc] sm:$0x3] }
  0xb2   : > { %2585 = vmatprep.subr.bf16.mxu1 %v2708_v0  ;;  %v1324_v18 = vpop.permute.xlu1 %1323  ;;  %v1083_v20 = vsel %vm242_vm1, %v1077_v17, 0 }
  0xb4   : > { %v1322_v13 = vpop.permute.xlu0 %1321 }
  0xb5   : > { %v1327_v24 = vsel %vm235_vm3, %v1322_v13, %v1324_v18 }
  0xb6   : > { %2448 = vmatmul.mubr.msk.bf16.vlgmr.msra.gmra.mxu0 %vm238_vm2, %v2446_v57  ;;  %v1333_v25 = vsel %vm242_vm1, %v1327_v24, 0  ;;  %v1517_v26 = vpop.permute.xlu1 %1516 }
  0xb7   : > { %892 = vmatpush1.bf16.msra.mxu0 %v869_v63  ;;  %909 = vmatprep.mubr.bf16.mxu0 %v2710_v1 }
  0xb8   : > { %2582 = vmatmul.mubr.msk.bf16.vlgmr.msra.gmra.mxu1 %vm238_vm2, %v2450_v3  ;;  %2455 = vmatprep.subr.msk.bf16.mxu0 %vm242_vm1, %v971_v4  ;;  %v1326_v19 = vpop.permute.xlu0 %1325 }
  0xb9   : > { %2586 = vmatpush3.bf16.msra.mxu1 %v982_v5  ;;  %2587 = vmatprep.mubr.msk.bf16.mxu1 %vm2709_vm0, %v2708_v0  ;;  %v1328_v22 = vsel %vm235_vm3, %v1324_v18, %v1326_v19  ;;  %v1339_v23 = vsel %vm242_vm1, %v1326_v19, 0  ;;  %v2495_v18 = vld [vmem:[%s3248_s1 + $0xe] sm:$0x3]  ;;  %vm1305_vm3 = vcmask 398340  }
  0xba   : > { %2591 = vmatprep.subr.bf16.mxu1 %v2708_v0  ;;  %v1521_v30 = vpop.permute.xlu1 %1520 }
  0xbc   : > { %v1519_v29 = vpop.permute.xlu0 %1518 }
  0xbd   : > { %v1523_v33 = vsel %vm434_vm4, %v1519_v29, %v1521_v30  ;;  %v1522_v8 = vsel %vm434_vm4, %v1517_v26, %v1519_v29  ;;  %vm1300_vm4 = vcmask 154624  }
  0xbe   : > { %2452 = vmatmul.mubr.msk.bf16.vlgmr.msra.gmra.mxu0 %vm238_vm2, %v2450_v3  ;;  %v1624_v34 = vpop.permute.xlu1 %1623  ;;  %v1528_v36 = vsel %vm242_vm1, %v1522_v8, 0 }
  0xbf   : > { %999 = vmatpush1.bf16.msra.mxu0 %v976_v12  ;;  %1016 = vmatprep.mubr.bf16.mxu0 %v2710_v1 }
  0xc0   : > { %2588 = vmatmul.mubr.msk.bf16.vlgmr.msra.gmra.mxu1 %vm238_vm2, %v2454_v14  ;;  %2459 = vmatprep.subr.msk.bf16.mxu0 %vm242_vm1, %v1078_v15  ;;  %v1622_v9 = vpop.permute.xlu0 %1621 }
  0xc1   : > { %2592 = vmatpush3.bf16.msra.mxu1 %v1089_v16  ;;  %2593 = vmatprep.mubr.msk.bf16.mxu1 %vm2709_vm0, %v2708_v0  ;;  %v1627_v42 = vsel %vm541_vm5, %v1622_v9, %v1624_v34 }
  0xc2   : > { %2597 = vmatprep.subr.bf16.mxu1 %v2708_v0  ;;  %v1727_v37 = vpop.permute.xlu1 %1726  ;;  %v1633_v44 = vsel %vm242_vm1, %v1627_v42, 0 }
  0xc4   : > { %v1626_v35 = vpop.permute.xlu0 %1625 }
  0xc5   : > { %v1628_v39 = vsel %vm541_vm5, %v1624_v34, %v1626_v35  ;;  %v1639_v40 = vsel %vm242_vm1, %v1626_v35, 0 }
  0xc6   : > { %2456 = vmatmul.mubr.msk.bf16.vlgmr.msra.gmra.mxu0 %vm238_vm2, %v2454_v14  ;;  %v1731_v43 = vpop.permute.xlu1 %1730 }
  0xc7   : > { %1106 = vmatpush1.bf16.msra.mxu0 %v1083_v20  ;;  %1123 = vmatprep.mubr.bf16.mxu0 %v2710_v1  ;;  %v1744_v48 = vsel %vm242_vm1, %v1731_v43, 0 }
  0xc8   : > { %2594 = vmatmul.mubr.msk.bf16.vlgmr.msra.gmra.mxu1 %vm238_vm2, %v2458_v21  ;;  %2469 = vmatprep.subr.msk.bf16.mxu0 %vm242_vm1, %v1328_v22  ;;  %v1729_v41 = vpop.permute.xlu0 %1728 }
  0xc9   : > { %2598 = vmatpush3.bf16.msra.mxu1 %v1339_v23  ;;  %2599 = vmatprep.mubr.msk.bf16.mxu1 %vm2709_vm0, %v2708_v0  ;;  %v1733_v47 = vsel %vm648_vm6, %v1729_v41, %v1731_v43  ;;  %v1732_v50 = vsel %vm648_vm6, %v1727_v37, %v1729_v41  ;;  %v2499_v23 = vld [vmem:[%s3248_s1 + $0x10] sm:$0x3] }
  0xca   : > { %2603 = vmatprep.subr.bf16.mxu1 %v2708_v0  ;;  %v1834_v49 = vpop.permute.xlu1 %1833  ;;  %v1738_v52 = vsel %vm242_vm1, %v1732_v50, 0 }
  0xcc   : > { %v1832_v45 = vpop.permute.xlu0 %1831 }
  0xcd   : > { %v1837_v58 = vsel %vm755_vm7, %v1832_v45, %v1834_v49 }
  0xce   : > { %2460 = vmatmul.mubr.msk.bf16.vlgmr.msra.gmra.mxu0 %vm238_vm2, %v2458_v21  ;;  %v1937_v53 = vpop.permute.xlu1 %1936  ;;  %v1843_v60 = vsel %vm242_vm1, %v1837_v58, 0 }
  0xcf   : > { %1356 = vmatpush1.bf16.msra.mxu0 %v1333_v25  ;;  %1373 = vmatprep.mubr.bf16.mxu0 %v2710_v1 }
  0xd0   : > { %2600 = vmatmul.mubr.msk.bf16.vlgmr.msra.gmra.mxu1 %vm238_vm2, %v2465_v27  ;;  %2472 = vmatprep.subr.msk.bf16.mxu0 %vm242_vm1, %v2825_v7  ;;  %v1534_v7 = vsel %vm242_vm1, %v1521_v30, 0  ;;  %v1836_v51 = vpop.permute.xlu0 %1835 }
  0xd1   : > { %2604 = vmatpush3.bf16.msra.mxu1 %v1432_v28  ;;  %2605 = vmatprep.mubr.msk.bf16.mxu1 %vm2709_vm0, %v2708_v0  ;;  %v1838_v55 = vsel %vm755_vm7, %v1834_v49, %v1836_v51  ;;  %v1849_v56 = vsel %vm242_vm1, %v1836_v51, 0 }
  0xd2   : > { %2609 = vmatprep.subr.bf16.mxu1 %v2708_v0  ;;  %v1941_v59 = vpop.permute.xlu1 %1940 }
  0xd3   : > { %v1954_v2 = vsel %vm242_vm1, %v1941_v59, 0 }
  0xd4   : > { %v1939_v57 = vpop.permute.xlu0 %1938 }
  0xd5   : > { %v1943_v63 = vsel %vm862_vm8, %v1939_v57, %v1941_v59  ;;  %v1942_v4 = vsel %vm862_vm8, %v1937_v53, %v1939_v57 }
  0xd6   : > { %2470 = vmatmul.mubr.msk.bf16.vlgmr.msra.gmra.mxu0 %vm238_vm2, %v2465_v27  ;;  %v2044_v3 = vpop.permute.xlu1 %2043  ;;  %v1948_v6 = vsel %vm242_vm1, %v1942_v4, 0 }
  0xd7   : > { %1449 = vmatpush1.bf16.msra.mxu0 %v1426_v31  ;;  %1466 = vmatprep.mubr.bf16.mxu0 %v2710_v1 }
  0xd8   : > { %2606 = vmatmul.mubr.msk.bf16.vlgmr.msra.gmra.mxu1 %vm238_vm2, %v1311_v32  ;;  %2476 = vmatprep.subr.msk.bf16.mxu0 %vm242_vm1, %v1523_v33  ;;  %v2042_v61 = vpop.permute.xlu0 %2041 }
  0xd9   : > { %2610 = vmatpush3.bf16.msra.mxu1 %v1534_v7  ;;  %2611 = vmatprep.mubr.msk.bf16.mxu1 %vm2709_vm0, %v2708_v0  ;;  %v2047_v14 = vsel %vm969_vm9, %v2042_v61, %v2044_v3 }
  0xda   : > { %2615 = vmatprep.subr.bf16.mxu1 %v2708_v0  ;;  %v2147_v10 = vpop.permute.xlu1 %2146  ;;  %v2053_v17 = vsel %vm242_vm1, %v2047_v14, 0 }
  0xdc   : > { %v2046_v5 = vpop.permute.xlu0 %2045 }
  0xdd   : > { %v2048_v12 = vsel %vm969_vm9, %v2044_v3, %v2046_v5  ;;  %v2059_v13 = vsel %vm242_vm1, %v2046_v5, 0 }
  0xde   : > { %2473 = vmatmul.mubr.msk.bf16.vlgmr.msra.gmra.mxu0 %vm238_vm2, %v1311_v32  ;;  %v2151_v16 = vpop.permute.xlu1 %2150 }
  0xdf   : > { %1551 = vmatpush1.bf16.msra.mxu0 %v1528_v36  ;;  %1568 = vmatprep.mubr.bf16.mxu0 %v2710_v1  ;;  %v2164_v20 = vsel %vm242_vm1, %v2151_v16, 0 }
  0xe0   : > { %2612 = vmatmul.mubr.msk.bf16.vlgmr.msra.gmra.mxu1 %vm238_vm2, %v2475_v38  ;;  %2480 = vmatprep.subr.msk.bf16.mxu0 %vm242_vm1, %v1628_v39  ;;  %v2149_v15 = vpop.permute.xlu0 %2148 }
  0xe1   : > { %2616 = vmatpush3.bf16.msra.mxu1 %v1639_v40  ;;  %2617 = vmatprep.mubr.msk.bf16.mxu1 %vm2709_vm0, %v2708_v0  ;;  %v2153_v19 = vsel %vm1076_vm10, %v2149_v15, %v2151_v16  ;;  %v2152_v21 = vsel %vm1076_vm10, %v2147_v10, %v2149_v15 }
  0xe2   : > { %2621 = vmatprep.subr.bf16.mxu1 %v2708_v0  ;;  %v2158_v22 = vsel %vm242_vm1, %v2152_v21, 0 }
  0xe6   : > { %2477 = vmatmul.mubr.msk.bf16.vlgmr.msra.gmra.mxu0 %vm238_vm2, %v2475_v38 }
  0xe7   : > { %1656 = vmatpush1.bf16.msra.mxu0 %v1633_v44  ;;  %1673 = vmatprep.mubr.bf16.mxu0 %v2710_v1 }
  0xe8   : > { %2618 = vmatmul.mubr.msk.bf16.vlgmr.msra.gmra.mxu1 %vm238_vm2, %v2479_v46  ;;  %2484 = vmatprep.subr.msk.bf16.mxu0 %vm242_vm1, %v1733_v47 }
  0xe9   : > { %2622 = vmatpush3.bf16.msra.mxu1 %v1744_v48  ;;  %2623 = vmatprep.mubr.msk.bf16.mxu1 %vm2709_vm0, %v2708_v0 }
  0xea   : > { %2627 = vmatprep.subr.bf16.mxu1 %v2708_v0 }
  0xee   : > { %2481 = vmatmul.mubr.msk.bf16.vlgmr.msra.gmra.mxu0 %vm238_vm2, %v2479_v46 }
  0xef   : > { %1761 = vmatpush1.bf16.msra.mxu0 %v1738_v52  ;;  %1778 = vmatprep.mubr.bf16.mxu0 %v2710_v1 }
  0xf0   : > { %2624 = vmatmul.mubr.msk.bf16.vlgmr.msra.gmra.mxu1 %vm238_vm2, %v2483_v54  ;;  %2488 = vmatprep.subr.msk.bf16.mxu0 %vm242_vm1, %v1838_v55 }
  0xf1   : > { %2628 = vmatpush3.bf16.msra.mxu1 %v1849_v56  ;;  %2629 = vmatprep.mubr.msk.bf16.mxu1 %vm2709_vm0, %v2708_v0 }
  0xf2   : > { %2633 = vmatprep.subr.bf16.mxu1 %v2708_v0 }
  0xf6   : > { %2485 = vmatmul.mubr.msk.bf16.vlgmr.msra.gmra.mxu0 %vm238_vm2, %v2483_v54 }
  0xf7   : > { %1866 = vmatpush1.bf16.msra.mxu0 %v1843_v60  ;;  %1883 = vmatprep.mubr.bf16.mxu0 %v2710_v1 }
  0xf8   : > { %2630 = vmatmul.mubr.msk.bf16.vlgmr.msra.gmra.mxu1 %vm238_vm2, %v2487_v62  ;;  %2492 = vmatprep.subr.msk.bf16.mxu0 %vm242_vm1, %v1943_v63 }
  0xf9   : > { %2634 = vmatpush3.bf16.msra.mxu1 %v1954_v2  ;;  %2635 = vmatprep.mubr.msk.bf16.mxu1 %vm2709_vm0, %v2708_v0 }
  0xfa   : > { %2639 = vmatprep.subr.bf16.mxu1 %v2708_v0 }
  0xfe   : > { %2489 = vmatmul.mubr.msk.bf16.vlgmr.msra.gmra.mxu0 %vm238_vm2, %v2487_v62 }
  0xff   : > { %1971 = vmatpush1.bf16.msra.mxu0 %v1948_v6  ;;  %1988 = vmatprep.mubr.bf16.mxu0 %v2710_v1 }
 0x100   : > { %2636 = vmatmul.mubr.msk.bf16.vlgmr.msra.gmra.mxu1 %vm238_vm2, %v2491_v11  ;;  %2496 = vmatprep.subr.msk.bf16.mxu0 %vm242_vm1, %v2048_v12 }
 0x101   : > { %2640 = vmatpush3.bf16.msra.mxu1 %v2059_v13  ;;  %2641 = vmatprep.mubr.msk.bf16.mxu1 %vm2709_vm0, %v2708_v0 }
 0x102   : > { %2645 = vmatprep.subr.bf16.mxu1 %v2708_v0 }
 0x106   : > { %2493 = vmatmul.mubr.msk.bf16.vlgmr.msra.gmra.mxu0 %vm238_vm2, %v2491_v11 }
 0x107   : > { %2076 = vmatpush1.bf16.msra.mxu0 %v2053_v17  ;;  %2093 = vmatprep.mubr.bf16.mxu0 %v2710_v1 }
 0x108   : > { %2642 = vmatmul.mubr.msk.bf16.vlgmr.msra.gmra.mxu1 %vm238_vm2, %v2495_v18  ;;  %2500 = vmatprep.subr.msk.bf16.mxu0 %vm242_vm1, %v2153_v19 }
 0x109   : > { %2646 = vmatpush3.bf16.msra.mxu1 %v2164_v20  ;;  %2647 = vmatprep.mubr.msk.bf16.mxu1 %vm2709_vm0, %v2708_v0  ;;  %vm211_vm0 = vmor %vm210_vm14, %vm209_vm15 }
 0x10a   : > { %212 = vst.msk [vmem:[%s3222_s6] sm:$0x3f] %vm211_vm0, %v2710_v1  ;;  %213 = vst.msk [vmem:[%s3222_s6 + $0x6] sm:$0x3f] %vm211_vm0, %v2710_v1 }
 0x10e   : > { %2497 = vmatmul.mubr.msk.bf16.vlgmr.msra.gmra.mxu0 %vm238_vm2, %v2495_v18 }
 0x10f   : > { %2181 = vmatpush1.bf16.msra.mxu0 %v2158_v22  ;;  %2198 = vmatprep.mubr.bf16.mxu0 %v2710_v1  ;;  %v1184_v22 = vlaneseq }
 0x110   : > { %2648 = vmatmul.mubr.msk.bf16.vlgmr.msra.gmra.mxu1 %vm238_vm2, %v2499_v23 }
 0x116   : > { %2501 = vmatmul.mubr.msk.bf16.vlgmr.msra.gmra.mxu0 %vm238_vm2, %v2499_v23 }
 0x147   : > { %v327_v24 = vpop.f32.mrf.mxu1 }
 0x149   : > { %v2547_v25 = vpop.f32.mrf.mxu1 }
 0x14b   : > { %v330_v26 = vpop.f32.mrf.mxu1 }
 0x14d   : > { %v2548_v0 = vpop.f32.mrf.mxu1 }
 0x14e   : > { %v286_v27 = vpop.f32.mrf.mxu0 }
 0x150   : > { %v288_v28 = vpop.f32.mrf.mxu0  ;;  %v420_v29 = vpop.f32.mrf.mxu1 }
 0x151   : > { %v421_v12 = vadd.f32 %v420_v29, %v327_v24  ;;  %v3135_v29 = vshrl.u32 %v1184_v22, 7 }
 0x152   : > { %v290_v30 = vpop.f32.mrf.mxu0  ;;  %v2553_v31 = vpop.f32.mrf.mxu1 }
 0x154   : > { %v291_v9 = vpop.f32.mrf.mxu0  ;;  %v423_v32 = vpop.f32.mrf.mxu1 }
 0x156   : > { %v379_v33 = vpop.f32.mrf.mxu0  ;;  %v2554_v7 = vpop.f32.mrf.mxu1 }
 0x157   : > { %v380_v18 = vadd.f32 %v379_v33, %v286_v27 }
 0x158   : > { %v381_v34 = vpop.f32.mrf.mxu0  ;;  %v524_v8 = vpop.f32.mrf.mxu1 }
 0x159   : > { %v532_v15 = vadd.f32 %v524_v8, %v421_v12  ;;  %v382_v23 = vadd.f32 %v381_v34, %v288_v28 }
 0x15a   : > { %v383_v35 = vpop.f32.mrf.mxu0  ;;  %v2559_v36 = vpop.f32.mrf.mxu1 }
 0x15c   : > { %v384_v37 = vpop.f32.mrf.mxu0  ;;  %v527_v38 = vpop.f32.mrf.mxu1 }
 0x15e   : > { %v483_v39 = vpop.f32.mrf.mxu0  ;;  %v2560_v40 = vpop.f32.mrf.mxu1 }
 0x15f   : > { %v530_v25 = vadd.f32 %v483_v39, %v380_v18  ;;  %v1194_v39 = vsub.s32 2, %v3135_v29 }
 0x160   : > { %v485_v41 = vpop.f32.mrf.mxu0  ;;  %v631_v42 = vpop.f32.mrf.mxu1 }
 0x161   : > { %v639_v19 = vadd.f32 %v631_v42, %v532_v15  ;;  %v531_v31 = vadd.f32 %v485_v41, %v382_v23 }
 0x162   : > { %v487_v43 = vpop.f32.mrf.mxu0  ;;  %v2565_v44 = vpop.f32.mrf.mxu1 }
 0x163   : > { %v3138_v44 = vpop.permute.xlu0 %1177 }
 0x164   : > { %v488_v45 = vpop.f32.mrf.mxu0  ;;  %v634_v46 = vpop.f32.mrf.mxu1 }
 0x165   : > { %v215_v45 = vld [vmem:[%s3250_s3] sm:$0x7]  ;;  %v1186_v46 = vsub.s32 0, %v3135_v29 }
 0x166   : > { %v590_v47 = vpop.f32.mrf.mxu0  ;;  %v2566_v48 = vpop.f32.mrf.mxu1 }
 0x167   : > { %v637_v9 = vadd.f32 %v590_v47, %v530_v25 }
 0x168   : > { %v592_v49 = vpop.f32.mrf.mxu0  ;;  %v738_v50 = vpop.f32.mrf.mxu1 }
 0x169   : > { %v746_v26 = vadd.f32 %v738_v50, %v639_v19  ;;  %v638_v8 = vadd.f32 %v592_v49, %v531_v31 }
 0x16a   : > { %v594_v51 = vpop.f32.mrf.mxu0  ;;  %v2571_v52 = vpop.f32.mrf.mxu1 }
 0x16b   : > { %v1190_v51 = vsub.s32 1, %v3135_v29 }
 0x16c   : > { %v595_v53 = vpop.f32.mrf.mxu0  ;;  %v741_v54 = vpop.f32.mrf.mxu1 }
 0x16d   : > { %v3145_v54 = vrot.slane %v215_v45, %v1194_v39 }
 0x16e   : > { %v697_v55 = vpop.f32.mrf.mxu0  ;;  %v2572_v56 = vpop.f32.mrf.mxu1 }
 0x16f   : > { %v744_v35 = vadd.f32 %v697_v55, %v637_v9 }
 0x170   : > { %v699_v57 = vpop.f32.mrf.mxu0  ;;  %v845_v58 = vpop.f32.mrf.mxu1 }
 0x171   : > { %v853_v32 = vadd.f32 %v845_v58, %v746_v26  ;;  %v745_v37 = vadd.f32 %v699_v57, %v638_v8  ;;  %v3147_v57 = vrot.slane %v215_v45, %v1186_v46 }
 0x172   : > { %v701_v59 = vpop.f32.mrf.mxu0  ;;  %v2577_v60 = vpop.f32.mrf.mxu1 }
 0x174   : > { %v702_v61 = vpop.f32.mrf.mxu0  ;;  %v848_v62 = vpop.f32.mrf.mxu1 }
 0x176   : > { %v804_v63 = vpop.f32.mrf.mxu0  ;;  %v2578_v2 = vpop.f32.mrf.mxu1 }
 0x177   : > { %v851_v38 = vadd.f32 %v804_v63, %v744_v35  ;;  %v3153_v63 = vrot.slane %v215_v45, %v1190_v51 }
 0x178   : > { %v806_v3 = vpop.f32.mrf.mxu0  ;;  %v952_v4 = vpop.f32.mrf.mxu1 }
 0x179   : > { %v960_v36 = vadd.f32 %v952_v4, %v853_v32  ;;  %v852_v42 = vadd.f32 %v806_v3, %v745_v37 }
 0x17a   : > { %v808_v5 = vpop.f32.mrf.mxu0  ;;  %v2583_v6 = vpop.f32.mrf.mxu1 }
 0x17c   : > { %v809_v10 = vpop.f32.mrf.mxu0  ;;  %v955_v11 = vpop.f32.mrf.mxu1 }
 0x17e   : > { %v911_v13 = vpop.f32.mrf.mxu0  ;;  %v2584_v14 = vpop.f32.mrf.mxu1 }
 0x17f   : > { %v958_v41 = vadd.f32 %v911_v13, %v851_v38 }
 0x180   : > { %v913_v16 = vpop.f32.mrf.mxu0  ;;  %v1059_v17 = vpop.f32.mrf.mxu1 }
 0x181   : > { %v1067_v40 = vadd.f32 %v1059_v17, %v960_v36  ;;  %v959_v49 = vadd.f32 %v913_v16, %v852_v42 }
 0x182   : > { %v915_v20 = vpop.f32.mrf.mxu0  ;;  %v2589_v21 = vpop.f32.mrf.mxu1 }
 0x184   : > { %v916_v0 = vpop.f32.mrf.mxu0  ;;  %v1062_v30 = vpop.f32.mrf.mxu1 }
 0x186   : > { %v1018_v7 = vpop.f32.mrf.mxu0  ;;  %v2590_v24 = vpop.f32.mrf.mxu1 }
 0x187   : > { %v1065_v50 = vadd.f32 %v1018_v7, %v958_v41 }
 0x188   : > { %v1020_v27 = vpop.f32.mrf.mxu0  ;;  %v1166_v33 = vpop.f32.mrf.mxu1 }
 0x189   : > { %v1174_v43 = vadd.f32 %v1166_v33, %v1067_v40  ;;  %v1066_v55 = vadd.f32 %v1020_v27, %v959_v49 }
 0x18a   : > { %v1022_v28 = vpop.f32.mrf.mxu0  ;;  %v2595_v34 = vpop.f32.mrf.mxu1 }
 0x18b   : > { %v1182_v58 = vadd.f32 %v3138_v44, %v1174_v43 }
 0x18c   : > { %v1023_v47 = vpop.f32.mrf.mxu0  ;;  %v1169_v48 = vpop.f32.mrf.mxu1 }
 0x18d   : > { %v3160_v6 = vmul.f32 %v3145_v54, %v1182_v58 }
 0x18e   : > { %v1125_v52 = vpop.f32.mrf.mxu0  ;;  %v2596_v53 = vpop.f32.mrf.mxu1 }
 0x18f   : > { %v1172_v56 = vadd.f32 %v1125_v52, %v1065_v50  ;;  %v1221_v19 = vmul.f32 %v3160_v6, %v3160_v6  ;;  %v1206_v23 = vsel %vm1205_vm11, %v3160_v6, 0.0 }
 0x190   : > { %v1127_v59 = vpop.f32.mrf.mxu0  ;;  %v3150_v60 = vpop.f32.mrf.mxu1 }
 0x191   : > { %v1180_v61 = vadd.f32 %v3138_v44, %v1172_v56  ;;  %v1173_v62 = vadd.f32 %v1127_v59, %v1066_v55  ;;  %v1225_v32 = vsel %vm1205_vm11, %v1221_v19, 0.0 }
 0x192   : > { %v1129_v2 = vpop.f32.mrf.mxu0  ;;  %v2601_v3 = vpop.f32.mrf.mxu1 }
 0x193   : > { %v3156_v4 = vmul.f32 %v3147_v57, %v1180_v61  ;;  %v1181_v5 = vadd.f32 %v3138_v44, %v1173_v62 }
 0x194   : > { %v1130_v10 = vpop.f32.mrf.mxu0  ;;  %v1419_v11 = vpop.f32.mrf.mxu1 }
 0x195   : > { %v3163_v12 = vmul.f32 %v3153_v63, %v1181_v5  ;;  %v1219_v13 = vmul.f32 %v3156_v4, %v3156_v4  ;;  %v1202_v16 = vsel %vm242_vm1, %v3156_v4, 0.0 }
 0x196   : > { %v3167_v14 = vpop.f32.mrf.mxu0  ;;  %v2602_v15 = vpop.f32.mrf.mxu1 }
 0x197   : > { %v1203_v17 = vsel %vm242_vm1, %v3163_v12, 0.0  ;;  %v1220_v18 = vmul.f32 %v3163_v12, %v3163_v12  ;;  %v1222_v25 = vsel %vm242_vm1, %v1219_v13, 0.0 }
 0x198   : > { %v3177_v20 = vpop.f32.mrf.mxu0  ;;  %v1509_v21 = vpop.f32.mrf.mxu1  ;;  %v1204_v22 = vadd.f32 %v1203_v17, %v1202_v16 }
 0x199   : > { %v1223_v26 = vsel %vm242_vm1, %v1220_v18, 0.0 }
 0x19a   : > { %v1379_v0 = vpop.f32.mrf.mxu0  ;;  %v2607_v30 = vpop.f32.mrf.mxu1  ;;  %v1207_v31 = vadd.f32 %v1206_v23, %v1204_v22  ;;  %v1224_v9 = vadd.f32 %v1223_v26, %v1222_v25  ;;  %v1510_v23 = vadd.f32 %v1509_v21, %v3150_v60 }
 0x19c   : > { %v1380_v7 = vpop.f32.mrf.mxu0  ;;  %1208 = vadd.xlane.f32.xlu1 %v1207_v31  ;;  %v1512_v24 = vpop.f32.mrf.mxu1  ;;  %v1226_v8 = vadd.f32 %v1225_v32, %v1224_v9 }
 0x19e   : > { %v1468_v35 = vpop.f32.mrf.mxu0  ;;  %1227 = vadd.xlane.f32.xlu0 %v1226_v8  ;;  %v2608_v36 = vpop.f32.mrf.mxu1 }
 0x19f   : > { %v1469_v9 = vadd.f32 %v1468_v35, %v3167_v14 }
 0x1a0   : > { %v1470_v27 = vpop.f32.mrf.mxu0  ;;  %v1611_v33 = vpop.f32.mrf.mxu1 }
 0x1a1   : > { %v1619_v0 = vadd.f32 %v1611_v33, %v1510_v23  ;;  %v1471_v8 = vadd.f32 %v1470_v27, %v3177_v20 }
 0x1a2   : > { %v1472_v37 = vpop.f32.mrf.mxu0  ;;  %v2613_v38 = vpop.f32.mrf.mxu1 }
 0x1a4   : > { %v1473_v40 = vpop.f32.mrf.mxu0  ;;  %v1614_v28 = vpop.f32.mrf.mxu1 }
 0x1a6   : > { %v1570_v34 = vpop.f32.mrf.mxu0  ;;  %v2614_v39 = vpop.f32.mrf.mxu1 }
 0x1a7   : > { %v1617_v36 = vadd.f32 %v1570_v34, %v1469_v9 }
 0x1a8   : > { %v1572_v42 = vpop.f32.mrf.mxu0  ;;  %v1716_v41 = vpop.f32.mrf.mxu1 }
 0x1a9   : > { %v1724_v32 = vadd.f32 %v1716_v41, %v1619_v0  ;;  %v1618_v28 = vadd.f32 %v1572_v42, %v1471_v8 }
 0x1aa   : > { %v1574_v43 = vpop.f32.mrf.mxu0  ;;  %v2619_v45 = vpop.f32.mrf.mxu1 }
 0x1ac   : > { %v1575_v46 = vpop.f32.mrf.mxu0  ;;  %v1719_v47 = vpop.f32.mrf.mxu1 }
 0x1ae   : > { %v1675_v48 = vpop.f32.mrf.mxu0  ;;  %v2620_v49 = vpop.f32.mrf.mxu1 }
 0x1af   : > { %v1722_v39 = vadd.f32 %v1675_v48, %v1617_v36 }
 0x1b0   : > { %v1677_v50 = vpop.f32.mrf.mxu0  ;;  %v1821_v51 = vpop.f32.mrf.mxu1 }
 0x1b1   : > { %v1829_v37 = vadd.f32 %v1821_v51, %v1724_v32  ;;  %v1723_v45 = vadd.f32 %v1677_v50, %v1618_v28 }
 0x1b2   : > { %v1679_v52 = vpop.f32.mrf.mxu0  ;;  %v2625_v53 = vpop.f32.mrf.mxu1 }
 0x1b4   : > { %v1680_v55 = vpop.f32.mrf.mxu0  ;;  %v1824_v56 = vpop.f32.mrf.mxu1 }
 0x1b6   : > { %v1780_v58 = vpop.f32.mrf.mxu0  ;;  %v2626_v59 = vpop.f32.mrf.mxu1 }
 0x1b7   : > { %v1827_v33 = vadd.f32 %v1780_v58, %v1722_v39 }
 0x1b8   : > { %v1782_v61 = vpop.f32.mrf.mxu0  ;;  %v1926_v62 = vpop.f32.mrf.mxu1 }
 0x1b9   : > { %v1934_v43 = vadd.f32 %v1926_v62, %v1829_v37  ;;  %v1828_v14 = vadd.f32 %v1782_v61, %v1723_v45 }
 0x1ba   : > { %v1784_v2 = vpop.f32.mrf.mxu0  ;;  %v2631_v3 = vpop.f32.mrf.mxu1 }
 0x1bc   : > { %v1785_v5 = vpop.f32.mrf.mxu0  ;;  %v1929_v10 = vpop.f32.mrf.mxu1 }
 0x1be   : > { %v1885_v11 = vpop.f32.mrf.mxu0  ;;  %v2632_v13 = vpop.f32.mrf.mxu1 }
 0x1bf   : > { %v1932_v35 = vadd.f32 %v1885_v11, %v1827_v33 }
 0x1c0   : > { %v1887_v15 = vpop.f32.mrf.mxu0  ;;  %v2031_v16 = vpop.f32.mrf.mxu1 }
 0x1c1   : > { %v2039_v46 = vadd.f32 %v2031_v16, %v1934_v43  ;;  %v1933_v20 = vadd.f32 %v1887_v15, %v1828_v14 }
 0x1c2   : > { %v1889_v17 = vpop.f32.mrf.mxu0  ;;  %v2637_v18 = vpop.f32.mrf.mxu1 }
 0x1c4   : > { %v1890_v19 = vpop.f32.mrf.mxu0  ;;  %v2034_v22 = vpop.f32.mrf.mxu1 }
 0x1c6   : > { %v1990_v25 = vpop.f32.mrf.mxu0  ;;  %v2638_v26 = vpop.f32.mrf.mxu1 }
 0x1c7   : > { %v2037_v27 = vadd.f32 %v1990_v25, %v1932_v35 }
 0x1c8   : > { %v1992_v30 = vpop.f32.mrf.mxu0  ;;  %v2136_v31 = vpop.f32.mrf.mxu1 }
 0x1c9   : > { %v2144_v41 = vadd.f32 %v2136_v31, %v2039_v46  ;;  %v2038_v42 = vadd.f32 %v1992_v30, %v1933_v20 }
 0x1ca   : > { %v1994_v7 = vpop.f32.mrf.mxu0  ;;  %v2643_v24 = vpop.f32.mrf.mxu1 }
 0x1cb   : > { %v2719_v7 = vmov 1  }
 0x1cc   : > { %v1995_v38 = vpop.f32.mrf.mxu0  ;;  %v2139_v40 = vpop.f32.mrf.mxu1  ;;  %2686 = vset.pattern.permute.xlu1 %v2719_v7 }
 0x1ce   : > { %v2095_v60 = vpop.f32.mrf.mxu0  ;;  %v2644_v21 = vpop.f32.mrf.mxu1 }
 0x1cf   : > { %v2142_v48 = vadd.f32 %v2095_v60, %v2037_v27 }
 0x1d0   : > { %v2097_v47 = vpop.f32.mrf.mxu0  ;;  %v2241_v49 = vpop.f32.mrf.mxu1 }
 0x1d1   : > { %v2249_v34 = vadd.f32 %v2241_v49, %v2144_v41  ;;  %v2143_v62 = vadd.f32 %v2097_v47, %v2038_v42 }
 0x1d2   : > { %v2099_v52 = vpop.f32.mrf.mxu0  ;;  %v2649_v53 = vpop.f32.mrf.mxu1 }
 0x1d3   : > { %v2252_v50 = vadd.f32 %v2249_v34, %v3138_v44 }
 0x1d4   : > { %v2100_v51 = vpop.f32.mrf.mxu0  ;;  %v2244_v55 = vpop.f32.mrf.mxu1 }
 0x1d5   : > { %v3190_v10 = vmul.f32 %v2252_v50, %v3145_v54  ;;  %v2720_v50 = vmov 2  }
 0x1d6   : > { %v2200_v56 = vpop.f32.mrf.mxu0  ;;  %v2650_v59 = vpop.f32.mrf.mxu1  ;;  %2687 = vset.pattern.permute.xlu0 %v2720_v50 }
 0x1d7   : > { %v2247_v58 = vadd.f32 %v2200_v56, %v2142_v48  ;;  %v2274_v23 = vmul.f32 %v3190_v10, %v3190_v10  ;;  %v2259_v25 = vsel %vm1205_vm11, %v3190_v10, 0.0 }
 0x1d8   : > { %v2202_v2 = vpop.f32.mrf.mxu0 }
 0x1d9   : > { %v2250_v61 = vadd.f32 %v2247_v58, %v3138_v44  ;;  %v2248_v3 = vadd.f32 %v2202_v2, %v2143_v62  ;;  %v2278_v9 = vsel %vm1205_vm11, %v2274_v23, 0.0 }
 0x1da   : > { %v2204_v5 = vpop.f32.mrf.mxu0 }
 0x1db   : > { %v3193_v11 = vmul.f32 %v2250_v61, %v3147_v57  ;;  %v2251_v13 = vadd.f32 %v2248_v3, %v3138_v44 }
 0x1dc   : > { %v2205_v15 = vpop.f32.mrf.mxu0 }
 0x1dd   : > { %v3197_v16 = vmul.f32 %v2251_v13, %v3153_v63  ;;  %v2272_v17 = vmul.f32 %v3193_v11, %v3193_v11  ;;  %v2256_v18 = vsel %vm242_vm1, %v3193_v11, 0.0  ;;  %v2699_v15 = vld [vmem:[%s3249_s2] sm:$0xf] }
 0x1df   : > { %v2257_v19 = vsel %vm242_vm1, %v3197_v16, 0.0  ;;  %v2273_v22 = vmul.f32 %v3197_v16, %v3197_v16  ;;  %v2275_v26 = vsel %vm242_vm1, %v2272_v17, 0.0 }
 0x1e0   : > { %v2258_v44 = vadd.f32 %v2257_v19, %v2256_v18 }
 0x1e1   : > { %v2276_v0 = vsel %vm242_vm1, %v2273_v22, 0.0  ;;  %vm1303_vm1 = vcmask 1041560  }
 0x1e2   : > { %v2260_v30 = vadd.f32 %v2259_v25, %v2258_v44  ;;  %v2277_v31 = vadd.f32 %v2276_v0, %v2275_v26  ;;  %vm1304_vm2 = vmor %vm208_vm13, %vm1303_vm1 }
 0x1e3   : > { %vm1306_vm5 = vmor %vm1305_vm3, %vm1304_vm2 }
 0x1e4   : > { %2261 = vadd.xlane.f32.xlu1 %v2260_v30  ;;  %v2279_v32 = vadd.f32 %v2278_v9, %v2277_v31 }
 0x1e6   : > { %2280 = vadd.xlane.f32.xlu0 %v2279_v32 }
 0x225   : > { %v1209_v24 = vpop.xlane.xlu1 %1208 }
 0x226   : > { %v1210_v8 = vrot.slane %v1209_v24, 4 }
 0x227   : > { %v1228_v36 = vpop.xlane.xlu0 %1227 }
 0x228   : > { %v1211_v37 = vadd.f32 %v1210_v8, %v1209_v24  ;;  %v1229_v38 = vrot.slane %v1228_v36, 4 }
 0x22a   : > { %v1212_v40 = vrot.slane %v1211_v37, 2  ;;  %v1230_v28 = vadd.f32 %v1229_v38, %v1228_v36 }
 0x22c   : > { %v1231_v39 = vrot.slane %v1230_v28, 2  ;;  %v1213_v43 = vadd.f32 %v1212_v40, %v1211_v37 }
 0x22e   : > { %v1214_v60 = vrot.slane %v1213_v43, 1  ;;  %v1232_v21 = vadd.f32 %v1231_v39, %v1230_v28  ;;  %v2722_v39 = vmov 1983009808  }
 0x230   : > { %v1215_v45 = vadd.f32 %v1214_v60, %v1213_v43  ;;  %v1233_v33 = vrot.slane %v1232_v21, 1  ;;  %v1283_v43 = vunpack.c.l.s4 %v2722_v39 }
 0x232   : > { %2653 = vpush %v1215_v45  ;;  %v1234_v46 = vadd.f32 %v1233_v33, %v1232_v21 }
 0x234   : > { %2655 = vpush %v1234_v46 }
 0x263   : > { %s2654_s22 = spop %2653 }
 0x264   : > { %v1217_v47 = vstv %s2654_s22 }
 0x265   : > { %v1218_v49 = vmul.f32 0.0009765625, %v1217_v47  ;;  %s2656_s23 = spop %2655 }
 0x266   : > { %v1236_v14 = vstv %s2656_s23 }
 0x267   : > { %v1238_v35 = vmul.f32 %v1218_v49, %v1218_v49  ;;  %v1237_v41 = vmul.f32 0.0009765625, %v1236_v14  ;;  %v1284_v14 = vunpack.c.0.s8 %v1283_v43 }
 0x269   : > { %v1239_v52 = vsub.f32 %v1237_v41, %v1238_v35 }
 0x26b   : > { %v1240_v53 = vmax.f32 %v1239_v52, 0.0 }
 0x26d   : > { %v1241_v20 = vadd.f32 1e-05, %v1240_v53  ;;  %v2262_v27 = vpop.xlane.xlu1 %2261 }
 0x26e   : > { %v2263_v34 = vrot.slane %v2262_v27, 4 }
 0x26f   : > { %2695 = vrsqrt.f32 %v1241_v20  ;;  %v2281_v51 = vpop.xlane.xlu0 %2280 }
 0x270   : > { %v2264_v55 = vadd.f32 %v2263_v34, %v2262_v27  ;;  %v2282_v42 = vrot.slane %v2281_v51, 4 }
 0x272   : > { %v2265_v48 = vrot.slane %v2264_v55, 2  ;;  %v2283_v56 = vadd.f32 %v2282_v42, %v2281_v51 }
 0x274   : > { %v2284_v59 = vrot.slane %v2283_v56, 2  ;;  %v2266_v62 = vadd.f32 %v2265_v48, %v2264_v55 }
 0x276   : > { %v2267_v58 = vrot.slane %v2266_v62, 1  ;;  %v2285_v2 = vadd.f32 %v2284_v59, %v2283_v56 }
 0x278   : > { %v2268_v61 = vadd.f32 %v2267_v58, %v2266_v62  ;;  %v2286_v3 = vrot.slane %v2285_v2, 1 }
 0x27a   : > { %2657 = vpush %v2268_v61  ;;  %v2287_v5 = vadd.f32 %v2286_v3, %v2285_v2 }
 0x27c   : > { %v2696_v13 = vpop.eup %2695  ;;  %2659 = vpush %v2287_v5 }
 0x27d   : > { %v1243_v17 = vmul.f32 %v2699_v15, %v2696_v13 }
 0x27f   : > { %v1244_v18 = vmul.f32 %v1243_v17, %v1218_v49 }
 0x281   : > { %1246 = vrot.lane.b32.xlu1 %v1244_v18, %s2721_s26 }
 0x285   : > { %1252 = vperm.xlu1 %2686, %v1243_v17  }
 0x2ab   : > { %s2658_s27 = spop %2657 }
 0x2ac   : > { %v2270_v19 = vstv %s2658_s27 }
 0x2ad   : > { %v2271_v22 = vmul.f32 0.0009765625, %v2270_v19  ;;  %s2660_s28 = spop %2659 }
 0x2ae   : > { %v2289_v23 = vstv %s2660_s28 }
 0x2af   : > { %v2291_v44 = vmul.f32 %v2271_v22, %v2271_v22  ;;  %v2290_v25 = vmul.f32 0.0009765625, %v2289_v23 }
 0x2b1   : > { %v2292_v26 = vsub.f32 %v2290_v25, %v2291_v44 }
 0x2b3   : > { %v2293_v0 = vmax.f32 %v2292_v26, 0.0 }
 0x2b5   : > { %v2294_v30 = vadd.f32 1e-05, %v2293_v0 }
 0x2b7   : > { %2697 = vrsqrt.f32 %v2294_v30 }
 0x2c4   : > { %v2698_v31 = vpop.eup %2697 }
 0x2c5   : > { %v2296_v9 = vmul.f32 %v2699_v15, %v2698_v31 }
 0x2c7   : > { %2305 = vperm.xlu1 %2686, %v2296_v9   ;;  %v2297_v32 = vmul.f32 %v2296_v9, %v2271_v22 }
 0x2c9   : > { %2299 = vrot.lane.b32.xlu0 %v2297_v32, %s2721_s26 }
 0x2cb   : > { %2688 = vset.pattern.permute.xlu1 %v2720_v50 }
 0x2f3   : > { %v1247_v7 = vpop.permute.xlu1 %1246 }
 0x2f4   : > { %v1249_v24 = vsub.f32 %v2699_v15, %v1247_v7 }
 0x2f6   : > { %1260 = vperm.xlu0 %2687, %v1249_v24  }
 0x300   : > { %v1253_v37 = vpop.permute.xlu1 %1252 }
 0x301   : > { %v1255_v38 = vmul.f32 %v1253_v37, %v3156_v4  ;;  %v1256_v40 = vmul.f32 %v1253_v37, %v3163_v12  ;;  %v1257_v28 = vmul.f32 %v1253_v37, %v3160_v6  ;;  %v1287_v6 = vsub.s32 %v1284_v14, %v3135_v29 }
 0x33b   : > { %v2300_v8 = vpop.permute.xlu0 %2299 }
 0x33c   : > { %v2302_v36 = vsub.f32 %v2699_v15, %v2300_v8 }
 0x33e   : > { %2313 = vperm.xlu1 %2688, %v2302_v36  }
 0x342   : > { %v2306_v55 = vpop.permute.xlu1 %2305 }
 0x343   : > { %v2308_v42 = vmul.f32 %v2306_v55, %v3193_v11  ;;  %v2309_v48 = vmul.f32 %v2306_v55, %v3197_v16  ;;  %v2310_v56 = vmul.f32 %v2306_v55, %v3190_v10 }
 0x371   : > { %v1261_v60 = vpop.permute.xlu0 %1260 }
 0x372   : > { %v1263_v21 = vadd.f32 %v1261_v60, %v1255_v38  ;;  %v1264_v45 = vadd.f32 %v1261_v60, %v1256_v40  ;;  %v1265_v33 = vadd.f32 %v1261_v60, %v1257_v28 }
 0x374   : > { %v1266_v46 = vmul.f32 0.1, %v1263_v21  ;;  %v1267_v47 = vmul.f32 0.1, %v1264_v45  ;;  %v1268_v49 = vmul.f32 0.1, %v1265_v33 }
 0x376   : > { %v1269_v35 = vmax.f32 %v1263_v21, %v1266_v46  ;;  %v1270_v41 = vmax.f32 %v1264_v45, %v1267_v47  ;;  %v1271_v1 = vmax.f32 %v1265_v33, %v1268_v49 }
 0x378   : > { %v1272_v52 = vmul.f32 %v1269_v35, %v3147_v57  ;;  %v1273_v4 = vmul.f32 %v1270_v41, %v3153_v63  ;;  %v1274_v12 = vmul.f32 %v1271_v1, %v3145_v54 }
 0x37a   : > { %v1277_v53 = vpack.c.bf16 %v1274_v12, %v1274_v12  ;;  %v2462_v20 = vpack.c.bf16 %v1273_v4, %v1272_v52 }
 0x37c   : > { %v1288_v27 = vrot.slane %v2462_v20, %v1287_v6  ;;  %v1295_v34 = vrot.slane %v1277_v53, %v1287_v6 }
 0x37e   : > { %v1296_v51 = vcombine.low %v1288_v27, %v1295_v34 }
 0x380   : > { %1297 = vrot.lane.b32.xlu1 %v1296_v51, %s2723_s17 }
 0x3b9   : > { %v2314_v59 = vpop.permute.xlu1 %2313 }
 0x3ba   : > { %v2316_v62 = vadd.f32 %v2314_v59, %v2308_v42  ;;  %v2317_v50 = vadd.f32 %v2314_v59, %v2309_v48  ;;  %v2318_v58 = vadd.f32 %v2314_v59, %v2310_v56 }
 0x3bc   : > { %v2319_v2 = vmul.f32 0.1, %v2316_v62  ;;  %v2320_v29 = vmul.f32 0.1, %v2317_v50  ;;  %v2321_v61 = vmul.f32 0.1, %v2318_v58 }
 0x3be   : > { %v2322_v3 = vmax.f32 %v2316_v62, %v2319_v2  ;;  %v2323_v5 = vmax.f32 %v2317_v50, %v2320_v29  ;;  %v2324_v13 = vmax.f32 %v2318_v58, %v2321_v61 }
 0x3c0   : > { %v2325_v15 = vmul.f32 %v2322_v3, %v3147_v57  ;;  %v2326_v17 = vmul.f32 %v2323_v5, %v3153_v63  ;;  %v2327_v11 = vmul.f32 %v2324_v13, %v3145_v54 }
 0x3c2   : > { %v2330_v16 = vpack.c.bf16 %v2327_v11, %v2327_v11  ;;  %v2503_v18 = vpack.c.bf16 %v2326_v17, %v2325_v15 }
 0x3c4   : > { %v2341_v10 = vrot.slane %v2503_v18, %v1287_v6  ;;  %v2348_v19 = vrot.slane %v2330_v16, %v1287_v6 }
 0x3c6   : > { %v2349_v22 = vcombine.low %v2341_v10, %v2348_v19 }
 0x3c8   : > { %2350 = vrot.lane.b32.xlu0 %v2349_v22, %s2723_s17 }
 0x3f2   : > { %v1298_v23 = vpop.permute.xlu1 %1297 }
 0x3f3   : > { %v1299_v57 = vrot.slane %v1298_v23, 6 }
 0x3f5   : > { %v1301_v44 = vsel %vm1300_vm4, %v1299_v57, %v1298_v23 }
 0x3f6   : > { %1307 = vst.msk [vmem:[%s3222_s6] sm:$0x3f] %vm1306_vm5, %v1301_v44 }
 0x43a   : > { %v2351_v63 = vpop.permute.xlu0 %2350 }
 0x43b   : > { %v2352_v25 = vrot.slane %v2351_v63, 6 }
 0x43d   : > { %v2353_v54 = vsel %vm1300_vm4, %v2352_v25, %v2351_v63 }
 0x43e   : > { %2504 = vst.msk [vmem:[%s3222_s6 + $0x6] sm:$0x3f] %vm1306_vm5, %v2353_v54 }
 0x43f PF: > { %s14_s15 = sadd.s32 1, %s2706_s15  }
 0x440   : > { %p11_p4 = scmp.ge.s32.totalorder %s14_s15, 6  }
 0x442   :  { %13 = sbr.rel (!%p11_p4) target bundleno = 1 (0x1), region = 76 }

// kernel: cmp_forward.7
= control target key start
LH: loop header
LB: loop body
LE: loop exit
PB: predicated region body
PF: predicated region fallthrough
CT: control target
= control target key end

     0   :  { %s2726_s15 = smov 0   ;;  %s3230_s0 = inlined_call_operand.vmem [shape: bf16[8,4,324], index: 0, kind: input, shape index: {}]   ;;  %s3231_s1 = inlined_call_operand.vmem [shape: bf16[9,4,4], index: 1, kind: input, shape index: {}]   ;;  %s3232_s2 = inlined_call_operand.vmem [shape: f32[4,3], index: 2, kind: input, shape index: {}]   ;;  %s3233_s3 = inlined_call_operand.vmem [shape: f32[1,286], index: 3, kind: input, shape index: {}]   ;;  %s3234_s4 = inlined_call_operand.vmem [shape: f32[8,4,324], index: 4, kind: output, shape index: {}]  }
   0x1 LB: > { %s2404_s16 = sadd.s32 4294967295, %s2683_s15   ;;  %p2408_p0 = scmp.ge.s32.totalorder %s2683_s15, 1  ;;  %s2683_s15 = sphi %s2726_s15, %s14_s15  }
   0x2   : > { %p164_p1 = scmp.lt.s32.totalorder %s2683_s15, 5 }
   0x4   : > { %p165_p2 = pnand %p2408_p0, %p164_p1 }
   0x5   : > { %s2409_s17 = sshll.u32 (!%p165_p2), %s2404_s16, 1  ;;  %s2689_s22 = smov (!%p165_p2), 127  }
   0x6   : > { %168 = sbr.rel (%p165_p2) target bundleno = 1087 (0x43f), region = 36  ;;  %p193_p3 = scmp.lt.s32.totalorder (!%p165_p2), %s2409_s17, 7 }
   0x7   : > { %s2690_s23 = smov (!%p165_p2), 126   ;;  %s2691_s24 = smov (!%p165_p2), 110  }
   0x8   : > { %s2692_s25 = smov (!%p165_p2), 109   ;;  %s2693_s26 = smov (!%p165_p2), 108  }
   0x9   : > { %s2694_s27 = smov (!%p165_p2), 92   ;;  %s2695_s28 = smov (!%p165_p2), 91  }
   0xa   : > { %s2696_s29 = smov (!%p165_p2), 90  }
   0xb   : > { %v223_v0 = vlaneseq  ;;  %v2685_v1 = vmov 1983009808   ;;  %v2686_v3 = vmov 0.0   ;;  %s3236_s17 = smov (!%p193_p3, %s2409_s17), 7  ;;  %vm2687_vm0 = vmmov 0  }
   0xc   : > { %v221_v2 = vunpack.c.l.s4 %v2685_v1  ;;  %2524 = vmatprep.subr.bf16.mxu1 %v2686_v3  ;;  %2526 = vmatprep.mubr.msk.bf16.mxu1 %vm2687_vm0, %v2686_v3  ;;  %s2632_s18 = smul.u32 6, %s3236_s17  ;;  %v2688_v7 = vmov 0   ;;  %vm248_vm1 = vcmask 1041408   ;;  %vm241_vm2 = vcmask 1039360   ;;  %v2413_v22 = vld [vmem:[%s3231_s1 + $0x2] sm:$0x3] }
   0xd   : > { %v2735_v4 = vshrl.u32 %v223_v0, 7  ;;  %290 = vmatprep.mubr.bf16.mxu0 %v2688_v7  ;;  %2666 = vset.pattern.permute.xlu0 %v2688_v7  ;;  %vm244_vm3 = vcmask 31744   ;;  %vm440_vm4 = vcmask 1031168   ;;  %v212_v32 = vld [vmem:[%s3232_s2] sm:$0xf]  ;;  %vm547_vm5 = vcmask 900096  }
   0xe   : > { %v222_v5 = vunpack.c.0.s8 %v221_v2  ;;  %s2748_s21 = scalar_lea.vmem %s3230_s0, %s2632_s18  ;;  %v215_v33 = vld [vmem:[%s3231_s1] sm:$0x3]  ;;  %v2420_v42 = vld [vmem:[%s3231_s1 + $0x4] sm:$0x3]  ;;  %vm654_vm6 = vcmask 891904   ;;  %vm761_vm7 = vcmask 883712  }
   0xf   : > { %v214_v8 = vld [vmem:[%s2748_s21] sm:$0x3f]  ;;  %v2448_v13 = vld [vmem:[%s2748_s21 + $0x6] sm:$0x3f]  ;;  %vm868_vm8 = vcmask 752640   ;;  %vm975_vm9 = vcmask 744448  }
  0x10   : > { %v225_v6 = vsub.s32 %v222_v5, %v2735_v4  ;;  %v219_v10 = vcombine.high %v214_v8, %v214_v8  ;;  %v1307_v15 = vcombine.high %v2448_v13, %v2448_v13  ;;  %v2424_v51 = vld [vmem:[%s3231_s1 + $0x6] sm:$0x3]  ;;  %v2428_v59 = vld [vmem:[%s3231_s1 + $0x8] sm:$0x3]  ;;  %v2432_v5 = vld [vmem:[%s3231_s1 + $0xa] sm:$0x3] }
  0x11   : > { %vm1082_vm10 = vcmask 736256   ;;  %vm1208_vm11 = vcmask 1043456   ;;  %vm1212_vm12 = vcmask 240640   ;;  %vm208_vm13 = vcmask 551936  }
  0x12   : > { %v2751_v9 = vrot.slane %v214_v8, %v225_v6  ;;  %v2755_v11 = vrot.slane %v219_v10, %v225_v6  ;;  %v2806_v14 = vrot.slane %v2448_v13, %v225_v6  ;;  %v2816_v17 = vrot.slane %v1307_v15, %v225_v6  ;;  %v2436_v15 = vld [vmem:[%s3231_s1 + $0xc] sm:$0x3] }
  0x13   : > { %vm1296_vm14 = vcmask 1043608   ;;  %vm1297_vm15 = vcmask 1047556  }
  0x14   : > { %235 = vrot.lane.b32.xlu0 %v2751_v9, %s2689_s22  ;;  %v2759_v12 = vcombine.high %v2751_v9, %v2751_v9  ;;  %239 = vrot.lane.b32.xlu1 %v2755_v11, %s2689_s22  ;;  %v2812_v16 = vcombine.high %v2806_v14, %v2806_v14  ;;  %v349_v25 = vsel %vm248_vm1, %v2755_v11, 0  ;;  %v343_v28 = vsel %vm248_vm1, %v2751_v9, 0 }
  0x18   : > { %237 = vrot.lane.b32.xlu0 %v2759_v12, %s2689_s22  ;;  %434 = vrot.lane.b32.xlu1 %v2751_v9, %s2690_s23 }
  0x1c   : > { %436 = vrot.lane.b32.xlu0 %v2759_v12, %s2690_s23  ;;  %438 = vrot.lane.b32.xlu1 %v2755_v11, %s2690_s23 }
  0x20   : > { %541 = vrot.lane.b32.xlu0 %v2751_v9, %s2691_s24  ;;  %543 = vrot.lane.b32.xlu1 %v2759_v12, %s2691_s24 }
  0x24   : > { %545 = vrot.lane.b32.xlu0 %v2755_v11, %s2691_s24  ;;  %648 = vrot.lane.b32.xlu1 %v2751_v9, %s2692_s25 }
  0x28   : > { %650 = vrot.lane.b32.xlu0 %v2759_v12, %s2692_s25  ;;  %652 = vrot.lane.b32.xlu1 %v2755_v11, %s2692_s25 }
  0x2c   : > { %755 = vrot.lane.b32.xlu0 %v2751_v9, %s2693_s26  ;;  %757 = vrot.lane.b32.xlu1 %v2759_v12, %s2693_s26 }
  0x30   : > { %759 = vrot.lane.b32.xlu0 %v2755_v11, %s2693_s26  ;;  %862 = vrot.lane.b32.xlu1 %v2751_v9, %s2694_s27 }
  0x34   : > { %864 = vrot.lane.b32.xlu0 %v2759_v12, %s2694_s27  ;;  %866 = vrot.lane.b32.xlu1 %v2755_v11, %s2694_s27 }
  0x38   : > { %969 = vrot.lane.b32.xlu0 %v2751_v9, %s2695_s28  ;;  %971 = vrot.lane.b32.xlu1 %v2759_v12, %s2695_s28 }
  0x3c   : > { %973 = vrot.lane.b32.xlu0 %v2755_v11, %s2695_s28  ;;  %1076 = vrot.lane.b32.xlu1 %v2751_v9, %s2696_s29 }
  0x40   : > { %1078 = vrot.lane.b32.xlu0 %v2759_v12, %s2696_s29  ;;  %1080 = vrot.lane.b32.xlu1 %v2755_v11, %s2696_s29 }
  0x44   : > { %1323 = vrot.lane.b32.xlu0 %v2806_v14, %s2689_s22  ;;  %1325 = vrot.lane.b32.xlu1 %v2812_v16, %s2689_s22 }
  0x48   : > { %1327 = vrot.lane.b32.xlu0 %v2816_v17, %s2689_s22  ;;  %1518 = vrot.lane.b32.xlu1 %v2806_v14, %s2690_s23 }
  0x4c   : > { %1520 = vrot.lane.b32.xlu0 %v2812_v16, %s2690_s23  ;;  %1522 = vrot.lane.b32.xlu1 %v2816_v17, %s2690_s23 }
  0x50   : > { %1623 = vrot.lane.b32.xlu0 %v2806_v14, %s2691_s24  ;;  %1625 = vrot.lane.b32.xlu1 %v2812_v16, %s2691_s24 }
  0x54   : > { %1627 = vrot.lane.b32.xlu0 %v2816_v17, %s2691_s24  ;;  %1728 = vrot.lane.b32.xlu1 %v2806_v14, %s2692_s25 }
  0x58   : > { %1730 = vrot.lane.b32.xlu0 %v2812_v16, %s2692_s25  ;;  %1732 = vrot.lane.b32.xlu1 %v2816_v17, %s2692_s25 }
  0x5c   : > { %1833 = vrot.lane.b32.xlu0 %v2806_v14, %s2693_s26  ;;  %1835 = vrot.lane.b32.xlu1 %v2812_v16, %s2693_s26 }
  0x60   : > { %1837 = vrot.lane.b32.xlu0 %v2816_v17, %s2693_s26  ;;  %1938 = vrot.lane.b32.xlu1 %v2806_v14, %s2694_s27  ;;  %s2699_s26 = smov 1  }
  0x64   : > { %1940 = vrot.lane.b32.xlu0 %v2812_v16, %s2694_s27  ;;  %1942 = vrot.lane.b32.xlu1 %v2816_v17, %s2694_s27 }
  0x68   : > { %2043 = vrot.lane.b32.xlu0 %v2806_v14, %s2695_s28  ;;  %2045 = vrot.lane.b32.xlu1 %v2812_v16, %s2695_s28 }
  0x6c   : > { %2047 = vrot.lane.b32.xlu0 %v2816_v17, %s2695_s28  ;;  %2148 = vrot.lane.b32.xlu1 %v2806_v14, %s2696_s29 }
  0x70   : > { %2150 = vrot.lane.b32.xlu0 %v2812_v16, %s2696_s29  ;;  %2152 = vrot.lane.b32.xlu1 %v2816_v17, %s2696_s29  ;;  %s2633_s29 = smul.u32 12, %s3236_s17  ;;  %s2700_s17 = smov 19  }
  0x72   : > { %s3201_s6 = scalar_lea.vmem %s3234_s4, %s2633_s29 }
  0x73   : > { %207 = vst [vmem:[%s3201_s6] sm:$0xff] %v2686_v3  ;;  %210 = vst [vmem:[%s3201_s6 + $0xc] sm:$0xff] %v2686_v3 }
  0x74   : > { %1183 = vperm.xlu0 %2666, %v212_v32   ;;  %209 = vst.msk [vmem:[%s3201_s6 + $0x8] sm:$0xf] %vm208_vm13, %v2686_v3  ;;  %211 = vst.msk [vmem:[%s3201_s6 + $0x14] sm:$0xf] %vm208_vm13, %v2686_v3 }
  0x86   : > { %v236_v18 = vpop.permute.xlu0 %235  ;;  %v240_v19 = vpop.permute.xlu1 %239 }
  0x87   : > { %v256_v20 = vsel %vm248_vm1, %v240_v19, 0 }
  0x88   : > { %2525 = vmatpush3.bf16.msra.mxu1 %v256_v20 }
  0x89   : > { %2530 = vmatprep.subr.bf16.mxu1 %v2686_v3 }
  0x8a   : > { %v238_v21 = vpop.permute.xlu0 %237  ;;  %v435_v27 = vpop.permute.xlu1 %434 }
  0x8b   : > { %v243_v23 = vsel %vm241_vm2, %v238_v21, %v240_v19  ;;  %v242_v24 = vsel %vm241_vm2, %v236_v18, %v238_v21  ;;  %2527 = vmatmul.mubr.msk.bf16.vlgmr.msra.gmra.mxu1 %vm244_vm3, %v2413_v22 }
  0x8c   : > { %2414 = vmatprep.subr.msk.bf16.mxu0 %vm248_vm1, %v243_v23  ;;  %v250_v26 = vsel %vm248_vm1, %v242_v24, 0  ;;  %2531 = vmatpush3.bf16.msra.mxu1 %v349_v25  ;;  %v2440_v24 = vld [vmem:[%s3231_s1 + $0xe] sm:$0x3] }
  0x8d   : > { %273 = vmatpush1.bf16.msra.mxu0 %v250_v26  ;;  %2532 = vmatprep.mubr.msk.bf16.mxu1 %vm2687_vm0, %v2686_v3 }
  0x8e   : > { %2417 = vmatprep.subr.msk.bf16.mxu0 %vm248_vm1, %v2759_v12  ;;  %v437_v29 = vpop.permute.xlu0 %436  ;;  %2536 = vmatprep.subr.bf16.mxu1 %v2686_v3  ;;  %v439_v30 = vpop.permute.xlu1 %438 }
  0x8f   : > { %v442_v31 = vsel %vm440_vm4, %v437_v29, %v439_v30  ;;  %v441_v35 = vsel %vm440_vm4, %v435_v27, %v437_v29  ;;  %v453_v36 = vsel %vm248_vm1, %v439_v30, 0 }
  0x90   : > { %2415 = vmatmul.mubr.msk.bf16.vlgmr.msra.gmra.mxu0 %vm244_vm3, %v2413_v22  ;;  %v447_v38 = vsel %vm248_vm1, %v441_v35, 0 }
  0x91   : > { %366 = vmatpush1.bf16.msra.mxu0 %v343_v28  ;;  %383 = vmatprep.mubr.bf16.mxu0 %v2688_v7 }
  0x92   : > { %2421 = vmatprep.subr.msk.bf16.mxu0 %vm248_vm1, %v442_v31  ;;  %v542_v34 = vpop.permute.xlu0 %541  ;;  %v544_v37 = vpop.permute.xlu1 %543  ;;  %v2444_v31 = vld [vmem:[%s3231_s1 + $0x10] sm:$0x3] }
  0x93   : > { %2533 = vmatmul.mubr.msk.bf16.vlgmr.msra.gmra.mxu1 %vm244_vm3, %v215_v33  ;;  %v548_v44 = vsel %vm547_vm5, %v542_v34, %v544_v37 }
  0x94   : > { %2537 = vmatpush3.bf16.msra.mxu1 %v453_v36  ;;  %2538 = vmatprep.mubr.msk.bf16.mxu1 %vm2687_vm0, %v2686_v3  ;;  %v554_v47 = vsel %vm248_vm1, %v548_v44, 0 }
  0x95   : > { %2542 = vmatprep.subr.bf16.mxu1 %v2686_v3 }
  0x96   : > { %v546_v39 = vpop.permute.xlu0 %545  ;;  %v649_v41 = vpop.permute.xlu1 %648 }
  0x97   : > { %v549_v40 = vsel %vm547_vm5, %v544_v37, %v546_v39  ;;  %v560_v45 = vsel %vm248_vm1, %v546_v39, 0  ;;  %v2449_v37 = vld [vmem:[%s3231_s1 + $0x2] sm:$0x3] }
  0x98   : > { %2418 = vmatmul.mubr.msk.bf16.vlgmr.msra.gmra.mxu0 %vm244_vm3, %v215_v33 }
  0x99   : > { %470 = vmatpush1.bf16.msra.mxu0 %v447_v38  ;;  %487 = vmatprep.mubr.bf16.mxu0 %v2688_v7  ;;  %v1434_v38 = vsel %vm248_vm1, %v2816_v17, 0  ;;  %v1304_v17 = vld [vmem:[%s3231_s1] sm:$0x3] }
  0x9a   : > { %2425 = vmatprep.subr.msk.bf16.mxu0 %vm248_vm1, %v549_v40  ;;  %v651_v43 = vpop.permute.xlu0 %650  ;;  %v653_v46 = vpop.permute.xlu1 %652  ;;  %v1428_v40 = vsel %vm248_vm1, %v2806_v14, 0 }
  0x9b   : > { %2539 = vmatmul.mubr.msk.bf16.vlgmr.msra.gmra.mxu1 %vm244_vm3, %v2420_v42  ;;  %v656_v49 = vsel %vm654_vm6, %v651_v43, %v653_v46  ;;  %v655_v52 = vsel %vm654_vm6, %v649_v41, %v651_v43  ;;  %v667_v53 = vsel %vm248_vm1, %v653_v46, 0 }
  0x9c   : > { %2543 = vmatpush3.bf16.msra.mxu1 %v560_v45  ;;  %2544 = vmatprep.mubr.msk.bf16.mxu1 %vm2687_vm0, %v2686_v3  ;;  %v661_v55 = vsel %vm248_vm1, %v655_v52, 0 }
  0x9d   : > { %2548 = vmatprep.subr.bf16.mxu1 %v2686_v3 }
  0x9e   : > { %v756_v48 = vpop.permute.xlu0 %755  ;;  %v758_v50 = vpop.permute.xlu1 %757 }
  0x9f   : > { %v762_v60 = vsel %vm761_vm7, %v756_v48, %v758_v50 }
  0xa0   : > { %2422 = vmatmul.mubr.msk.bf16.vlgmr.msra.gmra.mxu0 %vm244_vm3, %v2420_v42  ;;  %v768_v63 = vsel %vm248_vm1, %v762_v60, 0 }
  0xa1   : > { %577 = vmatpush1.bf16.msra.mxu0 %v554_v47  ;;  %594 = vmatprep.mubr.bf16.mxu0 %v2688_v7 }
  0xa2   : > { %2429 = vmatprep.subr.msk.bf16.mxu0 %vm248_vm1, %v656_v49  ;;  %v760_v54 = vpop.permute.xlu0 %759  ;;  %v863_v56 = vpop.permute.xlu1 %862  ;;  %v2456_v49 = vld [vmem:[%s3231_s1 + $0x4] sm:$0x3] }
  0xa3   : > { %2545 = vmatmul.mubr.msk.bf16.vlgmr.msra.gmra.mxu1 %vm244_vm3, %v2424_v51  ;;  %v763_v57 = vsel %vm761_vm7, %v758_v50, %v760_v54  ;;  %v774_v61 = vsel %vm248_vm1, %v760_v54, 0 }
  0xa4   : > { %2549 = vmatpush3.bf16.msra.mxu1 %v667_v53  ;;  %2550 = vmatprep.mubr.msk.bf16.mxu1 %vm2687_vm0, %v2686_v3 }
  0xa5   : > { %2554 = vmatprep.subr.bf16.mxu1 %v2686_v3 }
  0xa6   : > { %v865_v58 = vpop.permute.xlu0 %864  ;;  %v867_v62 = vpop.permute.xlu1 %866 }
  0xa7   : > { %v870_v1 = vsel %vm868_vm8, %v865_v58, %v867_v62  ;;  %v869_v6 = vsel %vm868_vm8, %v863_v56, %v865_v58  ;;  %v881_v8 = vsel %vm248_vm1, %v867_v62, 0 }
  0xa8   : > { %2426 = vmatmul.mubr.msk.bf16.vlgmr.msra.gmra.mxu0 %vm244_vm3, %v2424_v51  ;;  %v875_v10 = vsel %vm248_vm1, %v869_v6, 0 }
  0xa9   : > { %684 = vmatpush1.bf16.msra.mxu0 %v661_v55  ;;  %701 = vmatprep.mubr.bf16.mxu0 %v2688_v7 }
  0xaa   : > { %2433 = vmatprep.subr.msk.bf16.mxu0 %vm248_vm1, %v763_v57  ;;  %v970_v0 = vpop.permute.xlu0 %969  ;;  %v972_v2 = vpop.permute.xlu1 %971  ;;  %v2460_v57 = vld [vmem:[%s3231_s1 + $0x6] sm:$0x3] }
  0xab   : > { %2551 = vmatmul.mubr.msk.bf16.vlgmr.msra.gmra.mxu1 %vm244_vm3, %v2428_v59  ;;  %v976_v18 = vsel %vm975_vm9, %v970_v0, %v972_v2 }
  0xac   : > { %2555 = vmatpush3.bf16.msra.mxu1 %v774_v61  ;;  %2556 = vmatprep.mubr.msk.bf16.mxu1 %vm2687_vm0, %v2686_v3  ;;  %v982_v21 = vsel %vm248_vm1, %v976_v18, 0 }
  0xad   : > { %2560 = vmatprep.subr.bf16.mxu1 %v2686_v3 }
  0xae   : > { %v974_v9 = vpop.permute.xlu0 %973  ;;  %v1077_v11 = vpop.permute.xlu1 %1076 }
  0xaf   : > { %v977_v12 = vsel %vm975_vm9, %v972_v2, %v974_v9  ;;  %v988_v19 = vsel %vm248_vm1, %v974_v9, 0 }
  0xb0   : > { %2430 = vmatmul.mubr.msk.bf16.vlgmr.msra.gmra.mxu0 %vm244_vm3, %v2428_v59 }
  0xb1   : > { %791 = vmatpush1.bf16.msra.mxu0 %v768_v63  ;;  %808 = vmatprep.mubr.bf16.mxu0 %v2688_v7 }
  0xb2   : > { %2437 = vmatprep.subr.msk.bf16.mxu0 %vm248_vm1, %v870_v1  ;;  %v1079_v13 = vpop.permute.xlu0 %1078  ;;  %v1081_v20 = vpop.permute.xlu1 %1080  ;;  %v2464_v1 = vld [vmem:[%s3231_s1 + $0x8] sm:$0x3] }
  0xb3   : > { %2557 = vmatmul.mubr.msk.bf16.vlgmr.msra.gmra.mxu1 %vm244_vm3, %v2432_v5  ;;  %v1084_v23 = vsel %vm1082_vm10, %v1079_v13, %v1081_v20  ;;  %v1083_v25 = vsel %vm1082_vm10, %v1077_v11, %v1079_v13  ;;  %v1095_v26 = vsel %vm248_vm1, %v1081_v20, 0 }
  0xb4   : > { %2561 = vmatpush3.bf16.msra.mxu1 %v881_v8  ;;  %2562 = vmatprep.mubr.msk.bf16.mxu1 %vm2687_vm0, %v2686_v3  ;;  %v1089_v29 = vsel %vm248_vm1, %v1083_v25, 0 }
  0xb5   : > { %2566 = vmatprep.subr.bf16.mxu1 %v2686_v3 }
  0xb6   : > { %v1324_v22 = vpop.permute.xlu0 %1323  ;;  %v1326_v27 = vpop.permute.xlu1 %1325 }
  0xb7   : > { %v1329_v32 = vsel %vm241_vm2, %v1324_v22, %v1326_v27  ;;  %v2472_v22 = vld [vmem:[%s3231_s1 + $0xc] sm:$0x3] }
  0xb8   : > { %2434 = vmatmul.mubr.msk.bf16.vlgmr.msra.gmra.mxu0 %vm244_vm3, %v2432_v5  ;;  %v1335_v34 = vsel %vm248_vm1, %v1329_v32, 0 }
  0xb9   : > { %898 = vmatpush1.bf16.msra.mxu0 %v875_v10  ;;  %915 = vmatprep.mubr.bf16.mxu0 %v2688_v7 }
  0xba   : > { %2441 = vmatprep.subr.msk.bf16.mxu0 %vm248_vm1, %v977_v12  ;;  %v1328_v28 = vpop.permute.xlu0 %1327  ;;  %v1519_v35 = vpop.permute.xlu1 %1518  ;;  %v2468_v12 = vld [vmem:[%s3231_s1 + $0xa] sm:$0x3] }
  0xbb   : > { %2563 = vmatmul.mubr.msk.bf16.vlgmr.msra.gmra.mxu1 %vm244_vm3, %v2436_v15  ;;  %v1330_v30 = vsel %vm241_vm2, %v1326_v27, %v1328_v28  ;;  %v1341_v33 = vsel %vm248_vm1, %v1328_v28, 0  ;;  %vm1300_vm2 = vcmask 396288  }
  0xbc   : > { %2567 = vmatpush3.bf16.msra.mxu1 %v988_v19  ;;  %2568 = vmatprep.mubr.msk.bf16.mxu1 %vm2687_vm0, %v2686_v3 }
  0xbd   : > { %2572 = vmatprep.subr.bf16.mxu1 %v2686_v3 }
  0xbe   : > { %v1521_v36 = vpop.permute.xlu0 %1520  ;;  %v1523_v39 = vpop.permute.xlu1 %1522 }
  0xbf   : > { %v1525_v42 = vsel %vm440_vm4, %v1521_v36, %v1523_v39  ;;  %v1524_v14 = vsel %vm440_vm4, %v1519_v35, %v1521_v36  ;;  %v1536_v43 = vsel %vm248_vm1, %v1523_v39, 0 }
  0xc0   : > { %2438 = vmatmul.mubr.msk.bf16.vlgmr.msra.gmra.mxu0 %vm244_vm3, %v2436_v15  ;;  %v1530_v45 = vsel %vm248_vm1, %v1524_v14, 0 }
  0xc1   : > { %1005 = vmatpush1.bf16.msra.mxu0 %v982_v21  ;;  %1022 = vmatprep.mubr.bf16.mxu0 %v2688_v7 }
  0xc2   : > { %2445 = vmatprep.subr.msk.bf16.mxu0 %vm248_vm1, %v1084_v23  ;;  %v1624_v41 = vpop.permute.xlu0 %1623 }
  0xc3   : > { %2569 = vmatmul.mubr.msk.bf16.vlgmr.msra.gmra.mxu1 %vm244_vm3, %v2440_v24 }
  0xc4   : > { %2573 = vmatpush3.bf16.msra.mxu1 %v1095_v26  ;;  %2574 = vmatprep.mubr.msk.bf16.mxu1 %vm2687_vm0, %v2686_v3 }
  0xc5   : > { %2578 = vmatprep.subr.bf16.mxu1 %v2686_v3 }
  0xc6   : > { %v1628_v44 = vpop.permute.xlu0 %1627 }
  0xc7   : > { %v1641_v51 = vsel %vm248_vm1, %v1628_v44, 0 }
  0xc8   : > { %2442 = vmatmul.mubr.msk.bf16.vlgmr.msra.gmra.mxu0 %vm244_vm3, %v2440_v24 }
  0xc9   : > { %1112 = vmatpush1.bf16.msra.mxu0 %v1089_v29  ;;  %1129 = vmatprep.mubr.bf16.mxu0 %v2688_v7  ;;  %v2476_v29 = vld [vmem:[%s3231_s1 + $0xe] sm:$0x3] }
  0xca   : > { %2450 = vmatprep.subr.msk.bf16.mxu0 %vm248_vm1, %v1330_v30  ;;  %v1731_v48 = vpop.permute.xlu0 %1730 }
  0xcb   : > { %2575 = vmatmul.mubr.msk.bf16.vlgmr.msra.gmra.mxu1 %vm244_vm3, %v2444_v31 }
  0xcc   : > { %2579 = vmatpush3.bf16.msra.mxu1 %v1341_v33  ;;  %2580 = vmatprep.mubr.msk.bf16.mxu1 %vm2687_vm0, %v2686_v3  ;;  %v2480_v33 = vld [vmem:[%s3231_s1 + $0x10] sm:$0x3] }
  0xcd   : > { %2584 = vmatprep.subr.bf16.mxu1 %v2686_v3 }
  0xce   : > { %v1834_v54 = vpop.permute.xlu0 %1833 }
  0xd0   : > { %2446 = vmatmul.mubr.msk.bf16.vlgmr.msra.gmra.mxu0 %vm244_vm3, %v2444_v31 }
  0xd1   : > { %1358 = vmatpush1.bf16.msra.mxu0 %v1335_v34  ;;  %1375 = vmatprep.mubr.bf16.mxu0 %v2688_v7 }
  0xd2   : > { %2453 = vmatprep.subr.msk.bf16.mxu0 %vm248_vm1, %v2812_v16  ;;  %v1626_v16 = vpop.permute.xlu1 %1625  ;;  %v1838_v60 = vpop.permute.xlu0 %1837 }
  0xd3   : > { %2581 = vmatmul.mubr.msk.bf16.vlgmr.msra.gmra.mxu1 %vm244_vm3, %v2449_v37  ;;  %v1630_v47 = vsel %vm547_vm5, %v1626_v16, %v1628_v44  ;;  %v1629_v50 = vsel %vm547_vm5, %v1624_v41, %v1626_v16  ;;  %v1851_v5 = vsel %vm248_vm1, %v1838_v60, 0 }
  0xd4   : > { %2585 = vmatpush3.bf16.msra.mxu1 %v1434_v38  ;;  %2586 = vmatprep.mubr.msk.bf16.mxu1 %vm2687_vm0, %v2686_v3  ;;  %v1635_v53 = vsel %vm248_vm1, %v1629_v50, 0 }
  0xd5   : > { %2590 = vmatprep.subr.bf16.mxu1 %v2686_v3 }
  0xd6   : > { %v1729_v46 = vpop.permute.xlu1 %1728  ;;  %v1941_v0 = vpop.permute.xlu0 %1940 }
  0xd7   : > { %v1734_v58 = vsel %vm654_vm6, %v1729_v46, %v1731_v48 }
  0xd8   : > { %2451 = vmatmul.mubr.msk.bf16.vlgmr.msra.gmra.mxu0 %vm244_vm3, %v2449_v37  ;;  %v1740_v61 = vsel %vm248_vm1, %v1734_v58, 0 }
  0xd9   : > { %1451 = vmatpush1.bf16.msra.mxu0 %v1428_v40  ;;  %1468 = vmatprep.mubr.bf16.mxu0 %v2688_v7 }
  0xda   : > { %2457 = vmatprep.subr.msk.bf16.mxu0 %vm248_vm1, %v1525_v42  ;;  %v1733_v52 = vpop.permute.xlu1 %1732  ;;  %v2044_v9 = vpop.permute.xlu0 %2043 }
  0xdb   : > { %2587 = vmatmul.mubr.msk.bf16.vlgmr.msra.gmra.mxu1 %vm244_vm3, %v1304_v17  ;;  %v1735_v55 = vsel %vm654_vm6, %v1731_v48, %v1733_v52  ;;  %v1746_v59 = vsel %vm248_vm1, %v1733_v52, 0 }
  0xdc   : > { %2591 = vmatpush3.bf16.msra.mxu1 %v1536_v43  ;;  %2592 = vmatprep.mubr.msk.bf16.mxu1 %vm2687_vm0, %v2686_v3 }
  0xdd   : > { %2596 = vmatprep.subr.bf16.mxu1 %v2686_v3 }
  0xde   : > { %v1836_v56 = vpop.permute.xlu1 %1835  ;;  %v2048_v18 = vpop.permute.xlu0 %2047 }
  0xdf   : > { %v1840_v63 = vsel %vm761_vm7, %v1836_v56, %v1838_v60  ;;  %v1839_v2 = vsel %vm761_vm7, %v1834_v54, %v1836_v56  ;;  %v2061_v24 = vsel %vm248_vm1, %v2048_v18, 0 }
  0xe0   : > { %2454 = vmatmul.mubr.msk.bf16.vlgmr.msra.gmra.mxu0 %vm244_vm3, %v1304_v17  ;;  %v1845_v8 = vsel %vm248_vm1, %v1839_v2, 0 }
  0xe1   : > { %1553 = vmatpush1.bf16.msra.mxu0 %v1530_v45  ;;  %1570 = vmatprep.mubr.bf16.mxu0 %v2688_v7 }
  0xe2   : > { %2461 = vmatprep.subr.msk.bf16.mxu0 %vm248_vm1, %v1630_v47  ;;  %v1939_v62 = vpop.permute.xlu1 %1938  ;;  %v2151_v25 = vpop.permute.xlu0 %2150 }
  0xe3   : > { %2593 = vmatmul.mubr.msk.bf16.vlgmr.msra.gmra.mxu1 %vm244_vm3, %v2456_v49  ;;  %v1944_v13 = vsel %vm868_vm8, %v1939_v62, %v1941_v0 }
  0xe4   : > { %2597 = vmatpush3.bf16.msra.mxu1 %v1641_v51  ;;  %2598 = vmatprep.mubr.msk.bf16.mxu1 %vm2687_vm0, %v2686_v3  ;;  %v1950_v19 = vsel %vm248_vm1, %v1944_v13, 0 }
  0xe5   : > { %2602 = vmatprep.subr.bf16.mxu1 %v2686_v3 }
  0xe6   : > { %v1943_v6 = vpop.permute.xlu1 %1942 }
  0xe7   : > { %v1945_v10 = vsel %vm868_vm8, %v1941_v0, %v1943_v6  ;;  %v1956_v15 = vsel %vm248_vm1, %v1943_v6, 0 }
  0xe8   : > { %2458 = vmatmul.mubr.msk.bf16.vlgmr.msra.gmra.mxu0 %vm244_vm3, %v2456_v49 }
  0xe9   : > { %1658 = vmatpush1.bf16.msra.mxu0 %v1635_v53  ;;  %1675 = vmatprep.mubr.bf16.mxu0 %v2688_v7 }
  0xea   : > { %2465 = vmatprep.subr.msk.bf16.mxu0 %vm248_vm1, %v1735_v55  ;;  %v2046_v11 = vpop.permute.xlu1 %2045 }
  0xeb   : > { %2599 = vmatmul.mubr.msk.bf16.vlgmr.msra.gmra.mxu1 %vm244_vm3, %v2460_v57  ;;  %v2050_v21 = vsel %vm975_vm9, %v2046_v11, %v2048_v18  ;;  %v2049_v23 = vsel %vm975_vm9, %v2044_v9, %v2046_v11 }
  0xec   : > { %2603 = vmatpush3.bf16.msra.mxu1 %v1746_v59  ;;  %2604 = vmatprep.mubr.msk.bf16.mxu1 %vm2687_vm0, %v2686_v3  ;;  %v2055_v27 = vsel %vm248_vm1, %v2049_v23, 0 }
  0xed   : > { %2608 = vmatprep.subr.bf16.mxu1 %v2686_v3 }
  0xee   : > { %v2149_v20 = vpop.permute.xlu1 %2148 }
  0xef   : > { %v2154_v30 = vsel %vm1082_vm10, %v2149_v20, %v2151_v25 }
  0xf0   : > { %2462 = vmatmul.mubr.msk.bf16.vlgmr.msra.gmra.mxu0 %vm244_vm3, %v2460_v57  ;;  %v2160_v32 = vsel %vm248_vm1, %v2154_v30, 0 }
  0xf1   : > { %1763 = vmatpush1.bf16.msra.mxu0 %v1740_v61  ;;  %1780 = vmatprep.mubr.bf16.mxu0 %v2688_v7 }
  0xf2   : > { %2469 = vmatprep.subr.msk.bf16.mxu0 %vm248_vm1, %v1840_v63  ;;  %v2153_v26 = vpop.permute.xlu1 %2152 }
  0xf3   : > { %2605 = vmatmul.mubr.msk.bf16.vlgmr.msra.gmra.mxu1 %vm244_vm3, %v2464_v1  ;;  %v2155_v28 = vsel %vm1082_vm10, %v2151_v25, %v2153_v26  ;;  %v2166_v31 = vsel %vm248_vm1, %v2153_v26, 0 }
  0xf4   : > { %2609 = vmatpush3.bf16.msra.mxu1 %v1851_v5  ;;  %2610 = vmatprep.mubr.msk.bf16.mxu1 %vm2687_vm0, %v2686_v3 }
  0xf5   : > { %2614 = vmatprep.subr.bf16.mxu1 %v2686_v3 }
  0xf8   : > { %2466 = vmatmul.mubr.msk.bf16.vlgmr.msra.gmra.mxu0 %vm244_vm3, %v2464_v1 }
  0xf9   : > { %1868 = vmatpush1.bf16.msra.mxu0 %v1845_v8  ;;  %1885 = vmatprep.mubr.bf16.mxu0 %v2688_v7 }
  0xfa   : > { %2473 = vmatprep.subr.msk.bf16.mxu0 %vm248_vm1, %v1945_v10 }
  0xfb   : > { %2611 = vmatmul.mubr.msk.bf16.vlgmr.msra.gmra.mxu1 %vm244_vm3, %v2468_v12 }
  0xfc   : > { %2615 = vmatpush3.bf16.msra.mxu1 %v1956_v15  ;;  %2616 = vmatprep.mubr.msk.bf16.mxu1 %vm2687_vm0, %v2686_v3 }
  0xfd   : > { %2620 = vmatprep.subr.bf16.mxu1 %v2686_v3 }
 0x100   : > { %2470 = vmatmul.mubr.msk.bf16.vlgmr.msra.gmra.mxu0 %vm244_vm3, %v2468_v12 }
 0x101   : > { %1973 = vmatpush1.bf16.msra.mxu0 %v1950_v19  ;;  %1990 = vmatprep.mubr.bf16.mxu0 %v2688_v7 }
 0x102   : > { %2477 = vmatprep.subr.msk.bf16.mxu0 %vm248_vm1, %v2050_v21 }
 0x103   : > { %2617 = vmatmul.mubr.msk.bf16.vlgmr.msra.gmra.mxu1 %vm244_vm3, %v2472_v22 }
 0x104   : > { %2621 = vmatpush3.bf16.msra.mxu1 %v2061_v24  ;;  %2622 = vmatprep.mubr.msk.bf16.mxu1 %vm2687_vm0, %v2686_v3 }
 0x105   : > { %2626 = vmatprep.subr.bf16.mxu1 %v2686_v3 }
 0x108   : > { %2474 = vmatmul.mubr.msk.bf16.vlgmr.msra.gmra.mxu0 %vm244_vm3, %v2472_v22 }
 0x109   : > { %2078 = vmatpush1.bf16.msra.mxu0 %v2055_v27  ;;  %2095 = vmatprep.mubr.bf16.mxu0 %v2688_v7 }
 0x10a   : > { %2481 = vmatprep.subr.msk.bf16.mxu0 %vm248_vm1, %v2155_v28  ;;  %vm1298_vm1 = vmor %vm1297_vm15, %vm1296_vm14 }
 0x10b   : > { %2623 = vmatmul.mubr.msk.bf16.vlgmr.msra.gmra.mxu1 %vm244_vm3, %v2476_v29 }
 0x10c   : > { %2627 = vmatpush3.bf16.msra.mxu1 %v2166_v31  ;;  %2628 = vmatprep.mubr.msk.bf16.mxu1 %vm2687_vm0, %v2686_v3  ;;  %vm1291_vm0 = vcmask 154624  }
 0x110   : > { %2478 = vmatmul.mubr.msk.bf16.vlgmr.msra.gmra.mxu0 %vm244_vm3, %v2476_v29 }
 0x111   : > { %2183 = vmatpush1.bf16.msra.mxu0 %v2160_v32  ;;  %2200 = vmatprep.mubr.bf16.mxu0 %v2688_v7 }
 0x113   : > { %2629 = vmatmul.mubr.msk.bf16.vlgmr.msra.gmra.mxu1 %vm244_vm3, %v2480_v33 }
 0x118   : > { %2482 = vmatmul.mubr.msk.bf16.vlgmr.msra.gmra.mxu0 %vm244_vm3, %v2480_v33 }
 0x14b   : > { %v333_v34 = vpop.f32.mrf.mxu1 }
 0x14d   : > { %v2528_v35 = vpop.f32.mrf.mxu1 }
 0x14f   : > { %v336_v37 = vpop.f32.mrf.mxu1 }
 0x150   : > { %v292_v36 = vpop.f32.mrf.mxu0 }
 0x151   : > { %v2529_v39 = vpop.f32.mrf.mxu1 }
 0x152   : > { %v294_v38 = vpop.f32.mrf.mxu0 }
 0x153   : > { %v426_v41 = vpop.f32.mrf.mxu1 }
 0x154   : > { %v296_v40 = vpop.f32.mrf.mxu0  ;;  %v427_v22 = vadd.f32 %v426_v41, %v333_v34 }
 0x155   : > { %v2534_v16 = vpop.f32.mrf.mxu1 }
 0x156   : > { %v297_v42 = vpop.f32.mrf.mxu0 }
 0x157   : > { %v429_v7 = vpop.f32.mrf.mxu1 }
 0x158   : > { %v385_v17 = vpop.f32.mrf.mxu0 }
 0x159   : > { %v2535_v43 = vpop.f32.mrf.mxu1  ;;  %v386_v27 = vadd.f32 %v385_v17, %v292_v36 }
 0x15a   : > { %v387_v14 = vpop.f32.mrf.mxu0 }
 0x15b   : > { %v530_v45 = vpop.f32.mrf.mxu1  ;;  %v388_v31 = vadd.f32 %v387_v14, %v294_v38  ;;  %v1200_v38 = vsub.s32 2, %v2735_v4 }
 0x15c   : > { %v389_v44 = vpop.f32.mrf.mxu0  ;;  %v538_v25 = vadd.f32 %v530_v45, %v427_v22 }
 0x15d   : > { %v2540_v47 = vpop.f32.mrf.mxu1 }
 0x15e   : > { %v390_v46 = vpop.f32.mrf.mxu0 }
 0x15f   : > { %v533_v49 = vpop.f32.mrf.mxu1 }
 0x160   : > { %v489_v48 = vpop.f32.mrf.mxu0 }
 0x161   : > { %v2541_v51 = vpop.f32.mrf.mxu1  ;;  %v536_v32 = vadd.f32 %v489_v48, %v386_v27 }
 0x162   : > { %v491_v50 = vpop.f32.mrf.mxu0 }
 0x163   : > { %v637_v53 = vpop.f32.mrf.mxu1  ;;  %v537_v39 = vadd.f32 %v491_v50, %v388_v31  ;;  %v213_v50 = vld [vmem:[%s3233_s3] sm:$0x7] }
 0x164   : > { %v493_v52 = vpop.f32.mrf.mxu0  ;;  %v645_v29 = vadd.f32 %v637_v53, %v538_v25 }
 0x165   : > { %v2546_v55 = vpop.f32.mrf.mxu1  ;;  %v1192_v52 = vsub.s32 0, %v2735_v4 }
 0x166   : > { %v494_v54 = vpop.f32.mrf.mxu0  ;;  %v3122_v55 = vpop.permute.xlu0 %1183 }
 0x167   : > { %v640_v57 = vpop.f32.mrf.mxu1 }
 0x168   : > { %v596_v56 = vpop.f32.mrf.mxu0 }
 0x169   : > { %v2547_v59 = vpop.f32.mrf.mxu1  ;;  %v643_v40 = vadd.f32 %v596_v56, %v536_v32 }
 0x16a   : > { %v598_v58 = vpop.f32.mrf.mxu0  ;;  %v1196_v59 = vsub.s32 1, %v2735_v4 }
 0x16b   : > { %v744_v61 = vpop.f32.mrf.mxu1  ;;  %v644_v43 = vadd.f32 %v598_v58, %v537_v39 }
 0x16c   : > { %v600_v60 = vpop.f32.mrf.mxu0  ;;  %v752_v35 = vadd.f32 %v744_v61, %v645_v29  ;;  %v3125_v61 = vrot.slane %v213_v50, %v1200_v38 }
 0x16d   : > { %v2552_v63 = vpop.f32.mrf.mxu1 }
 0x16e   : > { %v601_v62 = vpop.f32.mrf.mxu0 }
 0x16f   : > { %v747_v1 = vpop.f32.mrf.mxu1 }
 0x170   : > { %v703_v0 = vpop.f32.mrf.mxu0 }
 0x171   : > { %v2553_v5 = vpop.f32.mrf.mxu1  ;;  %v750_v34 = vadd.f32 %v703_v0, %v643_v40  ;;  %v3127_v0 = vrot.slane %v213_v50, %v1192_v52 }
 0x172   : > { %v705_v2 = vpop.f32.mrf.mxu0 }
 0x173   : > { %v851_v8 = vpop.f32.mrf.mxu1  ;;  %v751_v46 = vadd.f32 %v705_v2, %v644_v43 }
 0x174   : > { %v707_v6 = vpop.f32.mrf.mxu0  ;;  %v859_v16 = vadd.f32 %v851_v8, %v752_v35 }
 0x175   : > { %v2558_v10 = vpop.f32.mrf.mxu1 }
 0x176   : > { %v708_v9 = vpop.f32.mrf.mxu0 }
 0x177   : > { %v854_v12 = vpop.f32.mrf.mxu1  ;;  %v3131_v9 = vrot.slane %v213_v50, %v1196_v59 }
 0x178   : > { %v810_v11 = vpop.f32.mrf.mxu0 }
 0x179   : > { %v2559_v15 = vpop.f32.mrf.mxu1  ;;  %v857_v36 = vadd.f32 %v810_v11, %v750_v34 }
 0x17a   : > { %v812_v13 = vpop.f32.mrf.mxu0 }
 0x17b   : > { %v958_v19 = vpop.f32.mrf.mxu1  ;;  %v858_v14 = vadd.f32 %v812_v13, %v751_v46 }
 0x17c   : > { %v814_v18 = vpop.f32.mrf.mxu0  ;;  %v966_v44 = vadd.f32 %v958_v19, %v859_v16 }
 0x17d   : > { %v2564_v21 = vpop.f32.mrf.mxu1 }
 0x17e   : > { %v815_v20 = vpop.f32.mrf.mxu0 }
 0x17f   : > { %v961_v24 = vpop.f32.mrf.mxu1 }
 0x180   : > { %v917_v23 = vpop.f32.mrf.mxu0 }
 0x181   : > { %v2565_v28 = vpop.f32.mrf.mxu1  ;;  %v964_v48 = vadd.f32 %v917_v23, %v857_v36 }
 0x182   : > { %v919_v26 = vpop.f32.mrf.mxu0 }
 0x183   : > { %v1065_v33 = vpop.f32.mrf.mxu1  ;;  %v965_v56 = vadd.f32 %v919_v26, %v858_v14 }
 0x184   : > { %v921_v30 = vpop.f32.mrf.mxu0  ;;  %v1073_v47 = vadd.f32 %v1065_v33, %v966_v44 }
 0x185   : > { %v2570_v42 = vpop.f32.mrf.mxu1 }
 0x186   : > { %v922_v37 = vpop.f32.mrf.mxu0 }
 0x187   : > { %v1068_v41 = vpop.f32.mrf.mxu1 }
 0x188   : > { %v1024_v7 = vpop.f32.mrf.mxu0 }
 0x189   : > { %v2571_v17 = vpop.f32.mrf.mxu1  ;;  %v1071_v57 = vadd.f32 %v1024_v7, %v964_v48 }
 0x18a   : > { %v1026_v45 = vpop.f32.mrf.mxu0 }
 0x18b   : > { %v1172_v51 = vpop.f32.mrf.mxu1  ;;  %v1072_v62 = vadd.f32 %v1026_v45, %v965_v56 }
 0x18c   : > { %v1028_v49 = vpop.f32.mrf.mxu0  ;;  %v1180_v53 = vadd.f32 %v1172_v51, %v1073_v47 }
 0x18d   : > { %v2576_v58 = vpop.f32.mrf.mxu1 }
 0x18e   : > { %v1029_v54 = vpop.f32.mrf.mxu0  ;;  %v1188_v2 = vadd.f32 %v3122_v55, %v1180_v53 }
 0x18f   : > { %v1175_v1 = vpop.f32.mrf.mxu1 }
 0x190   : > { %v1131_v60 = vpop.f32.mrf.mxu0  ;;  %v3140_v15 = vmul.f32 %v3125_v61, %v1188_v2 }
 0x191   : > { %v1178_v63 = vadd.f32 %v1131_v60, %v1071_v57  ;;  %v2577_v10 = vpop.f32.mrf.mxu1 }
 0x192   : > { %v1133_v5 = vpop.f32.mrf.mxu0  ;;  %v1228_v27 = vmul.f32 %v3140_v15, %v3140_v15  ;;  %v1213_v31 = vsel %vm1212_vm12, %v3140_v15, 0.0 }
 0x193   : > { %v1186_v6 = vadd.f32 %v3122_v55, %v1178_v63  ;;  %v1179_v8 = vadd.f32 %v1133_v5, %v1072_v62  ;;  %v3137_v13 = vpop.f32.mrf.mxu1 }
 0x194   : > { %v1135_v11 = vpop.f32.mrf.mxu0  ;;  %v1232_v42 = vsel %vm1212_vm12, %v1228_v27, 0.0 }
 0x195   : > { %v3134_v4 = vmul.f32 %v3127_v0, %v1186_v6  ;;  %v1187_v12 = vadd.f32 %v3122_v55, %v1179_v8  ;;  %v2582_v20 = vpop.f32.mrf.mxu1 }
 0x196   : > { %v1136_v18 = vpop.f32.mrf.mxu0 }
 0x197   : > { %v3143_v19 = vmul.f32 %v3131_v9, %v1187_v12  ;;  %v1226_v21 = vmul.f32 %v3134_v4, %v3134_v4  ;;  %v1421_v23 = vpop.f32.mrf.mxu1  ;;  %v1209_v24 = vsel %vm1208_vm11, %v3134_v4, 0.0 }
 0x198   : > { %v3147_v22 = vpop.f32.mrf.mxu0 }
 0x199   : > { %v1210_v25 = vsel %vm1208_vm11, %v3143_v19, 0.0  ;;  %v1227_v26 = vmul.f32 %v3143_v19, %v3143_v19  ;;  %v2583_v30 = vpop.f32.mrf.mxu1  ;;  %v1229_v32 = vsel %vm1208_vm11, %v1226_v21, 0.0 }
 0x19a   : > { %v3157_v28 = vpop.f32.mrf.mxu0  ;;  %v1211_v29 = vadd.f32 %v1210_v25, %v1209_v24 }
 0x19b   : > { %v1230_v33 = vsel %vm1208_vm11, %v1227_v26, 0.0  ;;  %v1511_v40 = vpop.f32.mrf.mxu1 }
 0x19c   : > { %v1381_v35 = vpop.f32.mrf.mxu0  ;;  %v1214_v37 = vadd.f32 %v1213_v31, %v1211_v29  ;;  %v1231_v39 = vadd.f32 %v1230_v33, %v1229_v32  ;;  %v1512_v29 = vadd.f32 %v1511_v40, %v3137_v13 }
 0x19d   : > { %v2588_v43 = vpop.f32.mrf.mxu1 }
 0x19e   : > { %v1382_v16 = vpop.f32.mrf.mxu0  ;;  %1215 = vadd.xlane.f32.xlu1 %v1214_v37  ;;  %v1233_v7 = vadd.f32 %v1232_v42, %v1231_v39 }
 0x19f   : > { %v1514_v41 = vpop.f32.mrf.mxu1 }
 0x1a0   : > { %v1470_v34 = vpop.f32.mrf.mxu0  ;;  %1234 = vadd.xlane.f32.xlu0 %v1233_v7 }
 0x1a1   : > { %v2589_v45 = vpop.f32.mrf.mxu1  ;;  %v1471_v35 = vadd.f32 %v1470_v34, %v3147_v22 }
 0x1a2   : > { %v1472_v44 = vpop.f32.mrf.mxu0 }
 0x1a3   : > { %v1613_v36 = vpop.f32.mrf.mxu1  ;;  %v1473_v16 = vadd.f32 %v1472_v44, %v3157_v28 }
 0x1a4   : > { %v1474_v46 = vpop.f32.mrf.mxu0  ;;  %v1621_v32 = vadd.f32 %v1613_v36, %v1512_v29 }
 0x1a5   : > { %v2594_v47 = vpop.f32.mrf.mxu1 }
 0x1a6   : > { %v1475_v17 = vpop.f32.mrf.mxu0 }
 0x1a7   : > { %v1616_v38 = vpop.f32.mrf.mxu1 }
 0x1a8   : > { %v1572_v49 = vpop.f32.mrf.mxu0 }
 0x1a9   : > { %v2595_v48 = vpop.f32.mrf.mxu1  ;;  %v1619_v7 = vadd.f32 %v1572_v49, %v1471_v35 }
 0x1aa   : > { %v1574_v14 = vpop.f32.mrf.mxu0 }
 0x1ab   : > { %v1718_v50 = vpop.f32.mrf.mxu1  ;;  %v1620_v46 = vadd.f32 %v1574_v14, %v1473_v16 }
 0x1ac   : > { %v1576_v51 = vpop.f32.mrf.mxu0  ;;  %v1726_v39 = vadd.f32 %v1718_v50, %v1621_v32 }
 0x1ad   : > { %v2600_v53 = vpop.f32.mrf.mxu1 }
 0x1ae   : > { %v1577_v52 = vpop.f32.mrf.mxu0 }
 0x1af   : > { %v1721_v56 = vpop.f32.mrf.mxu1 }
 0x1b0   : > { %v1677_v54 = vpop.f32.mrf.mxu0 }
 0x1b1   : > { %v2601_v58 = vpop.f32.mrf.mxu1  ;;  %v1724_v17 = vadd.f32 %v1677_v54, %v1619_v7 }
 0x1b2   : > { %v1679_v57 = vpop.f32.mrf.mxu0 }
 0x1b3   : > { %v1823_v60 = vpop.f32.mrf.mxu1  ;;  %v1725_v40 = vadd.f32 %v1679_v57, %v1620_v46 }
 0x1b4   : > { %v1681_v59 = vpop.f32.mrf.mxu0  ;;  %v1831_v41 = vadd.f32 %v1823_v60, %v1726_v39 }
 0x1b5   : > { %v2606_v63 = vpop.f32.mrf.mxu1 }
 0x1b6   : > { %v1682_v62 = vpop.f32.mrf.mxu0 }
 0x1b7   : > { %v1826_v2 = vpop.f32.mrf.mxu1 }
 0x1b8   : > { %v1782_v1 = vpop.f32.mrf.mxu0 }
 0x1b9   : > { %v2607_v6 = vpop.f32.mrf.mxu1  ;;  %v1829_v48 = vadd.f32 %v1782_v1, %v1724_v17 }
 0x1ba   : > { %v1784_v5 = vpop.f32.mrf.mxu0 }
 0x1bb   : > { %v1928_v10 = vpop.f32.mrf.mxu1  ;;  %v1830_v22 = vadd.f32 %v1784_v5, %v1725_v40 }
 0x1bc   : > { %v1786_v8 = vpop.f32.mrf.mxu0  ;;  %v1936_v38 = vadd.f32 %v1928_v10, %v1831_v41 }
 0x1bd   : > { %v2612_v12 = vpop.f32.mrf.mxu1 }
 0x1be   : > { %v1787_v11 = vpop.f32.mrf.mxu0 }
 0x1bf   : > { %v1931_v20 = vpop.f32.mrf.mxu1 }
 0x1c0   : > { %v1887_v18 = vpop.f32.mrf.mxu0 }
 0x1c1   : > { %v2613_v23 = vpop.f32.mrf.mxu1  ;;  %v1934_v34 = vadd.f32 %v1887_v18, %v1829_v48 }
 0x1c2   : > { %v1889_v21 = vpop.f32.mrf.mxu0 }
 0x1c3   : > { %v2033_v25 = vpop.f32.mrf.mxu1  ;;  %v1935_v28 = vadd.f32 %v1889_v21, %v1830_v22 }
 0x1c4   : > { %v1891_v24 = vpop.f32.mrf.mxu0  ;;  %v2041_v51 = vadd.f32 %v2033_v25, %v1936_v38 }
 0x1c5   : > { %v2618_v27 = vpop.f32.mrf.mxu1 }
 0x1c6   : > { %v1892_v26 = vpop.f32.mrf.mxu0 }
 0x1c7   : > { %v2036_v31 = vpop.f32.mrf.mxu1 }
 0x1c8   : > { %v1992_v30 = vpop.f32.mrf.mxu0 }
 0x1c9   : > { %v2619_v37 = vpop.f32.mrf.mxu1  ;;  %v2039_v44 = vadd.f32 %v1992_v30, %v1934_v34 }
 0x1ca   : > { %v1994_v33 = vpop.f32.mrf.mxu0 }
 0x1cb   : > { %v2138_v43 = vpop.f32.mrf.mxu1  ;;  %v2040_v14 = vadd.f32 %v1994_v33, %v1935_v28 }
 0x1cc   : > { %v1996_v42 = vpop.f32.mrf.mxu0  ;;  %v2146_v53 = vadd.f32 %v2138_v43, %v2041_v51 }
 0x1cd   : > { %v2624_v47 = vpop.f32.mrf.mxu1  ;;  %v2697_v42 = vmov 1  }
 0x1ce   : > { %v1997_v45 = vpop.f32.mrf.mxu0  ;;  %2667 = vset.pattern.permute.xlu1 %v2697_v42 }
 0x1cf   : > { %v2141_v36 = vpop.f32.mrf.mxu1 }
 0x1d0   : > { %v2097_v13 = vpop.f32.mrf.mxu0 }
 0x1d1   : > { %v2625_v50 = vpop.f32.mrf.mxu1  ;;  %v2144_v54 = vadd.f32 %v2097_v13, %v2039_v44 }
 0x1d2   : > { %v2099_v52 = vpop.f32.mrf.mxu0 }
 0x1d3   : > { %v2243_v49 = vpop.f32.mrf.mxu1  ;;  %v2145_v63 = vadd.f32 %v2099_v52, %v2040_v14 }
 0x1d4   : > { %v2101_v56 = vpop.f32.mrf.mxu0  ;;  %v2251_v58 = vadd.f32 %v2243_v49, %v2146_v53 }
 0x1d5   : > { %v2630_v60 = vpop.f32.mrf.mxu1 }
 0x1d6   : > { %v2102_v59 = vpop.f32.mrf.mxu0  ;;  %v2254_v57 = vadd.f32 %v2251_v58, %v3122_v55 }
 0x1d7   : > { %v2246_v2 = vpop.f32.mrf.mxu1 }
 0x1d8   : > { %v2202_v62 = vpop.f32.mrf.mxu0  ;;  %v3170_v12 = vmul.f32 %v2254_v57, %v3125_v61 }
 0x1d9   : > { %v2249_v1 = vadd.f32 %v2202_v62, %v2144_v54  ;;  %v2631_v10 = vpop.f32.mrf.mxu1 }
 0x1da   : > { %v2204_v6 = vpop.f32.mrf.mxu0  ;;  %v2276_v29 = vmul.f32 %v3170_v12, %v3170_v12  ;;  %v2261_v30 = vsel %vm1212_vm12, %v3170_v12, 0.0 }
 0x1db   : > { %v2252_v5 = vadd.f32 %v2249_v1, %v3122_v55  ;;  %v2250_v8 = vadd.f32 %v2204_v6, %v2145_v63  ;;  %v2698_v1 = vmov 2  }
 0x1dc   : > { %v2206_v11 = vpop.f32.mrf.mxu0  ;;  %v2280_v37 = vsel %vm1212_vm12, %v2276_v29, 0.0  ;;  %2668 = vset.pattern.permute.xlu0 %v2698_v1 }
 0x1dd   : > { %v3173_v18 = vmul.f32 %v2252_v5, %v3127_v0  ;;  %v2253_v20 = vadd.f32 %v2250_v8, %v3122_v55 }
 0x1de   : > { %v2207_v21 = vpop.f32.mrf.mxu0 }
 0x1df   : > { %v3177_v23 = vmul.f32 %v2253_v20, %v3131_v9  ;;  %v2274_v24 = vmul.f32 %v3173_v18, %v3173_v18  ;;  %v2258_v25 = vsel %vm1208_vm11, %v3173_v18, 0.0  ;;  %v2676_v20 = vld [vmem:[%s3232_s2] sm:$0xf] }
 0x1e1   : > { %v2259_v26 = vsel %vm1208_vm11, %v3177_v23, 0.0  ;;  %v2275_v27 = vmul.f32 %v3177_v23, %v3177_v23  ;;  %v2277_v31 = vsel %vm1208_vm11, %v2274_v24, 0.0 }
 0x1e2   : > { %v2260_v55 = vadd.f32 %v2259_v26, %v2258_v25 }
 0x1e3   : > { %v2278_v32 = vsel %vm1208_vm11, %v2275_v27, 0.0 }
 0x1e4   : > { %v2262_v33 = vadd.f32 %v2261_v30, %v2260_v55  ;;  %v2279_v35 = vadd.f32 %v2278_v32, %v2277_v31 }
 0x1e6   : > { %2263 = vadd.xlane.f32.xlu1 %v2262_v33  ;;  %v2281_v39 = vadd.f32 %v2280_v37, %v2279_v35 }
 0x1e8   : > { %2282 = vadd.xlane.f32.xlu0 %v2281_v39 }
 0x227   : > { %v1216_v16 = vpop.xlane.xlu1 %1215 }
 0x228   : > { %v1217_v7 = vrot.slane %v1216_v16, 4 }
 0x229   : > { %v1235_v43 = vpop.xlane.xlu0 %1234 }
 0x22a   : > { %v1218_v41 = vadd.f32 %v1217_v7, %v1216_v16  ;;  %v1236_v45 = vrot.slane %v1235_v43, 4 }
 0x22c   : > { %v1219_v46 = vrot.slane %v1218_v41, 2  ;;  %v1237_v17 = vadd.f32 %v1236_v45, %v1235_v43 }
 0x22e   : > { %v1238_v47 = vrot.slane %v1237_v17, 2  ;;  %v1220_v38 = vadd.f32 %v1219_v46, %v1218_v41 }
 0x230   : > { %v1221_v13 = vrot.slane %v1220_v38, 1  ;;  %v1239_v40 = vadd.f32 %v1238_v47, %v1237_v17 }
 0x232   : > { %v1222_v48 = vadd.f32 %v1221_v13, %v1220_v38  ;;  %v1240_v36 = vrot.slane %v1239_v40, 1 }
 0x234   : > { %2634 = vpush %v1222_v48  ;;  %v1241_v51 = vadd.f32 %v1240_v36, %v1239_v40 }
 0x236   : > { %2636 = vpush %v1241_v51 }
 0x265   : > { %s2635_s22 = spop %2634 }
 0x266   : > { %v1224_v52 = vstv %s2635_s22 }
 0x267   : > { %v1225_v22 = vmul.f32 0.0009765625, %v1224_v52  ;;  %s2637_s23 = spop %2636 }
 0x268   : > { %v1243_v34 = vstv %s2637_s23 }
 0x269   : > { %v1245_v50 = vmul.f32 %v1225_v22, %v1225_v22  ;;  %v1244_v53 = vmul.f32 0.0009765625, %v1243_v34 }
 0x26b   : > { %v1246_v56 = vsub.f32 %v1244_v53, %v1245_v50 }
 0x26d   : > { %v1247_v28 = vmax.f32 %v1246_v56, 0.0 }
 0x26f   : > { %v1248_v44 = vadd.f32 1e-05, %v1247_v28  ;;  %v2264_v49 = vpop.xlane.xlu1 %2263 }
 0x270   : > { %v2265_v58 = vrot.slane %v2264_v49, 4 }
 0x271   : > { %2672 = vrsqrt.f32 %v1248_v44  ;;  %v2283_v59 = vpop.xlane.xlu0 %2282 }
 0x272   : > { %v2266_v14 = vadd.f32 %v2265_v58, %v2264_v49  ;;  %v2284_v54 = vrot.slane %v2283_v59, 4 }
 0x274   : > { %v2267_v60 = vrot.slane %v2266_v14, 2  ;;  %v2285_v62 = vadd.f32 %v2284_v54, %v2283_v59 }
 0x276   : > { %v2286_v63 = vrot.slane %v2285_v62, 2  ;;  %v2268_v57 = vadd.f32 %v2267_v60, %v2266_v14 }
 0x278   : > { %v2269_v2 = vrot.slane %v2268_v57, 1  ;;  %v2287_v6 = vadd.f32 %v2286_v63, %v2285_v62 }
 0x27a   : > { %v2270_v5 = vadd.f32 %v2269_v2, %v2268_v57  ;;  %v2288_v8 = vrot.slane %v2287_v6, 1 }
 0x27c   : > { %2638 = vpush %v2270_v5  ;;  %v2289_v10 = vadd.f32 %v2288_v8, %v2287_v6 }
 0x27e   : > { %v2673_v11 = vpop.eup %2672  ;;  %2640 = vpush %v2289_v10 }
 0x27f   : > { %v1250_v21 = vmul.f32 %v2676_v20, %v2673_v11 }
 0x281   : > { %v1251_v24 = vmul.f32 %v1250_v21, %v1225_v22 }
 0x283   : > { %1253 = vrot.lane.b32.xlu1 %v1251_v24, %s2699_s26 }
 0x287   : > { %1259 = vperm.xlu1 %2667, %v1250_v21  }
 0x2ad   : > { %s2639_s27 = spop %2638 }
 0x2ae   : > { %v2272_v25 = vstv %s2639_s27 }
 0x2af   : > { %v2273_v26 = vmul.f32 0.0009765625, %v2272_v25  ;;  %s2641_s28 = spop %2640 }
 0x2b0   : > { %v2291_v27 = vstv %s2641_s28 }
 0x2b1   : > { %v2293_v29 = vmul.f32 %v2273_v26, %v2273_v26  ;;  %v2292_v55 = vmul.f32 0.0009765625, %v2291_v27 }
 0x2b3   : > { %v2294_v30 = vsub.f32 %v2292_v55, %v2293_v29 }
 0x2b5   : > { %v2295_v31 = vmax.f32 %v2294_v30, 0.0 }
 0x2b7   : > { %v2296_v32 = vadd.f32 1e-05, %v2295_v31 }
 0x2b9   : > { %2674 = vrsqrt.f32 %v2296_v32 }
 0x2c6   : > { %v2675_v33 = vpop.eup %2674 }
 0x2c7   : > { %v2298_v35 = vmul.f32 %v2676_v20, %v2675_v33 }
 0x2c9   : > { %2307 = vperm.xlu1 %2667, %v2298_v35   ;;  %v2299_v37 = vmul.f32 %v2298_v35, %v2273_v26 }
 0x2cb   : > { %2301 = vrot.lane.b32.xlu0 %v2299_v37, %s2699_s26 }
 0x2cd   : > { %2669 = vset.pattern.permute.xlu1 %v2698_v1 }
 0x2f5   : > { %v1254_v39 = vpop.permute.xlu1 %1253 }
 0x2f6   : > { %v1256_v42 = vsub.f32 %v2676_v20, %v1254_v39 }
 0x2f8   : > { %1267 = vperm.xlu0 %2668, %v1256_v42  }
 0x302   : > { %v1260_v43 = vpop.permute.xlu1 %1259 }
 0x303   : > { %v1262_v41 = vmul.f32 %v1260_v43, %v3134_v4  ;;  %v1263_v45 = vmul.f32 %v1260_v43, %v3143_v19  ;;  %v1264_v46 = vmul.f32 %v1260_v43, %v3140_v15 }
 0x33d   : > { %v2302_v16 = vpop.permute.xlu0 %2301 }
 0x33e   : > { %v2304_v7 = vsub.f32 %v2676_v20, %v2302_v16 }
 0x340   : > { %2315 = vperm.xlu1 %2669, %v2304_v7  }
 0x344   : > { %v2308_v50 = vpop.permute.xlu1 %2307 }
 0x345   : > { %v2310_v53 = vmul.f32 %v2308_v50, %v3173_v18  ;;  %v2311_v3 = vmul.f32 %v2308_v50, %v3177_v23  ;;  %v2312_v56 = vmul.f32 %v2308_v50, %v3170_v12 }
 0x373   : > { %v1268_v17 = vpop.permute.xlu0 %1267 }
 0x374   : > { %v1270_v47 = vadd.f32 %v1268_v17, %v1262_v41  ;;  %v1271_v38 = vadd.f32 %v1268_v17, %v1263_v45  ;;  %v1272_v13 = vadd.f32 %v1268_v17, %v1264_v46 }
 0x376   : > { %v1273_v40 = vmul.f32 0.1, %v1270_v47  ;;  %v1274_v48 = vmul.f32 0.1, %v1271_v38  ;;  %v1275_v36 = vmul.f32 0.1, %v1272_v13 }
 0x378   : > { %v1276_v51 = vmax.f32 %v1270_v47, %v1273_v40  ;;  %v1277_v52 = vmax.f32 %v1271_v38, %v1274_v48  ;;  %v1278_v22 = vmax.f32 %v1272_v13, %v1275_v36 }
 0x37a   : > { %v1279_v4 = vmul.f32 %v1276_v51, %v3127_v0  ;;  %v1280_v19 = vmul.f32 %v1277_v52, %v3131_v9  ;;  %v1281_v34 = vmul.f32 %v1278_v22, %v3125_v61 }
 0x37c   : > { %v1285_v15 = vcombine.low %v1279_v4, %v1280_v19 }
 0x37e   : > { %1286 = vrot.lane.b32.xlu1 %v1285_v15, %s2700_s17 }
 0x382   : > { %1288 = vrot.lane.b32.xlu1 %v1281_v34, %s2700_s17 }
 0x3bb   : > { %v2316_v28 = vpop.permute.xlu1 %2315 }
 0x3bc   : > { %v2318_v44 = vadd.f32 %v2316_v28, %v2310_v53  ;;  %v2319_v49 = vadd.f32 %v2316_v28, %v2311_v3  ;;  %v2320_v58 = vadd.f32 %v2316_v28, %v2312_v56 }
 0x3be   : > { %v2321_v59 = vmul.f32 0.1, %v2318_v44  ;;  %v2322_v14 = vmul.f32 0.1, %v2319_v49  ;;  %v2323_v54 = vmul.f32 0.1, %v2320_v58 }
 0x3c0   : > { %v2324_v60 = vmax.f32 %v2318_v44, %v2321_v59  ;;  %v2325_v62 = vmax.f32 %v2319_v49, %v2322_v14  ;;  %v2326_v1 = vmax.f32 %v2320_v58, %v2323_v54 }
 0x3c2   : > { %v2327_v63 = vmul.f32 %v2324_v60, %v3127_v0  ;;  %v2328_v57 = vmul.f32 %v2325_v62, %v3131_v9  ;;  %v2329_v12 = vmul.f32 %v2326_v1, %v3125_v61 }
 0x3c4   : > { %v2333_v18 = vcombine.low %v2327_v63, %v2328_v57 }
 0x3c6   : > { %2334 = vrot.lane.b32.xlu0 %v2333_v18, %s2700_s17 }
 0x3ca   : > { %2336 = vrot.lane.b32.xlu0 %v2329_v12, %s2700_s17 }
 0x3f0   : > { %v1287_v23 = vpop.permute.xlu1 %1286 }
 0x3f1   : > { %v1290_v2 = vrot.slane %v1287_v23, 4 }
 0x3f3   : > { %v1292_v6 = vsel %vm1291_vm0, %v1290_v2, %v1287_v23 }
 0x3f4   : > { %1299 = vst.msk [vmem:[%s3201_s6] sm:$0xff] %vm1298_vm1, %v1292_v6  ;;  %v1289_v0 = vpop.permute.xlu1 %1288 }
 0x3f5   : > { %v1293_v9 = vsel %vm1291_vm0, %v1290_v2, %v1289_v0 }
 0x3f6   : > { %1301 = vst.msk [vmem:[%s3201_s6 + $0x8] sm:$0xf] %vm1300_vm2, %v1293_v9 }
 0x438   : > { %v2335_v5 = vpop.permute.xlu0 %2334 }
 0x439   : > { %v2338_v8 = vrot.slane %v2335_v5, 4 }
 0x43b   : > { %v2339_v10 = vsel %vm1291_vm0, %v2338_v8, %v2335_v5 }
 0x43c   : > { %2484 = vst.msk [vmem:[%s3201_s6 + $0xc] sm:$0xff] %vm1298_vm1, %v2339_v10  ;;  %v2337_v61 = vpop.permute.xlu0 %2336 }
 0x43d   : > { %v2340_v11 = vsel %vm1291_vm0, %v2338_v8, %v2337_v61 }
 0x43e   : > { %2485 = vst.msk [vmem:[%s3201_s6 + $0x14] sm:$0xf] %vm1300_vm2, %v2340_v11 }
 0x43f PF: > { %s14_s15 = sadd.s32 1, %s2683_s15  }
 0x440   : > { %p11_p4 = scmp.ge.s32.totalorder %s14_s15, 6  }
 0x442   :  { %13 = sbr.rel (!%p11_p4) target bundleno = 1 (0x1), region = 76 }

</bundles_post_ra>
